<compile_context>
chip_gen: v5e
topology: v5e:2x2
jax: 0.10.0
libtpu: 0.0.40
codegen_flags: <defaults>
</compile_context>

<pallas_src>
import math

import jax
import jax.numpy as jnp
from jax import lax
from jax.experimental import pallas as pl
from jax.experimental.pallas import tpu as pltpu


# ----------------------------------------------------------------------------
# Small helpers
# ----------------------------------------------------------------------------
def _silu(z):
    return z * jax.nn.sigmoid(z)


def _dot(a, b):
    return jnp.dot(a, b, preferred_element_type=jnp.float32)


# ----------------------------------------------------------------------------
# Parameter initialization (deterministic, PyTorch-like uniform fan-in init)
# ----------------------------------------------------------------------------
def init_linear(key, in_f, out_f):
    kw, kb = jax.random.split(key)
    bound = 1.0 / math.sqrt(in_f)
    return {"w": jax.random.uniform(kw, (out_f, in_f), jnp.float32, -bound, bound),
            "b": jax.random.uniform(kb, (out_f,), jnp.float32, -bound, bound)}


def init_mlp2(key, in_f, hid_f, out_f):
    k1, k2 = jax.random.split(key)
    return {"l1": init_linear(k1, in_f, hid_f), "l2": init_linear(k2, hid_f, out_f)}


def init_ln(dim):
    return {"g": jnp.ones((dim,), jnp.float32), "b": jnp.zeros((dim,), jnp.float32)}


def init_attention(key, input_nf, output_nf, hidden_nf, n_heads, dim_head):
    ks = jax.random.split(key, 11)
    return {
        "to_q": init_linear(ks[0], input_nf, n_heads * dim_head),
        "to_k": init_linear(ks[1], input_nf, n_heads * dim_head),
        "to_v": init_linear(ks[2], input_nf, n_heads * dim_head),
        "to_out": init_linear(ks[3], n_heads * dim_head, output_nf),
        "pos_mlp": init_mlp2(ks[4], 1, hidden_nf // 2, n_heads),
        "edge_mlp": init_mlp2(ks[5], input_nf * 2 + 1 + 6, hidden_nf, hidden_nf),
        "edge_weight": init_linear(ks[6], hidden_nf, n_heads),
        "msg_mlp": init_mlp2(ks[7], hidden_nf + 1 + 3 + 6, hidden_nf, hidden_nf),
        "gate_mlp": init_linear(ks[8], hidden_nf, n_heads),
        "coord_mlp": init_mlp2(ks[9], hidden_nf, hidden_nf, n_heads),
        "coord_weights": jnp.ones((n_heads,), jnp.float32),
        "cross_mlp": init_mlp2(ks[10], hidden_nf, hidden_nf, n_heads),
    }


def init_layer(key, input_nf, output_nf, hidden_nf, n_heads, dim_head):
    k1, k2, k3 = jax.random.split(key, 3)
    return {
        "attention": init_attention(k1, input_nf, output_nf, hidden_nf, n_heads, dim_head),
        "proj": init_linear(k2, input_nf, output_nf) if input_nf != output_nf else None,
        "ff_ln": init_ln(output_nf),
        "ff": init_mlp2(k3, output_nf, hidden_nf * 2, output_nf),
        "norm1": init_ln(input_nf),
    }


def init_model(key, input_nf, output_nf, hidden_nf, n_layers, n_heads, dim_head):
    keys = jax.random.split(key, n_layers + 1)
    layers = [init_layer(keys[i], hidden_nf, hidden_nf, hidden_nf, n_heads, dim_head)
              for i in range(n_layers - 1)]
    layers.append(init_layer(keys[n_layers - 1], hidden_nf, output_nf, hidden_nf,
                             n_heads, dim_head))
    return {"input_embedding": init_linear(keys[n_layers], input_nf, hidden_nf),
            "layers": layers}


# ----------------------------------------------------------------------------
# Static layout of the packed per-layer slabs
# ----------------------------------------------------------------------------
def _build_layout(cfg):
    F = cfg["hidden_nf"]
    H = cfg["n_heads"]
    DH = cfg["dim_head"]
    HD = H * DH
    out_nf = cfg["output_nf"]
    assert out_nf <= F, "this script pads the final layer's output up to hidden_nf"
    OP = F  # padded node-feature width carried between layers

    def put(d, name, w, o):
        d[name] = (o, w)
        return o + w

    # node-projection slab (single matmul of [h_norm | x_nrm | x | 1 | h])
    node_cols = {}
    off = 0
    for name, w in (("q", HD), ("k", HD), ("v", HD), ("hn_r", F), ("hn_c", F),
                    ("xe_r", F), ("xe_c", F), ("xm_r", F), ("xm_c", F), ("x", 3)):
        off = put(node_cols, name, w, off)
    off += (-off) % 8
    for name, w in (("proj", OP), ("rp", F), ("p12", 6)):
        off = put(node_cols, name, w, off)
    off += (-off) % 8
    node_w = off
    node_rows_map = {"h_norm": (0, F), "x_nrm": (F, 3), "x": (F + 3, 3),
                     "one": (F + 6, 1), "h": (F + 7, F)}
    node_rows = 2 * F + 7

    # weights whose matmul contraction dim == F
    e32_cols = {}
    off = 0
    for name, w in (("we2", F), ("mef_ew", F + H), ("wm2", F), ("mg", 2 * F + H),
                    ("pos_w2", H), ("wf1", 2 * F)):
        off = put(e32_cols, name, w, off)
    e32_w = off

    # weights whose matmul contraction dim == HD or 2*F
    e64_cols = {}
    off = 0
    for name, w in (("w_out", OP), ("wf2", OP), ("cc2", 2 * H)):
        off = put(e64_cols, name, w, off)
    e64_w = off
    e64_rows = max(HD, 2 * F)

    # packed 1-row vectors (one DMA per layer)
    vec_names = ("ln1_g", "ln1_b", "fmask", "inv_out", "pos_w1", "pos_b1",
                 "pos_b2", "we_d", "be2", "b_ew", "wm_am", "bm2", "mg_b",
                 "cc2_b", "coord_w", "b_out", "lnf_g", "lnf_b", "bf1", "bf2")
    vec_rows = {n: i for i, n in enumerate(vec_names)}
    nvr = len(vec_names)
    vec_nrows = nvr + ((-nvr) % 8)
    vec_w = 128
    assert 2 * F + H <= vec_w

    return dict(OP=OP, node_cols=node_cols, node_w=node_w,
                node_rows_map=node_rows_map, node_rows=node_rows,
                e32_cols=e32_cols, e32_w=e32_w,
                e64_cols=e64_cols, e64_w=e64_w, e64_rows=e64_rows,
                vec_rows=vec_rows, vec_nrows=vec_nrows, vec_w=vec_w)


# ----------------------------------------------------------------------------
# One-time parameter preparation: transpose, fuse, pad and stack per layer
# ----------------------------------------------------------------------------
def prep_model(params, cfg, lay):
    F = cfg["hidden_nf"]
    H = cfg["n_heads"]
    DH = cfg["dim_head"]
    HD = H * DH
    OP = lay["OP"]
    out_last = cfg["output_nf"]
    n_layers = cfg["n_layers"]

    def T(lin):
        return lin["w"].T  # [in, out]

    p1 = jnp.array([[0., 0., 1.], [1., 0., 0.], [0., 1., 0.]], jnp.float32)
    p2 = jnp.array([[0., 1., 0.], [0., 0., 1.], [1., 0., 0.]], jnp.float32)

    w_node_l, w_e32_l, w_e64_l, vec_l = [], [], [], []
    for li, lp in enumerate(params["layers"]):
        is_last = (li == n_layers - 1)
        out_nf = out_last if is_last else F
        att = lp["attention"]

        ew1 = T(att["edge_mlp"]["l1"])   # [2F+7, F]
        mw1 = T(att["msg_mlp"]["l1"])    # [F+10, F]

        # -------- node slab weight (and folded biases) --------
        wn = jnp.zeros((lay["node_rows"], lay["node_w"]), jnp.float32)
        r_h = lay["node_rows_map"]["h_norm"][0]
        r_xn = lay["node_rows_map"]["x_nrm"][0]
        r_x = lay["node_rows_map"]["x"][0]
        r_one = lay["node_rows_map"]["one"][0]
        r_hr = lay["node_rows_map"]["h"][0]

        def cset(w, rows0, name, block):
            c0, _ = lay["node_cols"][name]
            return w.at[rows0:rows0 + block.shape[0], c0:c0 + block.shape[1]].set(block)

        def bset(w, name, v):
            c0, _ = lay["node_cols"][name]
            return w.at[r_one, c0:c0 + v.shape[0]].set(v)

        wn = cset(wn, r_h, "q", T(att["to_q"]))
        wn = cset(wn, r_h, "k", T(att["to_k"]))
        wn = cset(wn, r_h, "v", T(att["to_v"]))
        wn = cset(wn, r_h, "hn_r", ew1[0:F])
        wn = cset(wn, r_h, "hn_c", ew1[F:2 * F])
        wn = cset(wn, r_xn, "xe_r", ew1[2 * F + 1:2 * F + 4])
        wn = cset(wn, r_xn, "xe_c", ew1[2 * F + 4:2 * F + 7])
        wn = cset(wn, r_xn, "xm_r", mw1[F + 4:F + 7])
        wn = cset(wn, r_xn, "xm_c", mw1[F + 7:F + 10])
        wn = cset(wn, r_x, "x", jnp.eye(3, dtype=jnp.float32))
        wn = cset(wn, r_x, "rp", mw1[F + 1:F + 4])
        wn = cset(wn, r_x, "p12", jnp.concatenate([p1, p2], axis=1))
        wn = bset(wn, "q", att["to_q"]["b"])
        wn = bset(wn, "k", att["to_k"]["b"])
        wn = bset(wn, "v", att["to_v"]["b"])
        wn = bset(wn, "hn_r", att["edge_mlp"]["l1"]["b"])   # be1, gathered by row
        wn = bset(wn, "xm_r", att["msg_mlp"]["l1"]["b"])    # bm1, gathered by row
        if lp["proj"] is None:
            w_proj = jnp.eye(F, OP, dtype=jnp.float32)
            b_proj = jnp.zeros((OP,), jnp.float32)
        else:
            w_proj = jnp.zeros((F, OP), jnp.float32).at[:, :out_nf].set(T(lp["proj"]))
            b_proj = jnp.zeros((OP,), jnp.float32).at[:out_nf].set(lp["proj"]["b"])
        wn = cset(wn, r_hr, "proj", w_proj)
        wn = bset(wn, "proj", b_proj)
        w_node_l.append(wn)

        # -------- contraction-dim-F weight slab --------
        w32 = jnp.zeros((F, lay["e32_w"]), jnp.float32)

        def set32(w, name, block):
            c0, _ = lay["e32_cols"][name]
            return w.at[0:block.shape[0], c0:c0 + block.shape[1]].set(block)

        w32 = set32(w32, "we2", T(att["edge_mlp"]["l2"]))
        w32 = set32(w32, "mef_ew",
                    jnp.concatenate([mw1[0:F], T(att["edge_weight"])], axis=1))
        w32 = set32(w32, "wm2", T(att["msg_mlp"]["l2"]))
        w32 = set32(w32, "mg",
                    jnp.concatenate([T(att["coord_mlp"]["l1"]),
                                     T(att["cross_mlp"]["l1"]),
                                     T(att["gate_mlp"])], axis=1))
        w32 = set32(w32, "pos_w2", T(att["pos_mlp"]["l2"]))          # rows F//2:F zero
        wf1 = jnp.zeros((OP, 2 * F), jnp.float32).at[:out_nf, :].set(T(lp["ff"]["l1"]))
        w32 = set32(w32, "wf1", wf1)
        w_e32_l.append(w32)

        # -------- contraction-dim-HD / 2F weight slab --------
        w64 = jnp.zeros((lay["e64_rows"], lay["e64_w"]), jnp.float32)

        def set64(w, name, block):
            c0, _ = lay["e64_cols"][name]
            return w.at[0:block.shape[0], c0:c0 + block.shape[1]].set(block)

        w_out = jnp.zeros((HD, OP), jnp.float32).at[:, :out_nf].set(T(att["to_out"]))
        w64 = set64(w64, "w_out", w_out)
        wf2 = jnp.zeros((2 * F, OP), jnp.float32).at[:, :out_nf].set(T(lp["ff"]["l2"]))
        w64 = set64(w64, "wf2", wf2)
        cc2 = jnp.zeros((2 * F, 2 * H), jnp.float32)
        cc2 = cc2.at[0:F, 0:H].set(T(att["coord_mlp"]["l2"]))
        cc2 = cc2.at[F:2 * F, H:2 * H].set(T(att["cross_mlp"]["l2"]))
        w64 = set64(w64, "cc2", cc2)
        w_e64_l.append(w64)

        # -------- packed 1-row vectors --------
        vecm = jnp.zeros((lay["vec_nrows"], lay["vec_w"]), jnp.float32)

        def setv(w, name, v):
            r = lay["vec_rows"][name]
            return w.at[r, 0:v.shape[0]].set(v)

        vecm = setv(vecm, "ln1_g", lp["norm1"]["g"])
        vecm = setv(vecm, "ln1_b", lp["norm1"]["b"])
        vecm = setv(vecm, "fmask",
                    jnp.zeros((OP,), jnp.float32).at[:out_nf].set(1.0))
        vecm = setv(vecm, "inv_out", jnp.full((OP,), 1.0 / out_nf, jnp.float32))
        vecm = setv(vecm, "pos_w1",
                    jnp.zeros((F,), jnp.float32).at[:F // 2].set(T(att["pos_mlp"]["l1"])[0]))
        vecm = setv(vecm, "pos_b1",
                    jnp.zeros((F,), jnp.float32).at[:F // 2].set(att["pos_mlp"]["l1"]["b"]))
        vecm = setv(vecm, "pos_b2", att["pos_mlp"]["l2"]["b"])
        vecm = setv(vecm, "we_d", ew1[2 * F])
        vecm = setv(vecm, "be2", att["edge_mlp"]["l2"]["b"])
        vecm = setv(vecm, "b_ew", att["edge_weight"]["b"])
        vecm = setv(vecm, "wm_am", mw1[F])
        vecm = setv(vecm, "bm2", att["msg_mlp"]["l2"]["b"])
        vecm = setv(vecm, "mg_b",
                    jnp.concatenate([att["coord_mlp"]["l1"]["b"],
                                     att["cross_mlp"]["l1"]["b"],
                                     att["gate_mlp"]["b"]]))
        vecm = setv(vecm, "cc2_b",
                    jnp.concatenate([att["coord_mlp"]["l2"]["b"],
                                     att["cross_mlp"]["l2"]["b"]]))
        vecm = setv(vecm, "coord_w", att["coord_weights"])
        vecm = setv(vecm, "b_out",
                    jnp.zeros((OP,), jnp.float32).at[:out_nf].set(att["to_out"]["b"]))
        vecm = setv(vecm, "lnf_g",
                    jnp.zeros((OP,), jnp.float32).at[:out_nf].set(lp["ff_ln"]["g"]))
        vecm = setv(vecm, "lnf_b",
                    jnp.zeros((OP,), jnp.float32).at[:out_nf].set(lp["ff_ln"]["b"]))
        vecm = setv(vecm, "bf1", lp["ff"]["l1"]["b"])
        vecm = setv(vecm, "bf2",
                    jnp.zeros((OP,), jnp.float32).at[:out_nf].set(lp["ff"]["l2"]["b"]))
        vec_l.append(vecm)

    return {
        "emb_w": params["input_embedding"]["w"].T,
        "emb_b": params["input_embedding"]["b"][None, :],
        "w_node": jnp.stack(w_node_l),
        "w_e32": jnp.stack(w_e32_l),
        "w_e64": jnp.stack(w_e64_l),
        "vec": jnp.stack(vec_l),
    }


def build_structs(edge_index, n_nodes, n_heads, dim_head):
    row, col = edge_index[0], edge_index[1]
    ar = jnp.arange(n_nodes, dtype=row.dtype)
    g_row = (row[:, None] == ar[None, :]).astype(jnp.float32)   # [E, N] gather by row
    g_col = (col[:, None] == ar[None, :]).astype(jnp.float32)   # [E, N] gather by col
    # rel_pos.roll(1,0) folded into a single one-hot difference matrix (host-side)
    g_roll = jnp.roll(g_row, 1, axis=0) - jnp.roll(g_col, 1, axis=0)
    g_rc = jnp.concatenate([g_row, g_col, g_roll], axis=1)      # [E, 3N]
    hd = n_heads * dim_head
    head_ids = jnp.arange(hd) // dim_head
    hsum = (head_ids[:, None] == jnp.arange(n_heads)[None, :]).astype(jnp.float32)
    return {"g_rc": g_rc, "s_row": g_row.T, "hsum": hsum, "hexp": hsum.T}


# ----------------------------------------------------------------------------
# The single fused Pallas kernel (embedding + all transformer layers)
# ----------------------------------------------------------------------------
def _make_kernel(cfg, lay):
    N = cfg["n_nodes"]
    H = cfg["n_heads"]
    DH = cfg["dim_head"]
    HD = H * DH
    F = cfg["hidden_nf"]
    OP = lay["OP"]
    L = cfg["n_layers"]
    inv_sqrt_dh = 1.0 / math.sqrt(float(DH))
    inv_nm1 = 1.0 / float(N - 1)
    inv_heads = 1.0 / float(H)
    ncols = lay["node_cols"]
    e32c = lay["e32_cols"]
    e64c = lay["e64_cols"]
    vr = lay["vec_rows"]

    def _nc(arr, name):
        o, w = ncols[name]
        return arr[:, o:o + w]

    def _c32(arr, name):
        o, w = e32c[name]
        return arr[:, o:o + w]

    def _c64(arr, name, rows):
        o, w = e64c[name]
        return arr[0:rows, o:o + w]

    def kernel(h_in_ref, x_in_ref, emb_w_ref, emb_b_ref, g_rc_ref, s_row_ref,
               hsum_ref, hexp_ref, w_node_ref, w_e32_ref, w_e64_ref, vec_ref,
               h_out_ref, x_out_ref, h_s, x_s):
        layer = pl.program_id(0)

        # ---- layer 0: input embedding, initialise the VMEM-resident carry ----
        @pl.when(layer == 0)
        def _():
            h_s[...] = _dot(h_in_ref[...], emb_w_ref[...]) + emb_b_ref[...]
            x_s[...] = x_in_ref[...]

        h = h_s[...]                       # [N, F]
        x = x_s[...]                       # [N, 3]

        w_node = w_node_ref[0]
        w_e32 = w_e32_ref[0]
        w_e64 = w_e64_ref[0]
        vec = vec_ref[0]
        g_rc = g_rc_ref[...]
        g_row = g_rc[:, 0:N]
        g_col = g_rc[:, N:2 * N]
        g_roll = g_rc[:, 2 * N:3 * N]
        s_row = s_row_ref[...]
        hsum = hsum_ref[...]
        hexp = hexp_ref[...]

        def vrow(name, w):
            r = vr[name]
            return vec[r:r + 1, 0:w]

        # ---- norm1 (LayerNorm over node features) ----
        mu = jnp.mean(h, axis=-1, keepdims=True)
        var = jnp.mean((h - mu) ** 2, axis=-1, keepdims=True)
        h_norm = (h - mu) * lax.rsqrt(var + 1e-5) * vrow("ln1_g", F) + vrow("ln1_b", F)

        # ---- coordinate normalization (torch.std, ddof=1) ----
        xm = jnp.mean(x, axis=0, keepdims=True)
        xv = jnp.sum((x - xm) ** 2, axis=0, keepdims=True) * inv_nm1
        x_nrm = (x - xm) * pl.reciprocal(jnp.sqrt(xv) + 1e-8, approx=True)

        # ---- ONE fused node-level projection (q/k/v, edge/msg input projs,
        #      residual proj, x pass-through, rel_pos permutations, biases) ----
        ones = jnp.ones((N, 1), jnp.float32)
        hxx = jnp.concatenate([h_norm, x_nrm, x, ones, h], axis=-1)
        node_slab = _dot(hxx, w_node)                          # [N, NODE_W]

        # ---- two gathers (one-hot matmuls) ----
        row_s = _dot(g_row, node_slab)                         # [E, NODE_W]
        col_s = _dot(g_col, node_slab)

        q_e = _nc(row_s, "q")
        k_e = _nc(col_s, "k")
        v_e = _nc(col_s, "v")
        x_row = _nc(row_s, "x")
        x_col = _nc(col_s, "x")
        rel_pos = x_row - x_col
        rel_dist = jnp.sum(rel_pos * rel_pos, axis=-1, keepdims=True)
        rp_m = _nc(row_s, "rp") - _nc(col_s, "rp")             # rel_pos @ wm_rp
        ap12 = _nc(row_s, "p12") - _nc(col_s, "p12")           # rel_pos @ [p1|p2]
        bp12 = _dot(g_roll, _nc(node_slab, "p12"))             # roll(rel_pos) @ [p1|p2]

        # ---- pos mlp ----
        ph = _silu(rel_dist * vrow("pos_w1", F) + vrow("pos_b1", F))
        pos_enc = _dot(ph, _c32(w_e32, "pos_w2")) + vrow("pos_b2", H)

        # ---- edge mlp (first-layer concat realised via the node matmul) ----
        e1 = (_nc(row_s, "hn_r") + _nc(col_s, "hn_c")
              + rel_dist * vrow("we_d", F)
              + _nc(row_s, "xe_r") + _nc(col_s, "xe_c"))       # be1 already folded
        edge_feat = _dot(_silu(e1), _c32(w_e32, "we2")) + vrow("be2", F)

        ef2 = _dot(edge_feat, _c32(w_e32, "mef_ew"))           # [E, F+H]
        m_ef = ef2[:, 0:F]
        edge_w = ef2[:, F:F + H] + vrow("b_ew", H)

        # ---- attention scores + per-source-node softmax ----
        score = _dot(q_e * k_e, hsum) * inv_sqrt_dh + pos_enc + edge_w   # [E, H]
        ex = jnp.exp(score - jnp.max(score, axis=0, keepdims=True))      # global shift
        seg_sum = _dot(s_row, ex)                                        # scatter-add
        sum_e = _dot(g_row, seg_sum)                                     # gather back
        attn = ex * pl.reciprocal(sum_e + 1e-8, approx=True)

        # ---- message mlp ----
        attn_mean = jnp.sum(attn, axis=-1, keepdims=True) * inv_heads
        m1 = (m_ef + attn_mean * vrow("wm_am", F) + rp_m
              + _nc(row_s, "xm_r") + _nc(col_s, "xm_c"))        # bm1 already folded
        messages = _dot(_silu(m1), _c32(w_e32, "wm2")) + vrow("bm2", F)

        # ---- gate / coord / cross heads (fused first layers, blockdiag second) --
        mg = _dot(messages, _c32(w_e32, "mg")) + vrow("mg_b", 2 * F + H)
        gates = jax.nn.sigmoid(mg[:, 2 * F:2 * F + H])
        cc2 = (_dot(_silu(mg[:, 0:2 * F]), _c64(w_e64, "cc2", 2 * F))
               + vrow("cc2_b", 2 * H))
        coord_h = cc2[:, 0:H]
        cross_g = cc2[:, H:2 * H]

        head_scale = jnp.sum(gates * coord_h * vrow("coord_w", H),
                             axis=-1, keepdims=True)
        coord_vals = head_scale * (0.9 * rel_pos + 0.1 * x_col) * inv_nm1

        cross_vec = ap12[:, 0:3] * bp12[:, 3:6] - ap12[:, 3:6] * bp12[:, 0:3]
        cross_scale = jnp.sum(cross_g, axis=-1, keepdims=True)
        cross_vals = cross_scale * cross_vec * inv_nm1

        # ---- ONE scatter: attention-weighted values + coordinate updates ----
        attn_exp = _dot(attn, hexp)                             # [E, HD] head expand
        edge_out = jnp.concatenate([attn_exp * v_e, coord_vals + cross_vals], axis=-1)
        node_agg = _dot(s_row, edge_out)                        # [N, HD+3]
        agg = node_agg[:, 0:HD]
        coord_update = node_agg[:, HD:HD + 3]

        h_attn = _dot(agg, _c64(w_e64, "w_out", HD)) + vrow("b_out", OP)
        h_proj = _nc(node_slab, "proj")
        h_new = h_proj + h_attn            # dropout == identity (eval mode)
        x_new = x + coord_update

        # ---- feed-forward (feature-masked LayerNorm for the padded last layer) --
        inv_out = vrow("inv_out", 1)
        fmask = vrow("fmask", OP)
        mu2 = jnp.sum(h_new, axis=-1, keepdims=True) * inv_out
        cen = h_new - mu2
        var2 = jnp.sum(cen * cen * fmask, axis=-1, keepdims=True) * inv_out
        h_ln = cen * lax.rsqrt(var2 + 1e-5) * vrow("lnf_g", OP) + vrow("lnf_b", OP)
        ff1 = _silu(_dot(h_ln, _c32(w_e32, "wf1")) + vrow("bf1", 2 * F))
        h_ff = _dot(ff1, _c64(w_e64, "wf2", 2 * F)) + vrow("bf2", OP)
        h_final = h_new + h_ff

        # carry to the next layer
        h_s[...] = h_final
        x_s[...] = x_new

        @pl.when(layer == L - 1)
        def _():
            h_out_ref[...] = h_final
            x_out_ref[...] = x_new

    return kernel


# ----------------------------------------------------------------------------
# Forward pass wrapper: a single pallas_call with a layer grid
# ----------------------------------------------------------------------------
def make_forward(cfg, lay):
    N = cfg["n_nodes"]
    L = cfg["n_layers"]
    OP = lay["OP"]
    out_nf = cfg["output_nf"]
    kernel = _make_kernel(cfg, lay)

    def _const_spec(a):
        zeros = (0,) * a.ndim
        return pl.BlockSpec(tuple(a.shape), lambda l: zeros)

    def _layer_spec(a):
        zeros = (0,) * (a.ndim - 1)
        return pl.BlockSpec((1,) + tuple(a.shape[1:]), lambda l: (l,) + zeros)

    def fwd(prep, structs, h_in, x_in):
        args = (h_in, x_in, prep["emb_w"], prep["emb_b"],
                structs["g_rc"], structs["s_row"], structs["hsum"], structs["hexp"],
                prep["w_node"], prep["w_e32"], prep["w_e64"], prep["vec"])
        in_specs = ([_const_spec(a) for a in args[:8]]
                    + [_layer_spec(a) for a in args[8:]])
        grid_spec = pltpu.PrefetchScalarGridSpec(
            num_scalar_prefetch=0,
            grid=(L,),
            in_specs=in_specs,
            out_specs=[pl.BlockSpec((N, OP), lambda l: (0, 0)),
                       pl.BlockSpec((N, 3), lambda l: (0, 0))],
            scratch_shapes=[pltpu.VMEM((N, OP), jnp.float32),
                            pltpu.VMEM((N, 3), jnp.float32)])
        h_pad, x_out = pl.pallas_call(
            kernel,
            grid_spec=grid_spec,
            out_shape=(jax.ShapeDtypeStruct((N, OP), jnp.float32),
                       jax.ShapeDtypeStruct((N, 3), jnp.float32)),
            compiler_params=pltpu.CompilerParams(
                dimension_semantics=("arbitrary",),
                vmem_limit_bytes=32 * 1024 * 1024),
        )(*args)
        return h_pad[:, :out_nf], x_out

    return fwd


# ----------------------------------------------------------------------------
# Main
# ----------------------------------------------------------------------------
if __name__ == "__main__":
    N_NODES, INPUT_NF, HIDDEN_NF, OUTPUT_NF = 8, 6, 32, 16
    N_LAYERS, N_HEADS, DIM_HEAD = 2, 4, 16

    cfg = dict(n_nodes=N_NODES, input_nf=INPUT_NF, hidden_nf=HIDDEN_NF,
               output_nf=OUTPUT_NF, n_layers=N_LAYERS, n_heads=N_HEADS,
               dim_head=DIM_HEAD)
    lay = _build_layout(cfg)

    key = jax.random.PRNGKey(0)
    kp, kh, kx = jax.random.split(key, 3)

    params = init_model(kp, INPUT_NF, OUTPUT_NF, HIDDEN_NF,
                        N_LAYERS, N_HEADS, DIM_HEAD)
    prep = prep_model(params, cfg, lay)

    h_in = jax.random.normal(kh, (N_NODES, INPUT_NF), jnp.float32)
    x_in = jax.random.normal(kx, (N_NODES, 3), jnp.float32)

    # fully connected graph without self-loops: n_edges = N*(N-1) = 56
    edges = [(i, j) for i in range(N_NODES) for j in range(N_NODES) if i != j]
    edge_index = jnp.array(edges, dtype=jnp.int32).T            # [2, 56]
    structs = build_structs(edge_index, N_NODES, N_HEADS, DIM_HEAD)

    fwd = jax.jit(make_forward(cfg, lay))
    h_out, x_out = fwd(prep, structs, h_in, x_in)
    jax.block_until_ready((h_out, x_out))

    assert h_out.shape == (N_NODES, OUTPUT_NF)
    assert x_out.shape == (N_NODES, 3)
    assert bool(jnp.all(jnp.isfinite(h_out))) and bool(jnp.all(jnp.isfinite(x_out)))
    print("KERNEL_OK")
</pallas_src>

<mosaic_0001>
module attributes {stable_mosaic.version = 11 : i64} {
  func.func @kernel(%arg0: i32, %arg1: memref<8x6xf32, #tpu.memory_space<vmem>>, %arg2: memref<8x3xf32, #tpu.memory_space<vmem>>, %arg3: memref<6x32xf32, #tpu.memory_space<vmem>>, %arg4: memref<1x32xf32, #tpu.memory_space<vmem>>, %arg5: memref<56x24xf32, #tpu.memory_space<vmem>>, %arg6: memref<8x56xf32, #tpu.memory_space<vmem>>, %arg7: memref<64x4xf32, #tpu.memory_space<vmem>>, %arg8: memref<4x64xf32, #tpu.memory_space<vmem>>, %arg9: memref<1x71x464xf32, #tpu.memory_space<vmem>>, %arg10: memref<1x32x236xf32, #tpu.memory_space<vmem>>, %arg11: memref<1x64x72xf32, #tpu.memory_space<vmem>>, %arg12: memref<1x24x128xf32, #tpu.memory_space<vmem>>, %arg13: memref<8x32xf32, #tpu.memory_space<vmem>>, %arg14: memref<8x3xf32, #tpu.memory_space<vmem>>, %arg15: memref<8x32xf32, #tpu.memory_space<vmem>>, %arg16: memref<8x3xf32, #tpu.memory_space<vmem>>) attributes {dimension_semantics = [#tpu.dimension_semantics<arbitrary>], iteration_bounds = array<i64: 2>, scalar_prefetch = 0 : i64, scratch_operands = 2 : i64, tpu.core_type = #tpu.core_type<tc>, window_params = [{pipeline_mode = #tpu.pipeline_mode<synchronous>, transform_indices = @transform_0, window_bounds = array<i64: 8, 6>}, {pipeline_mode = #tpu.pipeline_mode<synchronous>, transform_indices = @transform_1, window_bounds = array<i64: 8, 3>}, {pipeline_mode = #tpu.pipeline_mode<synchronous>, transform_indices = @transform_2, window_bounds = array<i64: 6, 32>}, {pipeline_mode = #tpu.pipeline_mode<synchronous>, transform_indices = @transform_3, window_bounds = array<i64: 1, 32>}, {pipeline_mode = #tpu.pipeline_mode<synchronous>, transform_indices = @transform_4, window_bounds = array<i64: 56, 24>}, {pipeline_mode = #tpu.pipeline_mode<synchronous>, transform_indices = @transform_5, window_bounds = array<i64: 8, 56>}, {pipeline_mode = #tpu.pipeline_mode<synchronous>, transform_indices = @transform_6, window_bounds = array<i64: 64, 4>}, {pipeline_mode = #tpu.pipeline_mode<synchronous>, transform_indices = @transform_7, window_bounds = array<i64: 4, 64>}, {transform_indices = @transform_8, window_bounds = array<i64: 1, 71, 464>}, {transform_indices = @transform_9, window_bounds = array<i64: 1, 32, 236>}, {transform_indices = @transform_10, window_bounds = array<i64: 1, 64, 72>}, {transform_indices = @transform_11, window_bounds = array<i64: 1, 24, 128>}, {pipeline_mode = #tpu.pipeline_mode<synchronous>, transform_indices = @transform_12, window_bounds = array<i64: 8, 32>}, {pipeline_mode = #tpu.pipeline_mode<synchronous>, transform_indices = @transform_13, window_bounds = array<i64: 8, 3>}]} {
    %c0_i32 = arith.constant 0 : i32
    %0 = arith.cmpi eq, %arg0, %c0_i32 : i32
    %1 = arith.extui %0 : i1 to i32
    %c0_i32_0 = arith.constant 0 : i32
    %2 = arith.cmpi ne, %1, %c0_i32_0 : i32
    scf.if %2 {
      %c0_78 = arith.constant 0 : index
      %c0_79 = arith.constant 0 : index
      %291 = vector.load %arg1[%c0_78, %c0_79] : memref<8x6xf32, #tpu.memory_space<vmem>>, vector<8x6xf32>
      %c0_80 = arith.constant 0 : index
      %c0_81 = arith.constant 0 : index
      %292 = vector.load %arg3[%c0_80, %c0_81] : memref<6x32xf32, #tpu.memory_space<vmem>>, vector<6x32xf32>
      %cst_82 = arith.constant dense<0.000000e+00> : vector<8x32xf32>
      %293 = tpu.matmul %291, %292, %cst_82 {dimension_numbers = #tpu.dot_dimension_numbers<[1], [0], [0], [1], [0, 0, 1, 1], [], []>} : vector<8x6xf32>, vector<6x32xf32>, vector<8x32xf32> -> vector<8x32xf32>
      %c0_83 = arith.constant 0 : index
      %c0_84 = arith.constant 0 : index
      %294 = vector.load %arg4[%c0_83, %c0_84] : memref<1x32xf32, #tpu.memory_space<vmem>>, vector<1x32xf32>
      %295 = vector.broadcast %294 : vector<1x32xf32> to vector<8x32xf32>
      %296 = arith.addf %293, %295 : vector<8x32xf32>
      %c0_85 = arith.constant 0 : index
      %c0_86 = arith.constant 0 : index
      %297 = vector.load %arg15[%c0_85, %c0_86] : memref<8x32xf32, #tpu.memory_space<vmem>>, vector<8x32xf32>
      tpu.vector_store %arg15[%c0_85, %c0_86], %296 {strides = array<i32>} : memref<8x32xf32, #tpu.memory_space<vmem>>, vector<8x32xf32>,
      %c0_87 = arith.constant 0 : index
      %c0_88 = arith.constant 0 : index
      %298 = vector.load %arg2[%c0_87, %c0_88] : memref<8x3xf32, #tpu.memory_space<vmem>>, vector<8x3xf32>
      %c0_89 = arith.constant 0 : index
      %c0_90 = arith.constant 0 : index
      %299 = vector.load %arg16[%c0_89, %c0_90] : memref<8x3xf32, #tpu.memory_space<vmem>>, vector<8x3xf32>
      tpu.vector_store %arg16[%c0_89, %c0_90], %298 {strides = array<i32>} : memref<8x3xf32, #tpu.memory_space<vmem>>, vector<8x3xf32>,
    } else {
    }
    %c0 = arith.constant 0 : index
    %c0_1 = arith.constant 0 : index
    %3 = vector.load %arg15[%c0, %c0_1] : memref<8x32xf32, #tpu.memory_space<vmem>>, vector<8x32xf32>
    %c0_2 = arith.constant 0 : index
    %c0_3 = arith.constant 0 : index
    %4 = vector.load %arg16[%c0_2, %c0_3] : memref<8x3xf32, #tpu.memory_space<vmem>>, vector<8x3xf32>
    %c0_4 = arith.constant 0 : index
    %c0_5 = arith.constant 0 : index
    %c0_6 = arith.constant 0 : index
    %5 = vector.load %arg9[%c0_4, %c0_5, %c0_6] : memref<1x71x464xf32, #tpu.memory_space<vmem>>, vector<1x71x464xf32>
    %6 = vector.shape_cast %5 : vector<1x71x464xf32> to vector<71x464xf32>
    %c0_7 = arith.constant 0 : index
    %c0_8 = arith.constant 0 : index
    %c0_9 = arith.constant 0 : index
    %7 = vector.load %arg10[%c0_7, %c0_8, %c0_9] : memref<1x32x236xf32, #tpu.memory_space<vmem>>, vector<1x32x236xf32>
    %8 = vector.shape_cast %7 : vector<1x32x236xf32> to vector<32x236xf32>
    %c0_10 = arith.constant 0 : index
    %c0_11 = arith.constant 0 : index
    %c0_12 = arith.constant 0 : index
    %9 = vector.load %arg11[%c0_10, %c0_11, %c0_12] : memref<1x64x72xf32, #tpu.memory_space<vmem>>, vector<1x64x72xf32>
    %10 = vector.shape_cast %9 : vector<1x64x72xf32> to vector<64x72xf32>
    %c0_13 = arith.constant 0 : index
    %c0_14 = arith.constant 0 : index
    %c0_15 = arith.constant 0 : index
    %11 = vector.load %arg12[%c0_13, %c0_14, %c0_15] : memref<1x24x128xf32, #tpu.memory_space<vmem>>, vector<1x24x128xf32>
    %12 = vector.shape_cast %11 : vector<1x24x128xf32> to vector<24x128xf32>
    %c0_16 = arith.constant 0 : index
    %c0_17 = arith.constant 0 : index
    %13 = vector.load %arg5[%c0_16, %c0_17] : memref<56x24xf32, #tpu.memory_space<vmem>>, vector<56x24xf32>
    %14 = vector.extract_strided_slice %13 {offsets = [0, 0], sizes = [56, 8], strides = [1, 1]} : vector<56x24xf32> to vector<56x8xf32>
    %15 = vector.extract_strided_slice %13 {offsets = [0, 8], sizes = [56, 8], strides = [1, 1]} : vector<56x24xf32> to vector<56x8xf32>
    %16 = vector.extract_strided_slice %13 {offsets = [0, 16], sizes = [56, 8], strides = [1, 1]} : vector<56x24xf32> to vector<56x8xf32>
    %c0_18 = arith.constant 0 : index
    %c0_19 = arith.constant 0 : index
    %17 = vector.load %arg6[%c0_18, %c0_19] : memref<8x56xf32, #tpu.memory_space<vmem>>, vector<8x56xf32>
    %c0_20 = arith.constant 0 : index
    %c0_21 = arith.constant 0 : index
    %18 = vector.load %arg7[%c0_20, %c0_21] : memref<64x4xf32, #tpu.memory_space<vmem>>, vector<64x4xf32>
    %c0_22 = arith.constant 0 : index
    %c0_23 = arith.constant 0 : index
    %19 = vector.load %arg8[%c0_22, %c0_23] : memref<4x64xf32, #tpu.memory_space<vmem>>, vector<4x64xf32>
    %cst = arith.constant dense<0.000000e+00> : vector<8xf32>
    %20 = vector.multi_reduction <add>, %3, %cst [1] : vector<8x32xf32> to vector<8xf32>
    %21 = vector.shape_cast %20 : vector<8xf32> to vector<8x1xf32>
    %cst_24 = arith.constant 3.200000e+01 : f32
    %22 = vector.broadcast %cst_24 : f32 to vector<8x1xf32>
    %23 = arith.divf %21, %22 : vector<8x1xf32>
    %24 = vector.broadcast %23 : vector<8x1xf32> to vector<8x32xf32>
    %25 = arith.subf %3, %24 : vector<8x32xf32>
    %26 = arith.mulf %25, %25 : vector<8x32xf32>
    %cst_25 = arith.constant dense<0.000000e+00> : vector<8xf32>
    %27 = vector.multi_reduction <add>, %26, %cst_25 [1] : vector<8x32xf32> to vector<8xf32>
    %28 = vector.shape_cast %27 : vector<8xf32> to vector<8x1xf32>
    %cst_26 = arith.constant 3.200000e+01 : f32
    %29 = vector.broadcast %cst_26 : f32 to vector<8x1xf32>
    %30 = arith.divf %28, %29 : vector<8x1xf32>
    %31 = vector.broadcast %23 : vector<8x1xf32> to vector<8x32xf32>
    %32 = arith.subf %3, %31 : vector<8x32xf32>
    %cst_27 = arith.constant 9.99999974E-6 : f32
    %33 = vector.broadcast %cst_27 : f32 to vector<8x1xf32>
    %34 = arith.addf %30, %33 : vector<8x1xf32>
    %35 = math.rsqrt %34 : vector<8x1xf32>
    %36 = vector.broadcast %35 : vector<8x1xf32> to vector<8x32xf32>
    %37 = arith.mulf %32, %36 : vector<8x32xf32>
    %38 = vector.extract_strided_slice %12 {offsets = [0, 0], sizes = [1, 32], strides = [1, 1]} : vector<24x128xf32> to vector<1x32xf32>
    %39 = vector.broadcast %38 : vector<1x32xf32> to vector<8x32xf32>
    %40 = arith.mulf %37, %39 : vector<8x32xf32>
    %41 = vector.extract_strided_slice %12 {offsets = [1, 0], sizes = [1, 32], strides = [1, 1]} : vector<24x128xf32> to vector<1x32xf32>
    %42 = vector.broadcast %41 : vector<1x32xf32> to vector<8x32xf32>
    %43 = arith.addf %40, %42 : vector<8x32xf32>
    %cst_28 = arith.constant dense<0.000000e+00> : vector<3xf32>
    %44 = vector.multi_reduction <add>, %4, %cst_28 [0] : vector<8x3xf32> to vector<3xf32>
    %45 = vector.shape_cast %44 : vector<3xf32> to vector<1x3xf32>
    %cst_29 = arith.constant 8.000000e+00 : f32
    %46 = vector.broadcast %cst_29 : f32 to vector<1x3xf32>
    %47 = arith.divf %45, %46 : vector<1x3xf32>
    %48 = vector.broadcast %47 : vector<1x3xf32> to vector<8x3xf32>
    %49 = arith.subf %4, %48 : vector<8x3xf32>
    %50 = arith.mulf %49, %49 : vector<8x3xf32>
    %cst_30 = arith.constant dense<0.000000e+00> : vector<3xf32>
    %51 = vector.multi_reduction <add>, %50, %cst_30 [0] : vector<8x3xf32> to vector<3xf32>
    %52 = vector.shape_cast %51 : vector<3xf32> to vector<1x3xf32>
    %cst_31 = arith.constant 0.142857149 : f32
    %53 = vector.broadcast %cst_31 : f32 to vector<1x3xf32>
    %54 = arith.mulf %52, %53 : vector<1x3xf32>
    %55 = vector.broadcast %47 : vector<1x3xf32> to vector<8x3xf32>
    %56 = arith.subf %4, %55 : vector<8x3xf32>
    %57 = math.sqrt %54 : vector<1x3xf32>
    %cst_32 = arith.constant 9.99999993E-9 : f32
    %58 = vector.broadcast %cst_32 : f32 to vector<1x3xf32>
    %59 = arith.addf %57, %58 : vector<1x3xf32>
    %60 = tpu.reciprocal %59 {approx = true} : vector<1x3xf32> -> vector<1x3xf32>
    %61 = vector.broadcast %60 : vector<1x3xf32> to vector<8x3xf32>
    %62 = arith.mulf %56, %61 : vector<8x3xf32>
    %cst_33 = arith.constant 1.000000e+00 : f32
    %63 = vector.broadcast %cst_33 : f32 to vector<8x1xf32>
    %64 = tpu.concatenate %43, %62, %4, %63, %3 in 1 : vector<8x32xf32>, vector<8x3xf32>, vector<8x3xf32>, vector<8x1xf32>, vector<8x32xf32> -> vector<8x71xf32>
    %cst_34 = arith.constant dense<0.000000e+00> : vector<8x464xf32>
    %65 = tpu.matmul %64, %6, %cst_34 {dimension_numbers = #tpu.dot_dimension_numbers<[1], [0], [0], [1], [0, 0, 1, 1], [], []>} : vector<8x71xf32>, vector<71x464xf32>, vector<8x464xf32> -> vector<8x464xf32>
    %cst_35 = arith.constant dense<0.000000e+00> : vector<56x464xf32>
    %66 = tpu.matmul %14, %65, %cst_35 {dimension_numbers = #tpu.dot_dimension_numbers<[1], [0], [0], [1], [0, 0, 1, 1], [], []>} : vector<56x8xf32>, vector<8x464xf32>, vector<56x464xf32> -> vector<56x464xf32>
    %cst_36 = arith.constant dense<0.000000e+00> : vector<56x464xf32>
    %67 = tpu.matmul %15, %65, %cst_36 {dimension_numbers = #tpu.dot_dimension_numbers<[1], [0], [0], [1], [0, 0, 1, 1], [], []>} : vector<56x8xf32>, vector<8x464xf32>, vector<56x464xf32> -> vector<56x464xf32>
    %68 = vector.extract_strided_slice %66 {offsets = [0, 0], sizes = [56, 64], strides = [1, 1]} : vector<56x464xf32> to vector<56x64xf32>
    %69 = vector.extract_strided_slice %67 {offsets = [0, 64], sizes = [56, 64], strides = [1, 1]} : vector<56x464xf32> to vector<56x64xf32>
    %70 = vector.extract_strided_slice %67 {offsets = [0, 128], sizes = [56, 64], strides = [1, 1]} : vector<56x464xf32> to vector<56x64xf32>
    %71 = vector.extract_strided_slice %66 {offsets = [0, 384], sizes = [56, 3], strides = [1, 1]} : vector<56x464xf32> to vector<56x3xf32>
    %72 = vector.extract_strided_slice %67 {offsets = [0, 384], sizes = [56, 3], strides = [1, 1]} : vector<56x464xf32> to vector<56x3xf32>
    %73 = arith.subf %71, %72 : vector<56x3xf32>
    %74 = arith.mulf %73, %73 : vector<56x3xf32>
    %cst_37 = arith.constant dense<0.000000e+00> : vector<56xf32>
    %75 = vector.multi_reduction <add>, %74, %cst_37 [1] : vector<56x3xf32> to vector<56xf32>
    %76 = vector.shape_cast %75 : vector<56xf32> to vector<56x1xf32>
    %77 = vector.extract_strided_slice %66 {offsets = [0, 424], sizes = [56, 32], strides = [1, 1]} : vector<56x464xf32> to vector<56x32xf32>
    %78 = vector.extract_strided_slice %67 {offsets = [0, 424], sizes = [56, 32], strides = [1, 1]} : vector<56x464xf32> to vector<56x32xf32>
    %79 = arith.subf %77, %78 : vector<56x32xf32>
    %80 = vector.extract_strided_slice %66 {offsets = [0, 456], sizes = [56, 6], strides = [1, 1]} : vector<56x464xf32> to vector<56x6xf32>
    %81 = vector.extract_strided_slice %67 {offsets = [0, 456], sizes = [56, 6], strides = [1, 1]} : vector<56x464xf32> to vector<56x6xf32>
    %82 = arith.subf %80, %81 : vector<56x6xf32>
    %83 = vector.extract_strided_slice %65 {offsets = [0, 456], sizes = [8, 6], strides = [1, 1]} : vector<8x464xf32> to vector<8x6xf32>
    %cst_38 = arith.constant dense<0.000000e+00> : vector<56x6xf32>
    %84 = tpu.matmul %16, %83, %cst_38 {dimension_numbers = #tpu.dot_dimension_numbers<[1], [0], [0], [1], [0, 0, 1, 1], [], []>} : vector<56x8xf32>, vector<8x6xf32>, vector<56x6xf32> -> vector<56x6xf32>
    %85 = vector.extract_strided_slice %12 {offsets = [4, 0], sizes = [1, 32], strides = [1, 1]} : vector<24x128xf32> to vector<1x32xf32>
    %86 = vector.broadcast %76 : vector<56x1xf32> to vector<56x32xf32>
    %87 = vector.broadcast %85 : vector<1x32xf32> to vector<56x32xf32>
    %88 = arith.mulf %86, %87 : vector<56x32xf32>
    %89 = vector.extract_strided_slice %12 {offsets = [5, 0], sizes = [1, 32], strides = [1, 1]} : vector<24x128xf32> to vector<1x32xf32>
    %90 = vector.broadcast %89 : vector<1x32xf32> to vector<56x32xf32>
    %91 = arith.addf %88, %90 : vector<56x32xf32>
    %92 = arith.negf %91 : vector<56x32xf32>
    %93 = math.exp %92 : vector<56x32xf32>
    %cst_39 = arith.constant 1.000000e+00 : f32
    %94 = vector.broadcast %cst_39 : f32 to vector<56x32xf32>
    %95 = arith.addf %94, %93 : vector<56x32xf32>
    %96 = arith.divf %94, %95 : vector<56x32xf32>
    %97 = arith.mulf %91, %96 : vector<56x32xf32>
    %98 = vector.extract_strided_slice %8 {offsets = [0, 168], sizes = [32, 4], strides = [1, 1]} : vector<32x236xf32> to vector<32x4xf32>
    %cst_40 = arith.constant dense<0.000000e+00> : vector<56x4xf32>
    %99 = tpu.matmul %97, %98, %cst_40 {dimension_numbers = #tpu.dot_dimension_numbers<[1], [0], [0], [1], [0, 0, 1, 1], [], []>} : vector<56x32xf32>, vector<32x4xf32>, vector<56x4xf32> -> vector<56x4xf32>
    %100 = vector.extract_strided_slice %12 {offsets = [6, 0], sizes = [1, 4], strides = [1, 1]} : vector<24x128xf32> to vector<1x4xf32>
    %101 = vector.broadcast %100 : vector<1x4xf32> to vector<56x4xf32>
    %102 = arith.addf %99, %101 : vector<56x4xf32>
    %103 = vector.extract_strided_slice %66 {offsets = [0, 192], sizes = [56, 32], strides = [1, 1]} : vector<56x464xf32> to vector<56x32xf32>
    %104 = vector.extract_strided_slice %67 {offsets = [0, 224], sizes = [56, 32], strides = [1, 1]} : vector<56x464xf32> to vector<56x32xf32>
    %105 = arith.addf %103, %104 : vector<56x32xf32>
    %106 = vector.extract_strided_slice %12 {offsets = [7, 0], sizes = [1, 32], strides = [1, 1]} : vector<24x128xf32> to vector<1x32xf32>
    %107 = vector.broadcast %76 : vector<56x1xf32> to vector<56x32xf32>
    %108 = vector.broadcast %106 : vector<1x32xf32> to vector<56x32xf32>
    %109 = arith.mulf %107, %108 : vector<56x32xf32>
    %110 = arith.addf %105, %109 : vector<56x32xf32>
    %111 = vector.extract_strided_slice %66 {offsets = [0, 256], sizes = [56, 32], strides = [1, 1]} : vector<56x464xf32> to vector<56x32xf32>
    %112 = arith.addf %110, %111 : vector<56x32xf32>
    %113 = vector.extract_strided_slice %67 {offsets = [0, 288], sizes = [56, 32], strides = [1, 1]} : vector<56x464xf32> to vector<56x32xf32>
    %114 = arith.addf %112, %113 : vector<56x32xf32>
    %115 = arith.negf %114 : vector<56x32xf32>
    %116 = math.exp %115 : vector<56x32xf32>
    %cst_41 = arith.constant 1.000000e+00 : f32
    %117 = vector.broadcast %cst_41 : f32 to vector<56x32xf32>
    %118 = arith.addf %117, %116 : vector<56x32xf32>
    %119 = arith.divf %117, %118 : vector<56x32xf32>
    %120 = arith.mulf %114, %119 : vector<56x32xf32>
    %121 = vector.extract_strided_slice %8 {offsets = [0, 0], sizes = [32, 32], strides = [1, 1]} : vector<32x236xf32> to vector<32x32xf32>
    %cst_42 = arith.constant dense<0.000000e+00> : vector<56x32xf32>
    %122 = tpu.matmul %120, %121, %cst_42 {dimension_numbers = #tpu.dot_dimension_numbers<[1], [0], [0], [1], [0, 0, 1, 1], [], []>} : vector<56x32xf32>, vector<32x32xf32>, vector<56x32xf32> -> vector<56x32xf32>
    %123 = vector.extract_strided_slice %12 {offsets = [8, 0], sizes = [1, 32], strides = [1, 1]} : vector<24x128xf32> to vector<1x32xf32>
    %124 = vector.broadcast %123 : vector<1x32xf32> to vector<56x32xf32>
    %125 = arith.addf %122, %124 : vector<56x32xf32>
    %126 = vector.extract_strided_slice %8 {offsets = [0, 32], sizes = [32, 36], strides = [1, 1]} : vector<32x236xf32> to vector<32x36xf32>
    %cst_43 = arith.constant dense<0.000000e+00> : vector<56x36xf32>
    %127 = tpu.matmul %125, %126, %cst_43 {dimension_numbers = #tpu.dot_dimension_numbers<[1], [0], [0], [1], [0, 0, 1, 1], [], []>} : vector<56x32xf32>, vector<32x36xf32>, vector<56x36xf32> -> vector<56x36xf32>
    %128 = vector.extract_strided_slice %127 {offsets = [0, 0], sizes = [56, 32], strides = [1, 1]} : vector<56x36xf32> to vector<56x32xf32>
    %129 = vector.extract_strided_slice %127 {offsets = [0, 32], sizes = [56, 4], strides = [1, 1]} : vector<56x36xf32> to vector<56x4xf32>
    %130 = vector.extract_strided_slice %12 {offsets = [9, 0], sizes = [1, 4], strides = [1, 1]} : vector<24x128xf32> to vector<1x4xf32>
    %131 = vector.broadcast %130 : vector<1x4xf32> to vector<56x4xf32>
    %132 = arith.addf %129, %131 : vector<56x4xf32>
    %133 = arith.mulf %68, %69 : vector<56x64xf32>
    %cst_44 = arith.constant dense<0.000000e+00> : vector<56x4xf32>
    %134 = tpu.matmul %133, %18, %cst_44 {dimension_numbers = #tpu.dot_dimension_numbers<[1], [0], [0], [1], [0, 0, 1, 1], [], []>} : vector<56x64xf32>, vector<64x4xf32>, vector<56x4xf32> -> vector<56x4xf32>
    %cst_45 = arith.constant 2.500000e-01 : f32
    %135 = vector.broadcast %cst_45 : f32 to vector<56x4xf32>
    %136 = arith.mulf %134, %135 : vector<56x4xf32>
    %137 = arith.addf %136, %102 : vector<56x4xf32>
    %138 = arith.addf %137, %132 : vector<56x4xf32>
    %cst_46 = arith.constant dense<0xFF800000> : vector<4xf32>
    %139 = vector.multi_reduction <maximumf>, %138, %cst_46 [0] : vector<56x4xf32> to vector<4xf32>
    %140 = vector.shape_cast %139 : vector<4xf32> to vector<1x4xf32>
    %141 = vector.broadcast %140 : vector<1x4xf32> to vector<56x4xf32>
    %142 = arith.subf %138, %141 : vector<56x4xf32>
    %143 = math.exp %142 : vector<56x4xf32>
    %cst_47 = arith.constant dense<0.000000e+00> : vector<8x4xf32>
    %144 = tpu.matmul %17, %143, %cst_47 {dimension_numbers = #tpu.dot_dimension_numbers<[1], [0], [0], [1], [0, 0, 1, 1], [], []>} : vector<8x56xf32>, vector<56x4xf32>, vector<8x4xf32> -> vector<8x4xf32>
    %cst_48 = arith.constant dense<0.000000e+00> : vector<56x4xf32>
    %145 = tpu.matmul %14, %144, %cst_48 {dimension_numbers = #tpu.dot_dimension_numbers<[1], [0], [0], [1], [0, 0, 1, 1], [], []>} : vector<56x8xf32>, vector<8x4xf32>, vector<56x4xf32> -> vector<56x4xf32>
    %cst_49 = arith.constant 9.99999993E-9 : f32
    %146 = vector.broadcast %cst_49 : f32 to vector<56x4xf32>
    %147 = arith.addf %145, %146 : vector<56x4xf32>
    %148 = tpu.reciprocal %147 {approx = true} : vector<56x4xf32> -> vector<56x4xf32>
    %149 = arith.mulf %143, %148 : vector<56x4xf32>
    %cst_50 = arith.constant dense<0.000000e+00> : vector<56xf32>
    %150 = vector.multi_reduction <add>, %149, %cst_50 [1] : vector<56x4xf32> to vector<56xf32>
    %151 = vector.shape_cast %150 : vector<56xf32> to vector<56x1xf32>
    %cst_51 = arith.constant 2.500000e-01 : f32
    %152 = vector.broadcast %cst_51 : f32 to vector<56x1xf32>
    %153 = arith.mulf %151, %152 : vector<56x1xf32>
    %154 = vector.extract_strided_slice %12 {offsets = [10, 0], sizes = [1, 32], strides = [1, 1]} : vector<24x128xf32> to vector<1x32xf32>
    %155 = vector.broadcast %153 : vector<56x1xf32> to vector<56x32xf32>
    %156 = vector.broadcast %154 : vector<1x32xf32> to vector<56x32xf32>
    %157 = arith.mulf %155, %156 : vector<56x32xf32>
    %158 = arith.addf %128, %157 : vector<56x32xf32>
    %159 = arith.addf %158, %79 : vector<56x32xf32>
    %160 = vector.extract_strided_slice %66 {offsets = [0, 320], sizes = [56, 32], strides = [1, 1]} : vector<56x464xf32> to vector<56x32xf32>
    %161 = arith.addf %159, %160 : vector<56x32xf32>
    %162 = vector.extract_strided_slice %67 {offsets = [0, 352], sizes = [56, 32], strides = [1, 1]} : vector<56x464xf32> to vector<56x32xf32>
    %163 = arith.addf %161, %162 : vector<56x32xf32>
    %164 = arith.negf %163 : vector<56x32xf32>
    %165 = math.exp %164 : vector<56x32xf32>
    %cst_52 = arith.constant 1.000000e+00 : f32
    %166 = vector.broadcast %cst_52 : f32 to vector<56x32xf32>
    %167 = arith.addf %166, %165 : vector<56x32xf32>
    %168 = arith.divf %166, %167 : vector<56x32xf32>
    %169 = arith.mulf %163, %168 : vector<56x32xf32>
    %170 = vector.extract_strided_slice %8 {offsets = [0, 68], sizes = [32, 32], strides = [1, 1]} : vector<32x236xf32> to vector<32x32xf32>
    %cst_53 = arith.constant dense<0.000000e+00> : vector<56x32xf32>
    %171 = tpu.matmul %169, %170, %cst_53 {dimension_numbers = #tpu.dot_dimension_numbers<[1], [0], [0], [1], [0, 0, 1, 1], [], []>} : vector<56x32xf32>, vector<32x32xf32>, vector<56x32xf32> -> vector<56x32xf32>
    %172 = vector.extract_strided_slice %12 {offsets = [11, 0], sizes = [1, 32], strides = [1, 1]} : vector<24x128xf32> to vector<1x32xf32>
    %173 = vector.broadcast %172 : vector<1x32xf32> to vector<56x32xf32>
    %174 = arith.addf %171, %173 : vector<56x32xf32>
    %175 = vector.extract_strided_slice %8 {offsets = [0, 100], sizes = [32, 68], strides = [1, 1]} : vector<32x236xf32> to vector<32x68xf32>
    %cst_54 = arith.constant dense<0.000000e+00> : vector<56x68xf32>
    %176 = tpu.matmul %174, %175, %cst_54 {dimension_numbers = #tpu.dot_dimension_numbers<[1], [0], [0], [1], [0, 0, 1, 1], [], []>} : vector<56x32xf32>, vector<32x68xf32>, vector<56x68xf32> -> vector<56x68xf32>
    %177 = vector.extract_strided_slice %12 {offsets = [12, 0], sizes = [1, 68], strides = [1, 1]} : vector<24x128xf32> to vector<1x68xf32>
    %178 = vector.broadcast %177 : vector<1x68xf32> to vector<56x68xf32>
    %179 = arith.addf %176, %178 : vector<56x68xf32>
    %180 = vector.extract_strided_slice %179 {offsets = [0, 64], sizes = [56, 4], strides = [1, 1]} : vector<56x68xf32> to vector<56x4xf32>
    %181 = arith.negf %180 : vector<56x4xf32>
    %182 = math.exp %181 : vector<56x4xf32>
    %cst_55 = arith.constant 1.000000e+00 : f32
    %183 = vector.broadcast %cst_55 : f32 to vector<56x4xf32>
    %184 = arith.addf %183, %182 : vector<56x4xf32>
    %185 = arith.divf %183, %184 : vector<56x4xf32>
    %186 = vector.extract_strided_slice %179 {offsets = [0, 0], sizes = [56, 64], strides = [1, 1]} : vector<56x68xf32> to vector<56x64xf32>
    %187 = arith.negf %186 : vector<56x64xf32>
    %188 = math.exp %187 : vector<56x64xf32>
    %cst_56 = arith.constant 1.000000e+00 : f32
    %189 = vector.broadcast %cst_56 : f32 to vector<56x64xf32>
    %190 = arith.addf %189, %188 : vector<56x64xf32>
    %191 = arith.divf %189, %190 : vector<56x64xf32>
    %192 = arith.mulf %186, %191 : vector<56x64xf32>
    %193 = vector.extract_strided_slice %10 {offsets = [0, 64], sizes = [64, 8], strides = [1, 1]} : vector<64x72xf32> to vector<64x8xf32>
    %cst_57 = arith.constant dense<0.000000e+00> : vector<56x8xf32>
    %194 = tpu.matmul %192, %193, %cst_57 {dimension_numbers = #tpu.dot_dimension_numbers<[1], [0], [0], [1], [0, 0, 1, 1], [], []>} : vector<56x64xf32>, vector<64x8xf32>, vector<56x8xf32> -> vector<56x8xf32>
    %195 = vector.extract_strided_slice %12 {offsets = [13, 0], sizes = [1, 8], strides = [1, 1]} : vector<24x128xf32> to vector<1x8xf32>
    %196 = vector.broadcast %195 : vector<1x8xf32> to vector<56x8xf32>
    %197 = arith.addf %194, %196 : vector<56x8xf32>
    %198 = vector.extract_strided_slice %197 {offsets = [0, 0], sizes = [56, 4], strides = [1, 1]} : vector<56x8xf32> to vector<56x4xf32>
    %199 = vector.extract_strided_slice %197 {offsets = [0, 4], sizes = [56, 4], strides = [1, 1]} : vector<56x8xf32> to vector<56x4xf32>
    %200 = arith.mulf %185, %198 : vector<56x4xf32>
    %201 = vector.extract_strided_slice %12 {offsets = [14, 0], sizes = [1, 4], strides = [1, 1]} : vector<24x128xf32> to vector<1x4xf32>
    %202 = vector.broadcast %201 : vector<1x4xf32> to vector<56x4xf32>
    %203 = arith.mulf %200, %202 : vector<56x4xf32>
    %cst_58 = arith.constant dense<0.000000e+00> : vector<56xf32>
    %204 = vector.multi_reduction <add>, %203, %cst_58 [1] : vector<56x4xf32> to vector<56xf32>
    %205 = vector.shape_cast %204 : vector<56xf32> to vector<56x1xf32>
    %cst_59 = arith.constant 0.899999976 : f32
    %206 = vector.broadcast %cst_59 : f32 to vector<56x3xf32>
    %207 = arith.mulf %206, %73 : vector<56x3xf32>
    %cst_60 = arith.constant 1.000000e-01 : f32
    %208 = vector.broadcast %cst_60 : f32 to vector<56x3xf32>
    %209 = arith.mulf %208, %72 : vector<56x3xf32>
    %210 = arith.addf %207, %209 : vector<56x3xf32>
    %211 = vector.broadcast %205 : vector<56x1xf32> to vector<56x3xf32>
    %212 = arith.mulf %211, %210 : vector<56x3xf32>
    %cst_61 = arith.constant 0.142857149 : f32
    %213 = vector.broadcast %cst_61 : f32 to vector<56x3xf32>
    %214 = arith.mulf %212, %213 : vector<56x3xf32>
    %215 = vector.extract_strided_slice %82 {offsets = [0, 0], sizes = [56, 3], strides = [1, 1]} : vector<56x6xf32> to vector<56x3xf32>
    %216 = vector.extract_strided_slice %84 {offsets = [0, 3], sizes = [56, 3], strides = [1, 1]} : vector<56x6xf32> to vector<56x3xf32>
    %217 = arith.mulf %215, %216 : vector<56x3xf32>
    %218 = vector.extract_strided_slice %82 {offsets = [0, 3], sizes = [56, 3], strides = [1, 1]} : vector<56x6xf32> to vector<56x3xf32>
    %219 = vector.extract_strided_slice %84 {offsets = [0, 0], sizes = [56, 3], strides = [1, 1]} : vector<56x6xf32> to vector<56x3xf32>
    %220 = arith.mulf %218, %219 : vector<56x3xf32>
    %221 = arith.subf %217, %220 : vector<56x3xf32>
    %cst_62 = arith.constant dense<0.000000e+00> : vector<56xf32>
    %222 = vector.multi_reduction <add>, %199, %cst_62 [1] : vector<56x4xf32> to vector<56xf32>
    %223 = vector.shape_cast %222 : vector<56xf32> to vector<56x1xf32>
    %224 = vector.broadcast %223 : vector<56x1xf32> to vector<56x3xf32>
    %225 = arith.mulf %224, %221 : vector<56x3xf32>
    %cst_63 = arith.constant 0.142857149 : f32
    %226 = vector.broadcast %cst_63 : f32 to vector<56x3xf32>
    %227 = arith.mulf %225, %226 : vector<56x3xf32>
    %cst_64 = arith.constant dense<0.000000e+00> : vector<56x64xf32>
    %228 = tpu.matmul %149, %19, %cst_64 {dimension_numbers = #tpu.dot_dimension_numbers<[1], [0], [0], [1], [0, 0, 1, 1], [], []>} : vector<56x4xf32>, vector<4x64xf32>, vector<56x64xf32> -> vector<56x64xf32>
    %229 = arith.mulf %228, %70 : vector<56x64xf32>
    %230 = arith.addf %214, %227 : vector<56x3xf32>
    %231 = tpu.concatenate %229, %230 in 1 : vector<56x64xf32>, vector<56x3xf32> -> vector<56x67xf32>
    %cst_65 = arith.constant dense<0.000000e+00> : vector<8x67xf32>
    %232 = tpu.matmul %17, %231, %cst_65 {dimension_numbers = #tpu.dot_dimension_numbers<[1], [0], [0], [1], [0, 0, 1, 1], [], []>} : vector<8x56xf32>, vector<56x67xf32>, vector<8x67xf32> -> vector<8x67xf32>
    %233 = vector.extract_strided_slice %232 {offsets = [0, 0], sizes = [8, 64], strides = [1, 1]} : vector<8x67xf32> to vector<8x64xf32>
    %234 = vector.extract_strided_slice %232 {offsets = [0, 64], sizes = [8, 3], strides = [1, 1]} : vector<8x67xf32> to vector<8x3xf32>
    %235 = vector.extract_strided_slice %10 {offsets = [0, 0], sizes = [64, 32], strides = [1, 1]} : vector<64x72xf32> to vector<64x32xf32>
    %cst_66 = arith.constant dense<0.000000e+00> : vector<8x32xf32>
    %236 = tpu.matmul %233, %235, %cst_66 {dimension_numbers = #tpu.dot_dimension_numbers<[1], [0], [0], [1], [0, 0, 1, 1], [], []>} : vector<8x64xf32>, vector<64x32xf32>, vector<8x32xf32> -> vector<8x32xf32>
    %237 = vector.extract_strided_slice %12 {offsets = [15, 0], sizes = [1, 32], strides = [1, 1]} : vector<24x128xf32> to vector<1x32xf32>
    %238 = vector.broadcast %237 : vector<1x32xf32> to vector<8x32xf32>
    %239 = arith.addf %236, %238 : vector<8x32xf32>
    %240 = vector.extract_strided_slice %65 {offsets = [0, 392], sizes = [8, 32], strides = [1, 1]} : vector<8x464xf32> to vector<8x32xf32>
    %241 = arith.addf %240, %239 : vector<8x32xf32>
    %242 = arith.addf %4, %234 : vector<8x3xf32>
    %243 = vector.extract_strided_slice %12 {offsets = [3, 0], sizes = [1, 1], strides = [1, 1]} : vector<24x128xf32> to vector<1x1xf32>
    %244 = vector.extract_strided_slice %12 {offsets = [2, 0], sizes = [1, 32], strides = [1, 1]} : vector<24x128xf32> to vector<1x32xf32>
    %cst_67 = arith.constant dense<0.000000e+00> : vector<8xf32>
    %245 = vector.multi_reduction <add>, %241, %cst_67 [1] : vector<8x32xf32> to vector<8xf32>
    %246 = vector.shape_cast %245 : vector<8xf32> to vector<8x1xf32>
    %247 = vector.broadcast %243 : vector<1x1xf32> to vector<8x1xf32>
    %248 = arith.mulf %246, %247 : vector<8x1xf32>
    %249 = vector.broadcast %248 : vector<8x1xf32> to vector<8x32xf32>
    %250 = arith.subf %241, %249 : vector<8x32xf32>
    %251 = arith.mulf %250, %250 : vector<8x32xf32>
    %252 = vector.broadcast %244 : vector<1x32xf32> to vector<8x32xf32>
    %253 = arith.mulf %251, %252 : vector<8x32xf32>
    %cst_68 = arith.constant dense<0.000000e+00> : vector<8xf32>
    %254 = vector.multi_reduction <add>, %253, %cst_68 [1] : vector<8x32xf32> to vector<8xf32>
    %255 = vector.shape_cast %254 : vector<8xf32> to vector<8x1xf32>
    %256 = vector.broadcast %243 : vector<1x1xf32> to vector<8x1xf32>
    %257 = arith.mulf %255, %256 : vector<8x1xf32>
    %cst_69 = arith.constant 9.99999974E-6 : f32
    %258 = vector.broadcast %cst_69 : f32 to vector<8x1xf32>
    %259 = arith.addf %257, %258 : vector<8x1xf32>
    %260 = math.rsqrt %259 : vector<8x1xf32>
    %261 = vector.broadcast %260 : vector<8x1xf32> to vector<8x32xf32>
    %262 = arith.mulf %250, %261 : vector<8x32xf32>
    %263 = vector.extract_strided_slice %12 {offsets = [16, 0], sizes = [1, 32], strides = [1, 1]} : vector<24x128xf32> to vector<1x32xf32>
    %264 = vector.broadcast %263 : vector<1x32xf32> to vector<8x32xf32>
    %265 = arith.mulf %262, %264 : vector<8x32xf32>
    %266 = vector.extract_strided_slice %12 {offsets = [17, 0], sizes = [1, 32], strides = [1, 1]} : vector<24x128xf32> to vector<1x32xf32>
    %267 = vector.broadcast %266 : vector<1x32xf32> to vector<8x32xf32>
    %268 = arith.addf %265, %267 : vector<8x32xf32>
    %269 = vector.extract_strided_slice %8 {offsets = [0, 172], sizes = [32, 64], strides = [1, 1]} : vector<32x236xf32> to vector<32x64xf32>
    %cst_70 = arith.constant dense<0.000000e+00> : vector<8x64xf32>
    %270 = tpu.matmul %268, %269, %cst_70 {dimension_numbers = #tpu.dot_dimension_numbers<[1], [0], [0], [1], [0, 0, 1, 1], [], []>} : vector<8x32xf32>, vector<32x64xf32>, vector<8x64xf32> -> vector<8x64xf32>
    %271 = vector.extract_strided_slice %12 {offsets = [18, 0], sizes = [1, 64], strides = [1, 1]} : vector<24x128xf32> to vector<1x64xf32>
    %272 = vector.broadcast %271 : vector<1x64xf32> to vector<8x64xf32>
    %273 = arith.addf %270, %272 : vector<8x64xf32>
    %274 = arith.negf %273 : vector<8x64xf32>
    %275 = math.exp %274 : vector<8x64xf32>
    %cst_71 = arith.constant 1.000000e+00 : f32
    %276 = vector.broadcast %cst_71 : f32 to vector<8x64xf32>
    %277 = arith.addf %276, %275 : vector<8x64xf32>
    %278 = arith.divf %276, %277 : vector<8x64xf32>
    %279 = arith.mulf %273, %278 : vector<8x64xf32>
    %280 = vector.extract_strided_slice %10 {offsets = [0, 32], sizes = [64, 32], strides = [1, 1]} : vector<64x72xf32> to vector<64x32xf32>
    %cst_72 = arith.constant dense<0.000000e+00> : vector<8x32xf32>
    %281 = tpu.matmul %279, %280, %cst_72 {dimension_numbers = #tpu.dot_dimension_numbers<[1], [0], [0], [1], [0, 0, 1, 1], [], []>} : vector<8x64xf32>, vector<64x32xf32>, vector<8x32xf32> -> vector<8x32xf32>
    %282 = vector.extract_strided_slice %12 {offsets = [19, 0], sizes = [1, 32], strides = [1, 1]} : vector<24x128xf32> to vector<1x32xf32>
    %283 = vector.broadcast %282 : vector<1x32xf32> to vector<8x32xf32>
    %284 = arith.addf %281, %283 : vector<8x32xf32>
    %285 = arith.addf %241, %284 : vector<8x32xf32>
    %c0_73 = arith.constant 0 : index
    %c0_74 = arith.constant 0 : index
    %286 = vector.load %arg15[%c0_73, %c0_74] : memref<8x32xf32, #tpu.memory_space<vmem>>, vector<8x32xf32>
    tpu.vector_store %arg15[%c0_73, %c0_74], %285 {strides = array<i32>} : memref<8x32xf32, #tpu.memory_space<vmem>>, vector<8x32xf32>,
    %c0_75 = arith.constant 0 : index
    %c0_76 = arith.constant 0 : index
    %287 = vector.load %arg16[%c0_75, %c0_76] : memref<8x3xf32, #tpu.memory_space<vmem>>, vector<8x3xf32>
    tpu.vector_store %arg16[%c0_75, %c0_76], %242 {strides = array<i32>} : memref<8x3xf32, #tpu.memory_space<vmem>>, vector<8x3xf32>,
    %c1_i32 = arith.constant 1 : i32
    %288 = arith.cmpi eq, %arg0, %c1_i32 : i32
    %289 = arith.extui %288 : i1 to i32
    %c0_i32_77 = arith.constant 0 : i32
    %290 = arith.cmpi ne, %289, %c0_i32_77 : i32
    scf.if %290 {
      %c0_78 = arith.constant 0 : index
      %c0_79 = arith.constant 0 : index
      %291 = vector.load %arg13[%c0_78, %c0_79] : memref<8x32xf32, #tpu.memory_space<vmem>>, vector<8x32xf32>
      tpu.vector_store %arg13[%c0_78, %c0_79], %285 {strides = array<i32>} : memref<8x32xf32, #tpu.memory_space<vmem>>, vector<8x32xf32>,
      %c0_80 = arith.constant 0 : index
      %c0_81 = arith.constant 0 : index
      %292 = vector.load %arg14[%c0_80, %c0_81] : memref<8x3xf32, #tpu.memory_space<vmem>>, vector<8x3xf32>
      tpu.vector_store %arg14[%c0_80, %c0_81], %242 {strides = array<i32>} : memref<8x3xf32, #tpu.memory_space<vmem>>, vector<8x3xf32>,
    } else {
    }
    return
  }
  func.func @transform_0(%arg0: i32) -> (i32, i32) {
    %c0_i32 = arith.constant 0 : i32
    %c0_i32_0 = arith.constant 0 : i32
    %c0_i32_1 = arith.constant 0 : i32
    return %c0_i32, %c0_i32_0 : i32, i32
  }
  func.func @transform_1(%arg0: i32) -> (i32, i32) {
    %c0_i32 = arith.constant 0 : i32
    %c0_i32_0 = arith.constant 0 : i32
    %c0_i32_1 = arith.constant 0 : i32
    return %c0_i32, %c0_i32_0 : i32, i32
  }
  func.func @transform_2(%arg0: i32) -> (i32, i32) {
    %c0_i32 = arith.constant 0 : i32
    %c0_i32_0 = arith.constant 0 : i32
    %c0_i32_1 = arith.constant 0 : i32
    return %c0_i32, %c0_i32_0 : i32, i32
  }
  func.func @transform_3(%arg0: i32) -> (i32, i32) {
    %c0_i32 = arith.constant 0 : i32
    %c0_i32_0 = arith.constant 0 : i32
    %c0_i32_1 = arith.constant 0 : i32
    return %c0_i32, %c0_i32_0 : i32, i32
  }
  func.func @transform_4(%arg0: i32) -> (i32, i32) {
    %c0_i32 = arith.constant 0 : i32
    %c0_i32_0 = arith.constant 0 : i32
    %c0_i32_1 = arith.constant 0 : i32
    return %c0_i32, %c0_i32_0 : i32, i32
  }
  func.func @transform_5(%arg0: i32) -> (i32, i32) {
    %c0_i32 = arith.constant 0 : i32
    %c0_i32_0 = arith.constant 0 : i32
    %c0_i32_1 = arith.constant 0 : i32
    return %c0_i32, %c0_i32_0 : i32, i32
  }
  func.func @transform_6(%arg0: i32) -> (i32, i32) {
    %c0_i32 = arith.constant 0 : i32
    %c0_i32_0 = arith.constant 0 : i32
    %c0_i32_1 = arith.constant 0 : i32
    return %c0_i32, %c0_i32_0 : i32, i32
  }
  func.func @transform_7(%arg0: i32) -> (i32, i32) {
    %c0_i32 = arith.constant 0 : i32
    %c0_i32_0 = arith.constant 0 : i32
    %c0_i32_1 = arith.constant 0 : i32
    return %c0_i32, %c0_i32_0 : i32, i32
  }
  func.func @transform_8(%arg0: i32) -> (i32, i32, i32) {
    %c0_i32 = arith.constant 0 : i32
    %c0_i32_0 = arith.constant 0 : i32
    %c0_i32_1 = arith.constant 0 : i32
    return %arg0, %c0_i32, %c0_i32_0 : i32, i32, i32
  }
  func.func @transform_9(%arg0: i32) -> (i32, i32, i32) {
    %c0_i32 = arith.constant 0 : i32
    %c0_i32_0 = arith.constant 0 : i32
    %c0_i32_1 = arith.constant 0 : i32
    return %arg0, %c0_i32, %c0_i32_0 : i32, i32, i32
  }
  func.func @transform_10(%arg0: i32) -> (i32, i32, i32) {
    %c0_i32 = arith.constant 0 : i32
    %c0_i32_0 = arith.constant 0 : i32
    %c0_i32_1 = arith.constant 0 : i32
    return %arg0, %c0_i32, %c0_i32_0 : i32, i32, i32
  }
  func.func @transform_11(%arg0: i32) -> (i32, i32, i32) {
    %c0_i32 = arith.constant 0 : i32
    %c0_i32_0 = arith.constant 0 : i32
    %c0_i32_1 = arith.constant 0 : i32
    return %arg0, %c0_i32, %c0_i32_0 : i32, i32, i32
  }
  func.func @transform_12(%arg0: i32) -> (i32, i32) {
    %c0_i32 = arith.constant 0 : i32
    %c0_i32_0 = arith.constant 0 : i32
    %c0_i32_1 = arith.constant 0 : i32
    return %c0_i32, %c0_i32_0 : i32, i32
  }
  func.func @transform_13(%arg0: i32) -> (i32, i32) {
    %c0_i32 = arith.constant 0 : i32
    %c0_i32_0 = arith.constant 0 : i32
    %c0_i32_1 = arith.constant 0 : i32
    return %c0_i32, %c0_i32_0 : i32, i32
  }
}

</mosaic_0001>

<bundles_post_ra>
// kernel: fwd.1
= control target key start
LH: loop header
LB: loop body
LE: loop exit
PB: predicated region body
PF: predicated region fallthrough
CT: control target
= control target key end

     0   :  { %19 = vsyncpa [#allocation5], 0  ;;  %s4227_s25 = smov 0   ;;  %s5588_s0 = inlined_call_operand.vmem [shape: f32[8,6], index: 0, kind: input, shape index: {}]   ;;  %s5589_s1 = inlined_call_operand.vmem [shape: f32[8,3], index: 1, kind: input, shape index: {}]   ;;  %s5590_s2 = inlined_call_operand.vmem [shape: f32[6,32], index: 2, kind: input, shape index: {}]   ;;  %s5591_s3 = inlined_call_operand.vmem [shape: f32[1,32], index: 3, kind: input, shape index: {}]   ;;  %s5592_s4 = inlined_call_operand.vmem [shape: f32[56,24], index: 4, kind: input, shape index: {}]   ;;  %s5593_s5 = inlined_call_operand.vmem [shape: f32[8,56], index: 5, kind: input, shape index: {}]   ;;  %s5594_s6 = inlined_call_operand.vmem [shape: f32[64,4], index: 6, kind: input, shape index: {}]   ;;  %s5595_s7 = inlined_call_operand.vmem [shape: f32[4,64], index: 7, kind: input, shape index: {}]   ;;  %s5596_s8 = inlined_call_operand.vmem [shape: f32[2,71,464], index: 8, kind: input, shape index: {}]   ;;  %s5597_s9 = inlined_call_operand.vmem [shape: f32[2,32,236], index: 9, kind: input, shape index: {}]   ;;  %s5598_s10 = inlined_call_operand.vmem [shape: f32[2,64,72], index: 10, kind: input, shape index: {}]   ;;  %s5599_s11 = inlined_call_operand.vmem [shape: f32[2,24,128], index: 11, kind: input, shape index: {}]   ;;  %s5600_s12 = inlined_call_operand.hbm [shape: f32[8,32], index: 12, kind: output, shape index: {0}]   ;;  %s5601_s13 = inlined_call_operand.vmem [shape: f32[8,3], index: 13, kind: output, shape index: {1}]  }
   0x1 LB: > { %5634 = sst [smem:[#allocation7_spill]] %s4134_s25  ;;  %s4233_s26 = sadd.s32 4294967295, %s4134_s25   ;;  %s4134_s25 = sphi %s4227_s25, %s25_s25  }
   0x2   : > { %p3568_p0 = scmp.ge.s32.totalorder %s4134_s25, 1  ;;  %p411_p1 = scmp.lt.s32.totalorder %s4134_s25, 3 }
   0x4   : > { %p412_p2 = pnand %p3568_p0, %p411_p1 }
   0x6   : > { %415 = sbr.rel (%p412_p2) target bundleno = 4876 (0x130c), region = 68 }
   0xb   : > { %p465_p3 = scmp.lt.s32.totalorder %s4233_s26, 1  ;;  %p3575_p4 = scmp.ne.s32.totalorder %s4233_s26, 0 }
   0xd   : > { %s466_s27 = scalar_select %p465_p3, %s4233_s26, 1 }
   0xf   : > { %s3756_s28 = smul.u32 288, %s466_s27  ;;  %s3752_s29 = sshll.u32 %s466_s27, 6 }
  0x10   : > { %s4242_s15 = scalar_lea.vmem %s5597_s9, %s3752_s29  ;;  %s4247_s18 = scalar_lea.vmem %s5598_s10, %s3752_s29 }
  0x11   : > { %s4252_s21 = scalar_lea.vmem %s5596_s8, %s3756_s28  ;;  %s3757_s22 = smul.u32 24, %s466_s27 }
  0x12   : > { %488 = sbr.rel (%p3575_p4) target bundleno = 154 (0x9a), region = 72 }
  0x13   : > { %s4257_s25 = scalar_lea.vmem %s5599_s11, %s3757_s22 }
  0x17   : > { %v490_v0 = vld [vmem:[%s5590_s2] sm:$0x3f]  ;;  %vm499_vm0 = vcmask 1045504   ;;  %vm495_vm1 = vcmask 48128   ;;  %vm526_vm2 = vcmask 23552   ;;  %vm523_vm3 = vcmask 261120  }
  0x18   : > { %v489_v1 = vld [vmem:[%s5588_s0] sm:$0xff]  ;;  %3576 = vmatpush.msk.msra.mxu0 %vm499_vm0, %v490_v0 }
  0x19   : > { %3577 = vmatmul.msk.f32.vlgmr.msra.gmra.mxu0 %vm495_vm1, %v489_v1  ;;  %v525_v2 = vld [vmem:[%s5589_s1] sm:$0xff] }
  0x1a   : > { %527 = vst.msk [vmem:[#allocation3] sm:$0xff] %vm526_vm2, %v525_v2  ;;  %v3793_v3 = vld [vmem:[%s5591_s3] ss:$0 sm:$0xff] }
  0x96   : > { %v520_v4 = vpop.f32.mrf.mxu0 }
  0x97   : > { %v521_v5 = vadd.f32 %v3793_v3, %v520_v4 }
  0x99   : > { %524 = vst.msk [vmem:[#allocation2] sm:$0xff] %vm523_vm3, %v521_v5 }
  0x9a PF: > { %vm602_vm4 = vcmask 261120   ;;  %s4136_s20 = smov 39   ;;  %v4137_v8 = vmov 8.0   ;;  %v529_v9 = vld [vmem:[#allocation3] sm:$0xff]  ;;  %vm636_vm5 = vcmask 23552   ;;  %v4138_v35 = vmov 32.0  }
  0x9b   : > { %3911 = vrcp.f32 %v4137_v8  ;;  %v637_v10 = vsel %vm636_vm5, %v529_v9, 0.0  ;;  %s4139_s22 = smov 32   ;;  %s4140_s23 = smov 35   ;;  %v562_v59 = vld [vmem:[%s4252_s21 + $0x100] sm:$0x7f]  ;;  %vm700_vm10 = vcmask 1046528  }
  0x9c   : > { %v638_v11 = vrot.slane %v637_v10, 4  ;;  %3578 = vmatpush.msk.msra.mxu3 %vm700_vm10, %v562_v59  ;;  %v558_v60 = vld [vmem:[%s4252_s21 + $0xe0] sm:$0xff]  ;;  %v563_v0 = vld [vmem:[%s4252_s21 + $0x108] sm:$0x7f]  ;;  %v564_v1 = vld [vmem:[%s4252_s21 + $0x110] sm:$0x7f] }
  0x9d   : > { %v554_v61 = vld [vmem:[%s4252_s21 + $0xc0] sm:$0xff]  ;;  %3580 = vmatpush.msk.msra.mxu1 %vm700_vm10, %v563_v0  ;;  %3582 = vmatpush.msk.msra.mxu2 %vm700_vm10, %v564_v1  ;;  %v559_v3 = vld [vmem:[%s4252_s21 + $0xe8] sm:$0xff]  ;;  %v560_v4 = vld [vmem:[%s4252_s21 + $0xf0] sm:$0xff]  ;;  %s4141_s28 = smov 120   ;;  %vm690_vm14 = vcmask 285696   ;;  %vm692_vm15 = vcmask 310272  }
  0x9e   : > { %v639_v13 = vadd.f32 %v638_v11, %v637_v10  ;;  %721 = vmatpush.msra.mxu3 %v558_v60  ;;  %v550_v62 = vld [vmem:[%s4252_s21 + $0xa0] sm:$0xff]  ;;  %v552_v10 = vld [vmem:[%s4252_s21 + $0xb0] sm:$0xff]  ;;  %vm694_vm0 = vcmask 318464   ;;  %vm696_vm1 = vcmask 580608   ;;  %v4373_v59 = vld [vmem:[%s5592_s4 + $0x18] sm:$0xff]  ;;  %vm793_vm2 = vcmask 64512  }
  0x9f   : > { %v546_v63 = vld [vmem:[%s4252_s21 + $0x80] sm:$0xff]  ;;  %741 = vmatpush.msra.mxu1 %v559_v3  ;;  %761 = vmatpush.msra.mxu2 %v560_v4  ;;  %v4382_v60 = vld [vmem:[%s5592_s4 + $0x28] sm:$0xff]  ;;  %s4142_s29 = smov 64   ;;  %s4143_s16 = smov 96  }
  0xa0   : > { %v4272_v6 = vld [vmem:[#allocation2] sm:$0xff]  ;;  %v640_v15 = vrot.slane %v639_v13, 2  ;;  %722 = vmatpush.msra.mxu3 %v554_v61  ;;  %s4144_s27 = smov 56   ;;  %s4146_s17 = smov 88  }
  0xa1   : > { %v603_v7 = vsel %vm602_vm4, %v4272_v6, 0.0  ;;  %686 = vrot.lane.b32.xlu2 %v4272_v6, %s4136_s20  ;;  %v3912_v12 = vpop.eup %3911  ;;  %v542_v2 = vld [vmem:[%s4252_s21 + $0x60] sm:$0xff]  ;;  %s4147_s20 = smov 60   ;;  %s4150_s24 = smov 69  }
  0xa2   : > { %604 = vadd.xlane.f32.xlu0 %v603_v7  ;;  %v645_v14 = vmul.f32 8.0, %v3912_v12  ;;  %v641_v17 = vadd.f32 %v640_v15, %v639_v13  ;;  %vm649_vm6 = vweird.f32 %v3912_v12  ;;  %723 = vmatpush.msra.mxu3 %v550_v62  ;;  %v538_v5 = vld [vmem:[%s4252_s21 + $0x40] sm:$0xff]  ;;  %v556_v7 = vld [vmem:[%s4252_s21 + $0xd0] sm:$0xff]  ;;  %v543_v15 = vld [vmem:[%s4252_s21 + $0x68] sm:$0xff]  ;;  %s4151_s30 = smov 125   ;;  %s4152_s14 = smov 124  }
  0xa3   : > { %762 = vmatpush.msra.mxu2 %v556_v7  ;;  %v534_v8 = vld [vmem:[%s4252_s21 + $0x20] sm:$0xff]  ;;  %v548_v13 = vld [vmem:[%s4252_s21 + $0x90] sm:$0xff]  ;;  %s4155_s19 = smov 84   ;;  %p3747_p5 = scmp.ne.s32.totalorder %s4233_s26, 1 }
  0xa4   : > { %v646_v16 = vsub.f32 1.0, %v645_v14  ;;  %v642_v19 = vrot.slane %v641_v17, 1  ;;  %724 = vmatpush.msra.mxu3 %v546_v63  ;;  %v530_v11 = vld [vmem:[%s4252_s21] sm:$0xff]  ;;  %v565_v14 = vld [vmem:[%s4252_s21 + $0x118] sm:$0x7f] }
  0xa5   : > { %763 = vmatpush.msra.mxu2 %v552_v10 }
  0xa6   : > { %v647_v18 = vmul.f32 %v3912_v12, %v646_v16  ;;  %v643_v21 = vadd.f32 %v642_v19, %v641_v17  ;;  %725 = vmatpush.msra.mxu3 %v542_v2  ;;  %v544_v16 = vld [vmem:[%s4252_s21 + $0x70] sm:$0xff]  ;;  %v561_v17 = vld [vmem:[%s4252_s21 + $0xf8] sm:$0xff] }
  0xa7   : > { %764 = vmatpush.msra.mxu2 %v548_v13  ;;  %v540_v19 = vld [vmem:[%s4252_s21 + $0x50] sm:$0xff] }
  0xa8   : > { %v648_v20 = vadd.f32 %v3912_v12, %v647_v18  ;;  %726 = vmatpush.msra.mxu3 %v538_v5  ;;  %v539_v18 = vld [vmem:[%s4252_s21 + $0x48] sm:$0xff] }
  0xa9   : > { %765 = vmatpush.msra.mxu2 %v544_v16 }
  0xaa   : > { %v650_v22 = vsel %vm649_vm6, %v3912_v12, %v648_v20  ;;  %727 = vmatpush.msra.mxu3 %v534_v8  ;;  %v547_v12 = vld [vmem:[%s4252_s21 + $0x88] sm:$0xff]  ;;  %v557_v20 = vld [vmem:[%s4252_s21 + $0xd8] sm:$0xff] }
  0xab   : > { %v651_v23 = vmul.f32 %v650_v22, %v643_v21  ;;  %766 = vmatpush.msra.mxu2 %v540_v19  ;;  %v535_v21 = vld [vmem:[%s4252_s21 + $0x28] sm:$0xff]  ;;  %v536_v22 = vld [vmem:[%s4252_s21 + $0x30] sm:$0xff] }
  0xac   : > { %728 = vmatpush.msra.mxu3 %v530_v11 }
  0xad   : > { %v652_v24 = vsub.f32 %v529_v9, %v651_v23  ;;  %v553_v23 = vld [vmem:[%s4252_s21 + $0xb8] sm:$0xff]  ;;  %767 = vmatpush.msra.mxu2 %v536_v22 }
  0xae   : > { %3584 = vmatpush.msk.msrb.mxu3 %vm700_vm10, %v565_v14 }
  0xaf   : > { %v653_v25 = vmul.f32 %v652_v24, %v652_v24 }
  0xb0   : > { %781 = vmatpush.msrb.mxu3 %v561_v17 }
  0xb1   : > { %v654_v26 = vsel %vm636_vm5, %v653_v25, 0.0  ;;  %v532_v25 = vld [vmem:[%s4252_s21 + $0x10] sm:$0xff] }
  0xb2   : > { %v655_v27 = vrot.slane %v654_v26, 4  ;;  %782 = vmatpush.msrb.mxu3 %v557_v20  ;;  %768 = vmatpush.msra.mxu2 %v532_v25 }
  0xb4   : > { %v656_v28 = vadd.f32 %v655_v27, %v654_v26  ;;  %783 = vmatpush.msrb.mxu3 %v553_v23  ;;  %v549_v26 = vld [vmem:[%s4252_s21 + $0x98] sm:$0xff] }
  0xb6   : > { %v657_v29 = vrot.slane %v656_v28, 2  ;;  %784 = vmatpush.msrb.mxu3 %v549_v26 }
  0xb8   : > { %v658_v30 = vadd.f32 %v657_v29, %v656_v28  ;;  %v545_v29 = vld [vmem:[%s4252_s21 + $0x78] sm:$0xff] }
  0xb9   : > { %785 = vmatpush.msrb.mxu3 %v545_v29 }
  0xba   : > { %v659_v31 = vrot.slane %v658_v30, 1 }
  0xbc   : > { %v660_v32 = vadd.f32 %v659_v31, %v658_v30  ;;  %v541_v30 = vld [vmem:[%s4252_s21 + $0x58] sm:$0xff] }
  0xbd   : > { %786 = vmatpush.msrb.mxu3 %v541_v30 }
  0xbe   : > { %v661_v33 = vmul.f32 0.14285715, %v660_v32  ;;  %v537_v32 = vld [vmem:[%s4252_s21 + $0x38] sm:$0xff] }
  0xbf   : > { %787 = vmatpush.msrb.mxu3 %v537_v32 }
  0xc0   : > { %3913 = vrsqrt.f32 %v661_v33  ;;  %vm669_vm7 = vcmp.eq.f32.partialorder %v661_v33, inf  ;;  %v672_v43 = vand.u32 2147483648, %v661_v33  ;;  %vm671_vm8 = vcmp.eq.f32.partialorder %v661_v33, 0.0 }
  0xc1   : > { %3915 = vrcp.f32 %v4138_v35  ;;  %v4338_v35 = vld [vmem:[%s5592_s4 + $0x10] sm:$0xff] }
  0xc6   : > { %v3914_v34 = vpop.eup %3913 }
  0xc7   : > { %v663_v36 = vmul.f32 %v3914_v34, %v661_v33  ;;  %v3916_v39 = vpop.eup %3915 }
  0xc8   : > { %v607_v42 = vmul.f32 32.0, %v3916_v39  ;;  %vm611_vm9 = vweird.f32 %v3916_v39 }
  0xc9   : > { %v664_v37 = vmul.f32 %v3914_v34, %v663_v36  ;;  %v4343_v36 = vld [vmem:[%s5592_s4] sm:$0xff] }
  0xca   : > { %v608_v46 = vsub.f32 1.0, %v607_v42  ;;  %967 = vrot.lane.b32.xlu2 %v4343_v36, %s4141_s28 }
  0xcb   : > { %v665_v38 = vmul.f32 0.5, %v664_v37 }
  0xcc   : > { %v609_v49 = vmul.f32 %v3916_v39, %v608_v46 }
  0xcd   : > { %v666_v40 = vsub.f32 1.5, %v665_v38 }
  0xce   : > { %v610_v50 = vadd.f32 %v3916_v39, %v609_v49 }
  0xcf   : > { %v667_v41 = vmul.f32 %v3914_v34, %v666_v40  ;;  %v4333_v34 = vld [vmem:[%s5592_s4 + $0x8] sm:$0xff]  ;;  %v4354_v40 = vld [vmem:[%s5592_s4 + $0x20] sm:$0xff] }
  0xd0   : > { %v4279_v53 = vsel %vm611_vm9, %v3916_v39, %v610_v50 }
  0xd1   : > { %v668_v44 = vmul.f32 %v667_v41, %v661_v33 }
  0xd2   : > { %973 = vrot.lane.b32.xlu2 %v4373_v59, %s4141_s28 }
  0xd3   : > { %v670_v45 = vsel %vm669_vm7, %v661_v33, %v668_v44  ;;  %v533_v33 = vld [vmem:[%s4252_s21 + $0x18] sm:$0xff]  ;;  %v4357_v44 = vld [vmem:[%s4257_s25] sm:$0xff] }
  0xd4   : > { %v673_v47 = vsel %vm671_vm8, %v672_v43, %v670_v45  ;;  %788 = vmatpush.msrb.mxu3 %v533_v33  ;;  %v632_v46 = vperm.slane %v4357_v44, 0 }
  0xd5   : > { %v674_v48 = vadd.f32 1e-08, %v673_v47 }
  0xd7   : > { %3917 = vrcp.f32 %v674_v48  ;;  %v634_v48 = vperm.slane %v4357_v44, 1 }
  0xda   : > { %977 = vrot.lane.b32.xlu2 %v4382_v60, %s4141_s28 }
  0xdd   : > { %v3918_v51 = vpop.eup %3917 }
  0xde   : > { %v676_v52 = vmul.f32 %v3918_v51, %v652_v24  ;;  %v531_v24 = vld [vmem:[%s4252_s21 + $0x8] sm:$0xff] }
  0xe0   : > { %678 = vrot.lane.b32.xlu1 %v676_v52, %s4139_s22 }
  0xe8   : > { %682 = vrot.lane.b32.xlu1 %v529_v9, %s4140_s23  ;;  %v551_v9 = vld [vmem:[%s4252_s21 + $0xa8] sm:$0xff]  ;;  %s4148_s23 = smov 28  }
  0xf0   : > { %971 = vrot.lane.b32.xlu1 %v4338_v35, %s4141_s28 }
  0xf8   : > { %975 = vrot.lane.b32.xlu1 %v4354_v40, %s4141_s28 }
 0x115   : > { %v605_v54 = vpop.xlane.xlu0 %604 }
 0x116   : > { %v613_v55 = vmul.f32 %v4279_v53, %v605_v54  ;;  %v687_v54 = vpop.permute.xlu2 %686 }
 0x118   : > { %v4284_v56 = vsub.f32 %v4272_v6, %v613_v55  ;;  %v555_v6 = vld [vmem:[%s4252_s21 + $0xc8] sm:$0xff]  ;;  %s4145_s21 = smov 112  }
 0x119   : > { %742 = vmatpush.msra.mxu1 %v555_v6 }
 0x11a   : > { %v615_v57 = vmul.f32 %v4284_v56, %v4284_v56 }
 0x11b   : > { %743 = vmatpush.msra.mxu1 %v551_v9 }
 0x11c   : > { %v616_v58 = vsel %vm602_vm4, %v615_v57, 0.0 }
 0x11d   : > { %617 = vadd.xlane.f32.xlu0 %v616_v58  ;;  %744 = vmatpush.msra.mxu1 %v547_v12 }
 0x11f   : > { %745 = vmatpush.msra.mxu1 %v543_v15 }
 0x121   : > { %746 = vmatpush.msra.mxu1 %v539_v18 }
 0x123   : > { %747 = vmatpush.msra.mxu1 %v535_v21 }
 0x124   : > { %v968_v1 = vpop.permute.xlu2 %967 }
 0x125   : > { %748 = vmatpush.msra.mxu1 %v531_v24 }
 0x12c   : > { %v974_v4 = vpop.permute.xlu2 %973 }
 0x131   : > { %969 = vrot.lane.b32.xlu0 %v4333_v34, %s4141_s28 }
 0x134   : > { %v978_v6 = vpop.permute.xlu2 %977 }
 0x152   : > { %v679_v42 = vpop.permute.xlu1 %678 }
 0x15a   : > { %v683_v52 = vpop.permute.xlu1 %682 }
 0x162   : > { %v972_v3 = vpop.permute.xlu1 %971 }
 0x16a   : > { %v976_v5 = vpop.permute.xlu1 %975 }
 0x190   : > { %v618_v27 = vpop.xlane.xlu0 %617 }
 0x191   : > { %v619_v28 = vmul.f32 %v618_v27, %v4279_v53 }
 0x193   : > { %v620_v31 = vadd.f32 1e-05, %v619_v28 }
 0x195   : > { %3919 = vrsqrt.f32 %v620_v31  ;;  %vm627_vm12 = vweird.f32 %v620_v31 }
 0x19b   : > { %v3920_v37 = vpop.eup %3919 }
 0x19c   : > { %v622_v38 = vmul.f32 %v3920_v37, %v620_v31  ;;  %vm628_vm11 = vweird.f32 %v3920_v37 }
 0x19d   : > { %vm629_vm13 = vmor %vm627_vm12, %vm628_vm11 }
 0x19e   : > { %v623_v39 = vmul.f32 %v3920_v37, %v622_v38 }
 0x1a0   : > { %v624_v41 = vmul.f32 0.5, %v623_v39 }
 0x1a2   : > { %v625_v43 = vsub.f32 1.5, %v624_v41 }
 0x1a3   : > { %v970_v2 = vpop.permute.xlu0 %969 }
 0x1a4   : > { %v626_v45 = vmul.f32 %v3920_v37, %v625_v43 }
 0x1a6   : > { %v630_v47 = vsel %vm629_vm13, %v3920_v37, %v626_v45 }
 0x1a7   : > { %v631_v49 = vmul.f32 %v630_v47, %v4284_v56  ;;  %v4368_v56 = vld [vmem:[%s5592_s4 + $0x30] sm:$0xff] }
 0x1a8   : > { %979 = vrot.lane.b32.xlu1 %v4368_v56, %s4141_s28 }
 0x1a9   : > { %v633_v50 = vmul.f32 %v632_v46, %v631_v49 }
 0x1ab   : > { %v635_v51 = vadd.f32 %v634_v48, %v633_v50 }
 0x1ad   : > { %v689_v53 = vsel %vm602_vm4, %v635_v51, %v679_v42 }
 0x1ae   : > { %v691_v55 = vsel %vm690_vm14, %v689_v53, %v683_v52 }
 0x1af   : > { %v693_v57 = vsel %vm692_vm15, %v691_v55, 1.0 }
 0x1b0   : > { %v695_v58 = vsel %vm694_vm0, %v693_v57, %v687_v54 }
 0x1b1   : > { %3579 = vmatmul.msk.f32.vlgmr.msra.gmra.mxu3 %vm696_vm1, %v695_v58  ;;  %3581 = vmatmul.msk.f32.vlgmr.msra.gmra.mxu1 %vm696_vm1, %v695_v58 }
 0x1b2   : > { %3583 = vmatmul.msk.f32.vlgmr.msra.gmra.mxu2 %vm696_vm1, %v695_v58 }
 0x1b9   : > { %3585 = vmatmul.msk.f32.vlgmr.msrb.gmra.mxu3 %vm696_vm1, %v695_v58 }
 0x21a   : > { %v980_v7 = vpop.permute.xlu1 %979 }
 0x22e   : > { %v750_v63 = vpop.f32.mrf.mxu1 }
 0x234   : > { %v730_v61 = vpop.f32.mrf.mxu3 }
 0x235   : > { %v770_v62 = vpop.f32.mrf.mxu2  ;;  %830 = vmatpush.msra.mxu0 %v730_v61  ;;  %3754 = vmatpush.msrb.mxu1 %v730_v61 }
 0x236   : > { %3755 = vmatpush.msrb.mxu2 %v770_v62  ;;  %3586 = vmatmul.msk.f32.vlgmr.msra.gmra.mxu0 %vm793_vm2, %v4343_v36 }
 0x237   : > { %3592 = vmatmul.msk.f32.vlgmr.msrb.gmra.mxu1 %vm793_vm2, %v4368_v56  ;;  %906 = vmatpush.msrb.mxu0 %v770_v62 }
 0x238   : > { %868 = vmatpush.msra.mxu1 %v750_v63  ;;  %3602 = vmatmul.msk.f32.vlgmr.msrb.gmra.mxu2 %vm793_vm2, %v4338_v35 }
 0x239   : > { %1086 = vmatpush.msra.mxu2 %v770_v62  ;;  %1010 = vmatpush.msra.mxu0 %v730_v61 }
 0x23a   : > { %1048 = vmatpush.msrb.mxu1 %v750_v63 }
 0x23c   : > { %v4392_v0 = vpop.f32.mrf.mxu3 }
 0x23d   : > { %5635 = vst [vmem:[#allocation8_spill] sm:$0xff] %v4392_v0  ;;  %944 = vmatpush.msra.mxu3 %v4392_v0 }
 0x23e   : > { %3587 = vmatmul.msk.f32.gmra.mxu0 %vm793_vm2, %v4333_v34  ;;  %3607 = vmatmul.msk.f32.vlgmr.msra.gmra.mxu3 %vm793_vm2, %v4343_v36 }
 0x23f   : > { %3593 = vmatmul.msk.f32.vlgmr.msra.gmra.mxu1 %vm793_vm2, %v4343_v36  ;;  %1124 = vmatpush.msrb.mxu3 %v4392_v0 }
 0x240   : > { %3603 = vmatmul.msk.f32.gmra.mxu2 %vm793_vm2, %v4373_v59 }
 0x246   : > { %3588 = vmatmul.msk.f32.gmra.mxu0 %vm793_vm2, %v4338_v35  ;;  %3608 = vmatmul.msk.f32.gmra.mxu3 %vm793_vm2, %v4333_v34 }
 0x247   : > { %3594 = vmatmul.msk.f32.gmra.mxu1 %vm793_vm2, %v4333_v34 }
 0x248   : > { %3604 = vmatmul.msk.f32.gmra.mxu2 %vm793_vm2, %v4354_v40 }
 0x24e   : > { %3589 = vmatmul.msk.f32.gmra.mxu0 %vm793_vm2, %v4373_v59  ;;  %3609 = vmatmul.msk.f32.gmra.mxu3 %vm793_vm2, %v4338_v35 }
 0x24f   : > { %3595 = vmatmul.msk.f32.gmra.mxu1 %vm793_vm2, %v4338_v35 }
 0x250   : > { %3605 = vmatmul.msk.f32.gmra.mxu2 %vm793_vm2, %v4382_v60 }
 0x256   : > { %3590 = vmatmul.msk.f32.gmra.mxu0 %vm793_vm2, %v4354_v40  ;;  %3610 = vmatmul.msk.f32.gmra.mxu3 %vm793_vm2, %v4373_v59 }
 0x257   : > { %3596 = vmatmul.msk.f32.gmra.mxu1 %vm793_vm2, %v4373_v59 }
 0x258   : > { %3606 = vmatmul.msk.f32.gmra.mxu2 %vm793_vm2, %v4368_v56 }
 0x25e   : > { %3591 = vmatmul.msk.f32.gmra.mxu0 %vm793_vm2, %v4382_v60  ;;  %3611 = vmatmul.msk.f32.gmra.mxu3 %vm793_vm2, %v4354_v40 }
 0x25f   : > { %3597 = vmatmul.msk.f32.gmra.mxu1 %vm793_vm2, %v4354_v40 }
 0x260   : > { %3628 = vmatmul.msk.f32.vlgmr.msra.gmra.mxu2 %vm793_vm2, %v968_v1 }
 0x266   : > { %3600 = vmatmul.msk.f32.vlgmr.msrb.gmra.mxu0 %vm793_vm2, %v4343_v36  ;;  %3612 = vmatmul.msk.f32.gmra.mxu3 %vm793_vm2, %v4382_v60 }
 0x267   : > { %3598 = vmatmul.msk.f32.gmra.mxu1 %vm793_vm2, %v4382_v60 }
 0x268   : > { %3629 = vmatmul.msk.f32.gmra.mxu2 %vm793_vm2, %v970_v2 }
 0x26e   : > { %3601 = vmatmul.msk.f32.gmra.mxu0 %vm793_vm2, %v4333_v34  ;;  %3613 = vmatmul.msk.f32.gmra.mxu3 %vm793_vm2, %v4368_v56 }
 0x26f   : > { %3599 = vmatmul.msk.f32.gmra.mxu1 %vm793_vm2, %v4368_v56 }
 0x270   : > { %3630 = vmatmul.msk.f32.gmra.mxu2 %vm793_vm2, %v972_v3 }
 0x276   : > { %3614 = vmatmul.msk.f32.vlgmr.msra.gmra.mxu0 %vm793_vm2, %v968_v1  ;;  %3635 = vmatmul.msk.f32.vlgmr.msrb.gmra.mxu3 %vm793_vm2, %v968_v1 }
 0x277   : > { %3621 = vmatmul.msk.f32.vlgmr.msrb.gmra.mxu1 %vm793_vm2, %v968_v1 }
 0x278   : > { %3631 = vmatmul.msk.f32.gmra.mxu2 %vm793_vm2, %v974_v4 }
 0x27e   : > { %3615 = vmatmul.msk.f32.gmra.mxu0 %vm793_vm2, %v970_v2  ;;  %3636 = vmatmul.msk.f32.gmra.mxu3 %vm793_vm2, %v970_v2 }
 0x27f   : > { %3622 = vmatmul.msk.f32.gmra.mxu1 %vm793_vm2, %v970_v2 }
 0x280   : > { %3632 = vmatmul.msk.f32.gmra.mxu2 %vm793_vm2, %v976_v5 }
 0x286   : > { %3637 = vmatmul.msk.f32.gmra.mxu3 %vm793_vm2, %v972_v3  ;;  %3616 = vmatmul.msk.f32.gmra.mxu0 %vm793_vm2, %v972_v3 }
 0x287   : > { %3623 = vmatmul.msk.f32.gmra.mxu1 %vm793_vm2, %v972_v3 }
 0x288   : > { %3633 = vmatmul.msk.f32.gmra.mxu2 %vm793_vm2, %v978_v6 }
 0x28e   : > { %3638 = vmatmul.msk.f32.gmra.mxu3 %vm793_vm2, %v974_v4  ;;  %3617 = vmatmul.msk.f32.gmra.mxu0 %vm793_vm2, %v974_v4 }
 0x28f   : > { %3624 = vmatmul.msk.f32.gmra.mxu1 %vm793_vm2, %v974_v4 }
 0x290   : > { %3634 = vmatmul.msk.f32.gmra.mxu2 %vm793_vm2, %v980_v7 }
 0x296   : > { %3639 = vmatmul.msk.f32.gmra.mxu3 %vm793_vm2, %v976_v5  ;;  %3618 = vmatmul.msk.f32.gmra.mxu0 %vm793_vm2, %v976_v5 }
 0x297   : > { %3625 = vmatmul.msk.f32.gmra.mxu1 %vm793_vm2, %v976_v5 }
 0x29e   : > { %3640 = vmatmul.msk.f32.gmra.mxu3 %vm793_vm2, %v978_v6  ;;  %3619 = vmatmul.msk.f32.gmra.mxu0 %vm793_vm2, %v978_v6 }
 0x29f   : > { %3626 = vmatmul.msk.f32.gmra.mxu1 %vm793_vm2, %v978_v6 }
 0x2a6   : > { %3641 = vmatmul.msk.f32.gmra.mxu3 %vm793_vm2, %v980_v7  ;;  %3620 = vmatmul.msk.f32.gmra.mxu0 %vm793_vm2, %v980_v7 }
 0x2a7   : > { %3627 = vmatmul.msk.f32.gmra.mxu1 %vm793_vm2, %v980_v7 }
 0x2b3   : > { %v4474_v8 = vpop.f32.mrf.mxu0 }
 0x2b4   : > { %v4476_v9 = vpop.f32.mrf.mxu1 }
 0x2bb   : > { %v914_v10 = vpop.f32.mrf.mxu2  ;;  %v4478_v11 = vpop.f32.mrf.mxu0 }
 0x2bc   : > { %v4480_v12 = vpop.f32.mrf.mxu1  ;;  %1573 = vrot.lane.b32.xlu2 %v914_v10, %s4142_s29 }
 0x2c1   : > { %v946_v13 = vpop.f32.mrf.mxu3 }
 0x2c3   : > { %v917_v14 = vpop.f32.mrf.mxu2  ;;  %v4483_v15 = vpop.f32.mrf.mxu0 }
 0x2c4   : > { %v4485_v16 = vpop.f32.mrf.mxu1 }
 0x2c9   : > { %v949_v17 = vpop.f32.mrf.mxu3 }
 0x2cb   : > { %v4487_v18 = vpop.f32.mrf.mxu2  ;;  %v4489_v19 = vpop.f32.mrf.mxu0 }
 0x2cc   : > { %v4491_v20 = vpop.f32.mrf.mxu1 }
 0x2d1   : > { %v952_v21 = vpop.f32.mrf.mxu3 }
 0x2d3   : > { %v4493_v22 = vpop.f32.mrf.mxu2  ;;  %v4495_v23 = vpop.f32.mrf.mxu0 }
 0x2d4   : > { %v4497_v24 = vpop.f32.mrf.mxu1 }
 0x2d9   : > { %v955_v25 = vpop.f32.mrf.mxu3 }
 0x2db   : > { %v4499_v26 = vpop.f32.mrf.mxu2  ;;  %v4501_v27 = vpop.f32.mrf.mxu0 }
 0x2dc   : > { %v4503_v28 = vpop.f32.mrf.mxu1 }
 0x2e1   : > { %v958_v29 = vpop.f32.mrf.mxu3 }
 0x2e3   : > { %v1088_v30 = vpop.f32.mrf.mxu2  ;;  %v908_v31 = vpop.f32.mrf.mxu0 }
 0x2e4   : > { %1604 = vrot.lane.b32.xlu0 %v1088_v30, %s4139_s22  ;;  %v4506_v32 = vpop.f32.mrf.mxu1  ;;  %1569 = vrot.lane.b32.xlu2 %v908_v31, %s4142_s29 }
 0x2e9   : > { %v961_v33 = vpop.f32.mrf.mxu3 }
 0x2eb   : > { %v1091_v37 = vpop.f32.mrf.mxu2  ;;  %v911_v38 = vpop.f32.mrf.mxu0 }
 0x2ec   : > { %1606 = vrot.lane.b32.xlu0 %v1091_v37, %s4139_s22  ;;  %v4510_v39 = vpop.f32.mrf.mxu1  ;;  %1571 = vrot.lane.b32.xlu2 %v911_v38, %s4142_s29 }
 0x2f1   : > { %v964_v43 = vpop.f32.mrf.mxu3 }
 0x2f3   : > { %v1094_v41 = vpop.f32.mrf.mxu2 }
 0x2f4   : > { %1608 = vrot.lane.b32.xlu0 %v1094_v41, %s4139_s22  ;;  %v4514_v42 = vpop.f32.mrf.mxu1 }
 0x2f5   : > { %5636 = vst [vmem:[#allocation9_spill] sm:$0xff] %v4514_v42  ;;  %1491 = vrot.lane.b32.xlu1 %v4514_v42, %s4143_s16 }
 0x2f9   : > { %v4522_v46 = vpop.f32.mrf.mxu3 }
 0x2fa   : > { %5638 = vst [vmem:[#allocation11_spill] sm:$0xff] %v4522_v46  ;;  %v4541_v54 = vsub.f32 %v946_v13, %v4522_v46 }
 0x2fb   : > { %v1097_v4 = vpop.f32.mrf.mxu2 }
 0x2fc   : > { %v4518_v45 = vpop.f32.mrf.mxu1  ;;  %5643 = vst [vmem:[#allocation16_spill] sm:$0xff] %v4541_v54  ;;  %v1154_v58 = vmul.f32 %v4541_v54, %v4541_v54 }
 0x2fd   : > { %5637 = vst [vmem:[#allocation10_spill] sm:$0xff] %v4518_v45  ;;  %1493 = vrot.lane.b32.xlu2 %v4518_v45, %s4143_s16 }
 0x2fe   : > { %v1161_v61 = vsel %vm636_vm5, %v1154_v58, 0.0  ;;  %v1519_v58 = vperm.slane %v4357_v44, 7 }
 0x301   : > { %v4524_v47 = vpop.f32.mrf.mxu3 }
 0x302   : > { %5639 = vst [vmem:[#allocation12_spill] sm:$0xff] %v4524_v47  ;;  %v4529_v49 = vsub.f32 %v949_v17, %v4524_v47 }
 0x304   : > { %5641 = vst [vmem:[#allocation14_spill] sm:$0xff] %v4529_v49  ;;  %v1155_v51 = vmul.f32 %v4529_v49, %v4529_v49  ;;  %v4538_v53 = vpop.f32.mrf.mxu1 }
 0x305   : > { %5642 = vst [vmem:[#allocation15_spill] sm:$0xff] %v4538_v53 }
 0x306   : > { %v1164_v55 = vsel %vm636_vm5, %v1155_v51, 0.0 }
 0x309   : > { %v4526_v48 = vpop.f32.mrf.mxu3 }
 0x30a   : > { %5640 = vst [vmem:[#allocation13_spill] sm:$0xff] %v4526_v48  ;;  %v4532_v50 = vsub.f32 %v952_v21, %v4526_v48 }
 0x30c   : > { %v1156_v52 = vmul.f32 %v4532_v50, %v4532_v50  ;;  %v4548_v62 = vpop.f32.mrf.mxu1 }
 0x30d   : > { %5644 = vst [vmem:[#allocation17_spill] sm:$0xff] %v4548_v62 }
 0x30e   : > { %v1167_v57 = vsel %vm636_vm5, %v1156_v52, 0.0 }
 0x311   : > { %v4554_v1 = vpop.f32.mrf.mxu3 }
 0x312   : > { %5646 = vst [vmem:[#allocation19_spill] sm:$0xff] %v4554_v1  ;;  %v4581_v21 = vsub.f32 %v955_v25, %v4554_v1 }
 0x314   : > { %v4550_v63 = vpop.f32.mrf.mxu1  ;;  %5650 = vst [vmem:[#allocation23_spill] sm:$0xff] %v4581_v21 }
 0x315   : > { %5645 = vst [vmem:[#allocation18_spill] sm:$0xff] %v4550_v63 }
 0x316   : > { %v4585_v30 = vpop.permute.xlu2 %1573 }
 0x317   : > { %5651 = vst [vmem:[#allocation24_spill] sm:$0xff] %v4585_v30 }
 0x319   : > { %v4559_v2 = vpop.f32.mrf.mxu3 }
 0x31a   : > { %5647 = vst [vmem:[#allocation20_spill] sm:$0xff] %v4559_v2  ;;  %v4567_v5 = vsub.f32 %v958_v29, %v4559_v2  ;;  %v1157_v29 = vmul.f32 %v4581_v21, %v4581_v21 }
 0x31c   : > { %v1158_v7 = vmul.f32 %v4567_v5, %v4567_v5  ;;  %v1170_v37 = vsel %vm636_vm5, %v1157_v29, 0.0 }
 0x31e   : > { %1165 = vadd.xlane.f32.xlu0 %v1164_v55  ;;  %v1173_v13 = vsel %vm636_vm5, %v1158_v7, 0.0 }
 0x31f   : > { %1168 = vadd.xlane.f32.xlu1 %v1167_v57  ;;  %v1100_v57 = vpop.f32.mrf.mxu2 }
 0x321   : > { %v4563_v3 = vpop.f32.mrf.mxu3 }
 0x322   : > { %5648 = vst [vmem:[#allocation21_spill] sm:$0xff] %v4563_v3  ;;  %v4588_v31 = vsub.f32 %v961_v33, %v4563_v3 }
 0x324   : > { %v1159_v38 = vmul.f32 %v4588_v31, %v4588_v31 }
 0x326   : > { %1162 = vadd.xlane.f32.xlu2 %v1161_v61 }
 0x329   : > { %v4569_v6 = vpop.f32.mrf.mxu3 }
 0x32a   : > { %5649 = vst [vmem:[#allocation22_spill] sm:$0xff] %v4569_v6  ;;  %v4574_v10 = vsub.f32 %v964_v43, %v4569_v6  ;;  %v1176_v43 = vsel %vm636_vm5, %v1159_v38, 0.0  ;;  %v4643_v6 = vpop.f32.mrf.mxu1 }
 0x32b   : > { %5655 = vst [vmem:[#allocation28_spill] sm:$0xff] %v4643_v6 }
 0x332   : > { %1499 = vrot.lane.b32.xlu0 %v4550_v63, %s4143_s16  ;;  %v4648_v3 = vpop.f32.mrf.mxu1 }
 0x333   : > { %5656 = vst [vmem:[#allocation29_spill] sm:$0xff] %v4648_v3 }
 0x338   : > { %1575 = vrot.lane.b32.xlu1 %v917_v14, %s4142_s29  ;;  %v1160_v14 = vmul.f32 %v4574_v10, %v4574_v10 }
 0x33a   : > { %v1179_v17 = vsel %vm636_vm5, %v1160_v14, 0.0 }
 0x33e   : > { %1495 = vrot.lane.b32.xlu2 %v4538_v53, %s4143_s16  ;;  %v4593_v41 = vpop.permute.xlu2 %1569 }
 0x346   : > { %1497 = vrot.lane.b32.xlu2 %v4548_v62, %s4143_s16  ;;  %v4598_v51 = vpop.permute.xlu2 %1571 }
 0x34e   : > { %1610 = vrot.lane.b32.xlu2 %v1097_v4, %s4139_s22 }
 0x356   : > { %v4596_v25 = vpop.permute.xlu0 %1604 }
 0x357   : > { %v1494_v55 = vpop.permute.xlu2 %1493 }
 0x35c   : > { %1174 = vadd.xlane.f32.xlu0 %v1173_v13 }
 0x35e   : > { %v4600_v52 = vpop.permute.xlu0 %1606 }
 0x35f   : > { %5652 = vst [vmem:[#allocation25_spill] sm:$0xff] %v4600_v52 }
 0x362   : > { %1180 = vadd.xlane.f32.xlu1 %v1179_v17 }
 0x366   : > { %v4602_v33 = vpop.permute.xlu0 %1608 }
 0x367   : > { %5653 = vst [vmem:[#allocation26_spill] sm:$0xff] %v4602_v33  ;;  %v1492_v7 = vpop.permute.xlu1 %1491 }
 0x377   : > { %1171 = vadd.xlane.f32.xlu2 %v1170_v37 }
 0x37f   : > { %1177 = vadd.xlane.f32.xlu2 %v1176_v43 }
 0x391   : > { %v4610_v13 = vpop.xlane.xlu0 %1165 }
 0x392   : > { %v1521_v14 = vmul.f32 %v1519_v58, %v4610_v13  ;;  %v4614_v17 = vpop.xlane.xlu1 %1168 }
 0x393   : > { %v1522_v29 = vmul.f32 %v1519_v58, %v4614_v17 }
 0x397   : > { %1612 = vrot.lane.b32.xlu2 %v1100_v57, %s4139_s22 }
 0x399   : > { %v4606_v61 = vpop.xlane.xlu2 %1162 }
 0x39a   : > { %v1520_v4 = vmul.f32 %v1519_v58, %v4606_v61 }
 0x39c   : > { %1534 = vrot.lane.b32.xlu0 %v1520_v4, %s4142_s29 }
 0x3a1   : > { %v1496_v38 = vpop.permute.xlu2 %1495 }
 0x3a4   : > { %1536 = vrot.lane.b32.xlu0 %v1521_v14, %s4142_s29  ;;  %v4618_v37 = vpop.permute.xlu0 %1499 }
 0x3a9   : > { %v4626_v42 = vpop.permute.xlu2 %1497 }
 0x3aa   : > { %v4624_v4 = vpop.permute.xlu1 %1575 }
 0x3ac   : > { %1538 = vrot.lane.b32.xlu0 %v1522_v29, %s4142_s29 }
 0x3b1   : > { %v4633_v45 = vpop.permute.xlu2 %1610 }
 0x3b2   : > { %5654 = vst [vmem:[#allocation27_spill] sm:$0xff] %v4633_v45 }
 0x3cf   : > { %v4620_v43 = vpop.xlane.xlu0 %1174 }
 0x3d0   : > { %v1524_v57 = vmul.f32 %v1519_v58, %v4620_v43 }
 0x3d2   : > { %1542 = vrot.lane.b32.xlu2 %v1524_v57, %s4142_s29 }
 0x3d5   : > { %v4630_v14 = vpop.xlane.xlu1 %1180 }
 0x3d6   : > { %v1526_v29 = vmul.f32 %v1519_v58, %v4630_v14 }
 0x3da   : > { %1579 = vrot.lane.b32.xlu2 %v4493_v22, %s4142_s29  ;;  %v1103_v22 = vpop.f32.mrf.mxu2 }
 0x3e2   : > { %1546 = vrot.lane.b32.xlu2 %v1526_v29, %s4142_s29 }
 0x3ea   : > { %v4636_v53 = vpop.xlane.xlu2 %1171 }
 0x3eb   : > { %v1523_v62 = vmul.f32 %v1519_v58, %v4636_v53 }
 0x3ed   : > { %1540 = vrot.lane.b32.xlu0 %v1523_v62, %s4142_s29  ;;  %v1106_v62 = vpop.f32.mrf.mxu2 }
 0x3f2   : > { %v4640_v57 = vpop.xlane.xlu2 %1177 }
 0x3f3   : > { %v1525_v63 = vmul.f32 %v1519_v58, %v4640_v57  ;;  %v1512_v58 = vadd.f32 %v1492_v7, %v4480_v12  ;;  %v1514_v7 = vadd.f32 %v1496_v38, %v4491_v20 }
 0x3f5   : > { %1544 = vrot.lane.b32.xlu1 %v1525_v63, %s4142_s29  ;;  %1577 = vrot.lane.b32.xlu0 %v4487_v18, %s4142_s29 }
 0x3fd   : > { %1503 = vrot.lane.b32.xlu1 %v4648_v3, %s4143_s16  ;;  %1501 = vrot.lane.b32.xlu0 %v4643_v6, %s4143_s16  ;;  %v1513_v3 = vadd.f32 %v1494_v55, %v4485_v16 }
 0x405   : > { %1616 = vrot.lane.b32.xlu1 %v1106_v62, %s4139_s22  ;;  %1614 = vrot.lane.b32.xlu0 %v1103_v22, %s4139_s22 }
 0x40d   : > { %1581 = vrot.lane.b32.xlu0 %v4499_v26, %s4142_s29 }
 0x40e   : > { %v1535_v18 = vpop.permute.xlu0 %1534 }
 0x40f   : > { %v1555_v63 = vadd.f32 %v1535_v18, %v1512_v58 }
 0x411   : > { %v1590_v29 = vadd.f32 %v4593_v41, %v1555_v63 }
 0x413   : > { %v1625_v46 = vadd.f32 %v4596_v25, %v1590_v29 }
 0x415   : > { %v3663_v2 = vmul.f32 -1.442695, %v1625_v46 }
 0x416   : > { %v1537_v6 = vpop.permute.xlu0 %1536 }
 0x417   : > { %3921 = vpow2.f32 %v3663_v2  ;;  %v1556_v1 = vadd.f32 %v1537_v6, %v1513_v3 }
 0x419   : > { %v1591_v62 = vadd.f32 %v4598_v51, %v1556_v1 }
 0x41b   : > { %v1626_v22 = vadd.f32 %v4600_v52, %v1591_v62 }
 0x41d   : > { %v3922_v12 = vpop.eup %3921  ;;  %v3664_v26 = vmul.f32 -1.442695, %v1626_v22 }
 0x41e   : > { %v1653_v48 = vadd.f32 1.0, %v3922_v12  ;;  %v1539_v58 = vpop.permute.xlu0 %1538 }
 0x41f   : > { %3923 = vpow2.f32 %v3664_v26  ;;  %v1557_v18 = vadd.f32 %v1539_v58, %v1514_v7 }
 0x420   : > { %3925 = vrcp.f32 %v1653_v48  ;;  %v1671_v62 = vand.u32 2147483648, %v1653_v48  ;;  %v1669_v38 = vand.u32 2147483647, %v1653_v48  ;;  %vm1665_vm6 = vweird.f32 %v1653_v48 }
 0x421   : > { %v1592_v63 = vadd.f32 %v4585_v30, %v1557_v18 }
 0x422   : > { %v1672_v18 = vor.u32 1.1754944e-38, %v1671_v62  ;;  %vm1670_vm8 = vcmp.eq.f32.partialorder %v1669_v38, 8.507059e+37 }
 0x423   : > { %v1627_v16 = vadd.f32 %v4602_v33, %v1592_v63 }
 0x425   : > { %v3924_v55 = vpop.eup %3923  ;;  %v3665_v2 = vmul.f32 -1.442695, %v1627_v16 }
 0x426   : > { %v3926_v3 = vpop.eup %3925  ;;  %v1654_v6 = vadd.f32 1.0, %v3924_v55 }
 0x427   : > { %3927 = vpow2.f32 %v3665_v2  ;;  %v1661_v1 = vmul.f32 %v3926_v3, %v1653_v48  ;;  %vm1666_vm3 = vweird.f32 %v3926_v3 }
 0x428   : > { %3929 = vrcp.f32 %v1654_v6  ;;  %vm1667_vm7 = vmor %vm1665_vm6, %vm1666_vm3  ;;  %v1686_v30 = vand.u32 2147483648, %v1654_v6  ;;  %vm1680_vm10 = vweird.f32 %v1654_v6 }
 0x429   : > { %v1662_v29 = vsub.f32 1.0, %v1661_v1 }
 0x42b   : > { %v1663_v20 = vmul.f32 %v3926_v3, %v1662_v29  ;;  %v1684_v29 = vand.u32 2147483647, %v1654_v6 }
 0x42d   : > { %v3928_v12 = vpop.eup %3927  ;;  %v1664_v26 = vadd.f32 %v3926_v3, %v1663_v20  ;;  %v1687_v20 = vor.u32 1.1754944e-38, %v1686_v30  ;;  %vm1685_vm12 = vcmp.eq.f32.partialorder %v1684_v29, 8.507059e+37  ;;  %v1516_v29 = vadd.f32 %v4618_v37, %v4503_v28  ;;  %v4694_v37 = vld [vmem:[%s4242_s15 + $0x10] sm:$0xff] }
 0x42e   : > { %v3930_v7 = vpop.eup %3929  ;;  %v1655_v58 = vadd.f32 1.0, %v3928_v12 }
 0x42f   : > { %v1668_v63 = vsel %vm1667_vm7, %v3926_v3, %v1664_v26  ;;  %v1676_v47 = vmul.f32 %v3930_v7, %v1654_v6  ;;  %vm1681_vm9 = vweird.f32 %v3930_v7 }
 0x430   : > { %3931 = vrcp.f32 %v1655_v58  ;;  %v1673_v55 = vsel %vm1670_vm8, %v1672_v18, %v1668_v63  ;;  %vm1682_vm11 = vmor %vm1680_vm10, %vm1681_vm9  ;;  %v1701_v18 = vand.u32 2147483648, %v1655_v58  ;;  %vm1695_vm14 = vweird.f32 %v1655_v58 }
 0x431   : > { %v1765_v2 = vmul.f32 %v1673_v55, %v1625_v46  ;;  %v1677_v33 = vsub.f32 1.0, %v1676_v47  ;;  %v1699_v47 = vand.u32 2147483647, %v1655_v58 }
 0x432   : > { %v1702_v63 = vor.u32 1.1754944e-38, %v1701_v18  ;;  %v4698_v18 = vld [vmem:[%s4242_s15] sm:$0xff] }
 0x433   : > { %1780 = vrot.lane.b32.xlu2 %v1765_v2, %s4142_s29  ;;  %v1678_v1 = vmul.f32 %v3930_v7, %v1677_v33  ;;  %vm1700_vm0 = vcmp.eq.f32.partialorder %v1699_v47, 8.507059e+37 }
 0x435   : > { %v1679_v52 = vadd.f32 %v3930_v7, %v1678_v1 }
 0x436   : > { %v3932_v48 = vpop.eup %3931 }
 0x437   : > { %v1683_v12 = vsel %vm1682_vm11, %v3930_v7, %v1679_v52  ;;  %v1691_v3 = vmul.f32 %v3932_v48, %v1655_v58  ;;  %vm1696_vm13 = vweird.f32 %v3932_v48  ;;  %v4670_v52 = vpop.permute.xlu2 %1612 }
 0x438   : > { %v1688_v62 = vsel %vm1685_vm12, %v1687_v20, %v1683_v12  ;;  %vm1697_vm15 = vmor %vm1695_vm14, %vm1696_vm13  ;;  %5657 = vst [vmem:[#allocation30_spill] sm:$0xff] %v4670_v52 }
 0x439   : > { %v1766_v38 = vmul.f32 %v1688_v62, %v1626_v22  ;;  %v1692_v26 = vsub.f32 1.0, %v1691_v3  ;;  %v1515_v22 = vadd.f32 %v4626_v42, %v4497_v24  ;;  %v4682_v24 = vld [vmem:[%s4242_s15 + $0x30] sm:$0xff]  ;;  %v4689_v62 = vld [vmem:[%s4242_s15 + $0x20] sm:$0xff] }
 0x43a   : > { %1820 = vmatpush.msrb.mxu2 %v4682_v24 }
 0x43b   : > { %1782 = vrot.lane.b32.xlu0 %v1766_v38, %s4142_s29  ;;  %v1693_v46 = vmul.f32 %v3932_v48, %v1692_v26 }
 0x43c   : > { %1821 = vmatpush.msrb.mxu2 %v4689_v62 }
 0x43d   : > { %v1694_v33 = vadd.f32 %v3932_v48, %v1693_v46 }
 0x43e   : > { %1822 = vmatpush.msrb.mxu2 %v4694_v37 }
 0x43f   : > { %v1698_v6 = vsel %vm1697_vm15, %v3932_v48, %v1694_v33  ;;  %v1543_v1 = vpop.permute.xlu2 %1542 }
 0x440   : > { %v1703_v55 = vsel %vm1700_vm0, %v1702_v63, %v1698_v6  ;;  %1823 = vmatpush.msrb.mxu2 %v4698_v18 }
 0x441   : > { %v1767_v30 = vmul.f32 %v1703_v55, %v1627_v16  ;;  %v1559_v16 = vadd.f32 %v1543_v1, %v1516_v29 }
 0x443   : > { %1784 = vrot.lane.b32.xlu1 %v1767_v30, %s4142_s29 }
 0x447   : > { %v4702_v6 = vpop.permute.xlu2 %1579 }
 0x448   : > { %5659 = vst [vmem:[#allocation32_spill] sm:$0xff] %v4702_v6 }
 0x45f   : > { %v1541_v7 = vpop.permute.xlu0 %1540 }
 0x460   : > { %v1558_v2 = vadd.f32 %v1541_v7, %v1515_v22 }
 0x462   : > { %v1593_v58 = vadd.f32 %v4624_v4, %v1558_v2 }
 0x464   : > { %v1628_v48 = vadd.f32 %v4633_v45, %v1593_v58 }
 0x466   : > { %v3666_v20 = vmul.f32 -1.442695, %v1628_v48 }
 0x467   : > { %v4678_v12 = vpop.permute.xlu0 %1577  ;;  %v1545_v38 = vpop.permute.xlu1 %1544 }
 0x468   : > { %5658 = vst [vmem:[#allocation31_spill] sm:$0xff] %v4678_v12  ;;  %3933 = vpow2.f32 %v3666_v20  ;;  %v1594_v3 = vadd.f32 %v4678_v12, %v1559_v16 }
 0x46a   : > { %v4686_v42 = vadd.f32 %v4670_v52, %v1594_v3 }
 0x46c   : > { %v3667_v28 = vmul.f32 -1.442695, %v4686_v42 }
 0x46e   : > { %v3934_v26 = vpop.eup %3933  ;;  %3935 = vpow2.f32 %v3667_v28 }
 0x46f   : > { %v1656_v46 = vadd.f32 1.0, %v3934_v26  ;;  %v1502_v47 = vpop.permute.xlu0 %1501  ;;  %v1504_v2 = vpop.permute.xlu1 %1503 }
 0x470   : > { %v1517_v33 = vadd.f32 %v1502_v47, %v4506_v32  ;;  %v1518_v16 = vadd.f32 %v1504_v2, %v4510_v39  ;;  %v1547_v47 = vpop.permute.xlu2 %1546 }
 0x471   : > { %3937 = vrcp.f32 %v1656_v46  ;;  %v1716_v3 = vand.u32 2147483648, %v1656_v46  ;;  %vm1710_vm3 = vweird.f32 %v1656_v46 }
 0x472   : > { %v1560_v63 = vadd.f32 %v1545_v38, %v1517_v33  ;;  %v1714_v38 = vand.u32 2147483647, %v1656_v46  ;;  %v1561_v33 = vadd.f32 %v1547_v47, %v1518_v16 }
 0x474   : > { %v3936_v55 = vpop.eup %3935  ;;  %v1595_v22 = vadd.f32 %v4702_v6, %v1560_v63  ;;  %vm1715_vm7 = vcmp.eq.f32.partialorder %v1714_v38, 8.507059e+37 }
 0x475   : > { %v1657_v30 = vadd.f32 1.0, %v3936_v55 }
 0x477   : > { %v3938_v7 = vpop.eup %3937  ;;  %3939 = vrcp.f32 %v1657_v30  ;;  %v4705_v58 = vpop.permute.xlu0 %1614  ;;  %v1731_v52 = vand.u32 2147483648, %v1657_v30  ;;  %vm1725_vm9 = vweird.f32 %v1657_v30 }
 0x478   : > { %5660 = vst [vmem:[#allocation33_spill] sm:$0xff] %v4705_v58  ;;  %v4708_v1 = vadd.f32 %v4705_v58, %v1595_v22  ;;  %v1706_v29 = vmul.f32 %v3938_v7, %v1656_v46  ;;  %vm1711_vm1 = vweird.f32 %v3938_v7  ;;  %v1717_v22 = vor.u32 1.1754944e-38, %v1716_v3  ;;  %v4715_v58 = vpop.permute.xlu1 %1616 }
 0x479   : > { %vm1712_vm6 = vmor %vm1710_vm3, %vm1711_vm1  ;;  %5661 = vst [vmem:[#allocation34_spill] sm:$0xff] %v4715_v58 }
 0x47a   : > { %v3668_v32 = vmul.f32 -1.442695, %v4708_v1  ;;  %v1707_v20 = vsub.f32 1.0, %v1706_v29 }
 0x47c   : > { %3941 = vpow2.f32 %v3668_v32  ;;  %v1708_v28 = vmul.f32 %v3938_v7, %v1707_v20  ;;  %v1729_v20 = vand.u32 2147483647, %v1657_v30 }
 0x47d   : > { %v3940_v26 = vpop.eup %3939 }
 0x47e   : > { %v1709_v63 = vadd.f32 %v3938_v7, %v1708_v28  ;;  %v1721_v55 = vmul.f32 %v3940_v26, %v1657_v30  ;;  %vm1726_vm8 = vweird.f32 %v3940_v26  ;;  %vm1730_vm11 = vcmp.eq.f32.partialorder %v1729_v20, 8.507059e+37  ;;  %v1012_v30 = vpop.f32.mrf.mxu0 }
 0x47f   : > { %v4712_v6 = vpop.permute.xlu0 %1581  ;;  %vm1727_vm10 = vmor %vm1725_vm9, %vm1726_vm8 }
 0x480   : > { %v1596_v39 = vadd.f32 %v4712_v6, %v1561_v33  ;;  %v1713_v2 = vsel %vm1712_vm6, %v3938_v7, %v1709_v63  ;;  %v1722_v29 = vsub.f32 1.0, %v1721_v55  ;;  %v1732_v7 = vor.u32 1.1754944e-38, %v1731_v52 }
 0x481   : > { %v1718_v32 = vsel %vm1715_vm7, %v1717_v22, %v1713_v2 }
 0x482   : > { %v3942_v12 = vpop.eup %3941  ;;  %v1631_v16 = vadd.f32 %v4715_v58, %v1596_v39  ;;  %v1768_v28 = vmul.f32 %v1718_v32, %v1628_v48  ;;  %v1723_v46 = vmul.f32 %v3940_v26, %v1722_v29 }
 0x483   : > { %v1658_v47 = vadd.f32 1.0, %v3942_v12 }
 0x484   : > { %v3669_v45 = vmul.f32 -1.442695, %v1631_v16  ;;  %1786 = vrot.lane.b32.xlu2 %v1768_v28, %s4142_s29  ;;  %v1724_v3 = vadd.f32 %v3940_v26, %v1723_v46 }
 0x485   : > { %3943 = vrcp.f32 %v1658_v47  ;;  %v1746_v29 = vand.u32 2147483648, %v1658_v47  ;;  %vm1740_vm13 = vweird.f32 %v1658_v47 }
 0x486   : > { %3945 = vpow2.f32 %v3669_v45  ;;  %v1728_v38 = vsel %vm1727_vm10, %v3940_v26, %v1724_v3  ;;  %v1744_v45 = vand.u32 2147483647, %v1658_v47 }
 0x487   : > { %v1733_v33 = vsel %vm1730_vm11, %v1732_v7, %v1728_v38  ;;  %v1015_v38 = vpop.f32.mrf.mxu0 }
 0x488   : > { %v1769_v63 = vmul.f32 %v1733_v33, %v4686_v42  ;;  %v1747_v42 = vor.u32 1.1754944e-38, %v1746_v29  ;;  %vm1745_vm15 = vcmp.eq.f32.partialorder %v1744_v45, 8.507059e+37 }
 0x48a   : > { %1788 = vrot.lane.b32.xlu0 %v1769_v63, %s4142_s29 }
 0x48b   : > { %v3944_v48 = vpop.eup %3943 }
 0x48c   : > { %v3946_v55 = vpop.eup %3945  ;;  %v1736_v22 = vmul.f32 %v3944_v48, %v1658_v47  ;;  %vm1741_vm12 = vweird.f32 %v3944_v48 }
 0x48d   : > { %v1659_v12 = vadd.f32 1.0, %v3946_v55  ;;  %v1781_v39 = vpop.permute.xlu2 %1780  ;;  %vm1742_vm14 = vmor %vm1740_vm13, %vm1741_vm12 }
 0x48e   : > { %v1737_v2 = vsub.f32 1.0, %v1736_v22  ;;  %3670 = vmatmul.msk.f32.vlgmr.msrb.gmra.mxu2 %vm602_vm4, %v1781_v39 }
 0x48f   : > { %3947 = vrcp.f32 %v1659_v12  ;;  %v1761_v33 = vand.u32 2147483648, %v1659_v12  ;;  %v1759_v63 = vand.u32 2147483647, %v1659_v12  ;;  %vm1755_vm1 = vweird.f32 %v1659_v12 }
 0x490   : > { %v1738_v52 = vmul.f32 %v3944_v48, %v1737_v2  ;;  %v1018_v2 = vpop.f32.mrf.mxu0 }
 0x491   : > { %vm1760_vm6 = vcmp.eq.f32.partialorder %v1759_v63, 8.507059e+37 }
 0x492   : > { %v1739_v26 = vadd.f32 %v3944_v48, %v1738_v52  ;;  %1197 = vrot.lane.b32.xlu0 %v4392_v0, %s4144_s27  ;;  %v4773_v52 = vperm.slane %v4357_v44, 4 }
 0x494   : > { %v1743_v32 = vsel %vm1742_vm14, %v3944_v48, %v1739_v26  ;;  %v1762_v48 = vor.u32 1.1754944e-38, %v1761_v33  ;;  %v1253_v45 = vmul.f32 %v4773_v52, %v4606_v61  ;;  %v4778_v26 = vperm.slane %v4357_v44, 5 }
 0x495   : > { %v3948_v20 = vpop.eup %3947  ;;  %v1748_v28 = vsel %vm1745_vm15, %v1747_v42, %v1743_v32 }
 0x496   : > { %v1770_v46 = vmul.f32 %v1748_v28, %v4708_v1  ;;  %v1751_v3 = vmul.f32 %v3948_v20, %v1659_v12  ;;  %vm1756_vm0 = vweird.f32 %v3948_v20  ;;  %v3794_v12 = vpack.i.bf16 %v4689_v62, %v4682_v24  ;;  %v573_v24 = vld [vmem:[%s4242_s15 + $0x38] sm:$0xff] }
 0x497   : > { %vm1757_vm3 = vmor %vm1755_vm1, %vm1756_vm0  ;;  %v1254_v28 = vmul.f32 %v4773_v52, %v4610_v13 }
 0x498   : > { %1790 = vrot.lane.b32.xlu1 %v1770_v46, %s4142_s29  ;;  %v1752_v7 = vsub.f32 1.0, %v1751_v3  ;;  %v1021_v29 = vpop.f32.mrf.mxu0 }
 0x499   : > { %v4788_v44 = vadd.f32 %v4778_v26, %v1254_v28 }
 0x49a   : > { %1184 = vrot.lane.b32.xlu0 %v4333_v34, %s4145_s21  ;;  %v1753_v47 = vmul.f32 %v3948_v20, %v1752_v7  ;;  %v3799_v34 = vpack.i.bf16 %v4698_v18, %v4694_v37  ;;  %v4745_v37 = vld [vmem:[%s4242_s15 + $0x28] sm:$0xff] }
 0x49b   : > { %v3650_v33 = vmul.f32 -1.442695, %v4788_v44 }
 0x49c   : > { %v1754_v55 = vadd.f32 %v3948_v20, %v1753_v47  ;;  %v1255_v47 = vmul.f32 %v4773_v52, %v4614_v17  ;;  %v1256_v17 = vmul.f32 %v4773_v52, %v4636_v53  ;;  %v1257_v53 = vmul.f32 %v4773_v52, %v4620_v43  ;;  %v600_v43 = vld [vmem:[%s5594_s6 + $0x38] sm:$0xff] }
 0x49e   : > { %v1758_v22 = vsel %vm1757_vm3, %v3948_v20, %v1754_v55  ;;  %v4782_v20 = vadd.f32 %v4778_v26, %v1253_v45  ;;  %v4795_v55 = vadd.f32 %v4778_v26, %v1255_v47  ;;  %v4834_v28 = vadd.f32 %v4778_v26, %v1257_v53 }
 0x49f   : > { %v1763_v1 = vsel %vm1760_vm6, %v1762_v48, %v1758_v22  ;;  %v4798_v48 = vld [vmem:[%s4257_s25 + $0x8] sm:$0xff] }
 0x4a0   : > { %1182 = vrot.lane.b32.xlu1 %v4343_v36, %s4145_s21  ;;  %v1771_v39 = vmul.f32 %v1763_v1, %v1631_v16  ;;  %v4761_v16 = vld [vmem:[%s4242_s15 + $0x18] sm:$0xff]  ;;  %v3649_v46 = vmul.f32 -1.442695, %v4782_v20  ;;  %v1921_v1 = vperm.slane %v4798_v48, 1  ;;  %v3653_v47 = vmul.f32 -1.442695, %v4834_v28 }
 0x4a2   : > { %1188 = vrot.lane.b32.xlu0 %v4373_v59, %s4145_s21  ;;  %1792 = vrot.lane.b32.xlu2 %v1771_v39, %s4142_s29  ;;  %v1024_v59 = vpop.f32.mrf.mxu0  ;;  %3949 = vpow2.f32 %v3649_v46  ;;  %v3651_v39 = vmul.f32 -1.442695, %v4795_v55 }
 0x4a3   : > { %3951 = vpow2.f32 %v3650_v33  ;;  %v597_v33 = vld [vmem:[%s5594_s6 + $0x20] sm:$0xff] }
 0x4a8   : > { %3800 = vrot.lane.b32.xlu1 %v3799_v34, %s4143_s16  ;;  %v3950_v63 = vpop.eup %3949 }
 0x4a9   : > { %v4800_v22 = vadd.f32 1.0, %v3950_v63  ;;  %v3952_v34 = vpop.eup %3951 }
 0x4aa   : > { %1194 = vrot.lane.b32.xlu0 %v4368_v56, %s4145_s21  ;;  %3795 = vrot.lane.b32.xlu2 %v3794_v12, %s4143_s16  ;;  %v3804_v56 = vpack.i.bf16 %v4745_v37, %v573_v24  ;;  %v1027_v18 = vpop.f32.mrf.mxu0  ;;  %v4811_v12 = vadd.f32 %v4778_v26, %v1256_v17 }
 0x4ab   : > { %3953 = vrcp.f32 %v4800_v22  ;;  %vm1301_vm8 = vweird.f32 %v4800_v22 }
 0x4ac   : > { %3955 = vpow2.f32 %v3651_v39  ;;  %v3652_v24 = vmul.f32 -1.442695, %v4811_v12 }
 0x4ad   : > { %v1783_v36 = vpop.permute.xlu0 %1782 }
 0x4ae   : > { %3671 = vmatmul.msk.f32.gmra.mxu2 %vm602_vm4, %v1783_v36 }
 0x4b0   : > { %1190 = vrot.lane.b32.xlu1 %v4354_v40, %s4145_s21  ;;  %v4758_v40 = vld [vmem:[%s4242_s15 + $0x8] sm:$0xff] }
 0x4b2   : > { %1940 = vrot.lane.b32.xlu0 %v1012_v30, %s4142_s29  ;;  %1186 = vrot.lane.b32.xlu2 %v4338_v35, %s4145_s21  ;;  %v3809_v35 = vpack.i.bf16 %v4758_v40, %v4761_v16  ;;  %v1030_v30 = vpop.f32.mrf.mxu0 }
 0x4b5   : > { %v1785_v62 = vpop.permute.xlu1 %1784 }
 0x4b6   : > { %3672 = vmatmul.msk.f32.gmra.mxu2 %vm602_vm4, %v1785_v62  ;;  %v4821_v62 = vperm.slane %v4798_v48, 0 }
 0x4b8   : > { %3805 = vrot.lane.b32.xlu1 %v3804_v56, %s4146_s17 }
 0x4ba   : > { %1946 = vrot.lane.b32.xlu0 %v1021_v29, %s4142_s29  ;;  %1192 = vrot.lane.b32.xlu2 %v4382_v60, %s4145_s21  ;;  %v4813_v29 = vadd.f32 1.0, %v3952_v34  ;;  %v596_v34 = vld [vmem:[%s5594_s6 + $0x18] sm:$0xff] }
 0x4bc   : > { %3957 = vrcp.f32 %v4813_v29  ;;  %vm1316_vm12 = vweird.f32 %v4813_v29 }
 0x4bd   : > { %3959 = vpow2.f32 %v3652_v24  ;;  %v594_v24 = vld [vmem:[%s5594_s6 + $0x8] sm:$0xff] }
 0x4c0   : > { %1942 = vrot.lane.b32.xlu1 %v1015_v38, %s4142_s29 }
 0x4c2   : > { %1952 = vrot.lane.b32.xlu0 %v1030_v30, %s4142_s29  ;;  %3810 = vrot.lane.b32.xlu2 %v3809_v35, %s4146_s17 }
 0x4c8   : > { %1948 = vrot.lane.b32.xlu1 %v1024_v59, %s4142_s29  ;;  %v4815_v59 = vpop.eup %3953 }
 0x4c9   : > { %v3956_v45 = vpop.eup %3955  ;;  %vm1302_vm7 = vweird.f32 %v4815_v59 }
 0x4ca   : > { %1944 = vrot.lane.b32.xlu2 %v1018_v2, %s4142_s29  ;;  %vm4885_vm9 = vmor %vm1301_vm8, %vm1302_vm7 }
 0x4d0   : > { %1923 = vrot.lane.b32.xlu1 %v1921_v1, %s4139_s22  ;;  %s4153_s22 = smov 8  }
 0x4d2   : > { %1950 = vrot.lane.b32.xlu2 %v1027_v18, %s4142_s29 }
 0x4de   : > { %v1787_v60 = vpop.permute.xlu2 %1786 }
 0x4df   : > { %3673 = vmatmul.msk.f32.gmra.mxu2 %vm602_vm4, %v1787_v60 }
 0x4fc   : > { %v1793_v42 = vpop.permute.xlu2 %1792  ;;  %v1789_v32 = vpop.permute.xlu0 %1788 }
 0x4fd   : > { %3674 = vmatmul.msk.f32.gmra.mxu2 %vm602_vm4, %v1789_v32  ;;  %v599_v32 = vld [vmem:[%s5594_s6 + $0x30] sm:$0xff] }
 0x504   : > { %v3796_v3 = vpop.permute.xlu2 %3795  ;;  %v1198_v7 = vpop.permute.xlu0 %1197 }
 0x505   : > { %v3798_v38 = vunpack.i.h.bf16 %v3796_v3  ;;  %v3797_v61 = vunpack.i.l.bf16 %v3796_v3  ;;  %1229 = vmatpush.msrb.mxu0 %v1198_v7  ;;  %v598_v3 = vld [vmem:[%s5594_s6 + $0x28] sm:$0xff]  ;;  %v4840_v7 = vadd.f32 1.0, %v3956_v45  ;;  %v1305_v45 = vand.u32 2147483647, %v4800_v22 }
 0x507   : > { %1895 = vmatpush.msra.mxu3 %v3797_v61  ;;  %1998 = vmatpush.msra.mxu0 %v600_v43  ;;  %v4843_v61 = vpop.eup %3957  ;;  %3961 = vrcp.f32 %v4840_v7  ;;  %vm1306_vm10 = vcmp.eq.f32.partialorder %v1305_v45, 8.507059e+37  ;;  %vm1331_vm0 = vweird.f32 %v4840_v7 }
 0x508   : > { %v3960_v39 = vpop.eup %3959  ;;  %3963 = vpow2.f32 %v3653_v47  ;;  %vm1317_vm11 = vweird.f32 %v4843_v61 }
 0x509   : > { %1896 = vmatpush.msra.mxu3 %v3798_v38  ;;  %1999 = vmatpush.msra.mxu0 %v599_v32  ;;  %vm1318_vm13 = vmor %vm1316_vm12, %vm1317_vm11 }
 0x50a   : > { %v1791_v13 = vpop.permute.xlu1 %1790 }
 0x50b   : > { %3675 = vmatmul.msk.f32.gmra.mxu2 %vm602_vm4, %v1791_v13  ;;  %2000 = vmatpush.msra.mxu0 %v598_v3  ;;  %v1258_v13 = vmul.f32 %v4773_v52, %v4640_v57  ;;  %v595_v57 = vld [vmem:[%s5594_s6 + $0x10] sm:$0xff] }
 0x50c   : > { %v1187_v36 = vpop.permute.xlu2 %1186  ;;  %v1185_v56 = vpop.permute.xlu0 %1184 }
 0x50d   : > { %2001 = vmatpush.msra.mxu0 %v597_v33  ;;  %v4865_v53 = vadd.f32 %v4778_v26, %v1258_v13 }
 0x50f   : > { %2002 = vmatpush.msra.mxu0 %v596_v34  ;;  %v3654_v43 = vmul.f32 -1.442695, %v4865_v53 }
 0x511   : > { %v1825_v35 = vpop.f32.mrf.mxu2  ;;  %2003 = vmatpush.msra.mxu0 %v595_v57 }
 0x512   : > { %v1183_v2 = vpop.permute.xlu1 %1182  ;;  %v1826_v46 = vadd.f32 %v1825_v35, %v4821_v62  ;;  %v4874_v35 = vpop.eup %3961 }
 0x513   : > { %3642 = vmatmul.msk.f32.vlgmr.msrb.gmra.mxu0 %vm793_vm2, %v1183_v2  ;;  %3676 = vmatmul.msk.f32.gmra.mxu2 %vm602_vm4, %v1793_v42  ;;  %v1297_v42 = vmul.f32 %v4815_v59, %v4800_v22  ;;  %v1312_v2 = vmul.f32 %v4843_v61, %v4813_v29  ;;  %v3964_v47 = vpop.eup %3963  ;;  %v1327_v13 = vmul.f32 %v4874_v35, %v4840_v7  ;;  %vm1332_vm15 = vweird.f32 %v4874_v35 }
 0x514   : > { %v4851_v63 = vpop.permute.xlu2 %1192  ;;  %v1189_v32 = vpop.permute.xlu0 %1188  ;;  %2004 = vmatpush.msra.mxu0 %v594_v24  ;;  %v4900_v57 = vadd.f32 1.0, %v3964_v47  ;;  %vm1333_vm1 = vmor %vm1331_vm0, %vm1332_vm15 }
 0x515   : > { %v1298_v38 = vsub.f32 1.0, %v1297_v42  ;;  %v1259_v42 = vmul.f32 %v4773_v52, %v4630_v14 }
 0x516   : > { %vm1361_vm12 = vweird.f32 %v4900_v57 }
 0x517   : > { %v1299_v17 = vmul.f32 %v4815_v59, %v1298_v38 }
 0x51a   : > { %v3801_v18 = vpop.permute.xlu1 %3800 }
 0x51b   : > { %v3803_v30 = vunpack.i.h.bf16 %v3801_v18  ;;  %v3802_v60 = vunpack.i.l.bf16 %v3801_v18  ;;  %3643 = vmatmul.msk.f32.gmra.mxu0 %vm793_vm2, %v1185_v56  ;;  %v1300_v56 = vadd.f32 %v4815_v59, %v1299_v17  ;;  %v1313_v18 = vsub.f32 1.0, %v1312_v2 }
 0x51c   : > { %v3811_v52 = vpop.permute.xlu2 %3810  ;;  %v4898_v2 = vadd.f32 %v4778_v26, %v1259_v42  ;;  %v1322_v26 = vand.u32 2147483648, %v4813_v29 }
 0x51d   : > { %1897 = vmatpush.msra.mxu3 %v3802_v60  ;;  %v593_v60 = vld [vmem:[%s5594_s6] sm:$0xff]  ;;  %v1304_v14 = vsel %vm4885_vm9, %v4815_v59, %v1300_v56  ;;  %v3812_v17 = vunpack.i.l.bf16 %v3811_v52  ;;  %v3813_v24 = vunpack.i.h.bf16 %v3811_v52  ;;  %v1328_v56 = vsub.f32 1.0, %v1327_v13 }
 0x51e   : > { %2005 = vmatpush.msra.mxu0 %v593_v60  ;;  %v3655_v45 = vmul.f32 -1.442695, %v4898_v2 }
 0x51f   : > { %1898 = vmatpush.msra.mxu3 %v3803_v30  ;;  %v1307_v30 = vand.u32 2147483648, %v4800_v22  ;;  %v1314_v22 = vmul.f32 %v4843_v61, %v1313_v18 }
 0x520   : > { %3677 = vmatmul.msk.f32.vlgmr.msra.gmra.mxu3 %vm602_vm4, %v1826_v46 }
 0x521   : > { %v1315_v59 = vadd.f32 %v4843_v61, %v1314_v22 }
 0x522   : > { %v1191_v1 = vpop.permute.xlu1 %1190 }
 0x523   : > { %3644 = vmatmul.msk.f32.gmra.mxu0 %vm793_vm2, %v1187_v36  ;;  %v4867_v36 = vadd.f32 1.0, %v3960_v39  ;;  %v1308_v39 = vor.u32 1.1754944e-38, %v1307_v30 }
 0x525   : > { %3965 = vrcp.f32 %v4867_v36  ;;  %v1309_v34 = vsel %vm1306_vm10, %v1308_v39, %v1304_v14  ;;  %v1335_v39 = vand.u32 2147483647, %v4840_v7  ;;  %vm1346_vm7 = vweird.f32 %v4867_v36 }
 0x526   : > { %3967 = vpow2.f32 %v3654_v43  ;;  %v1401_v60 = vmul.f32 %v1309_v34, %v4782_v20  ;;  %v1320_v43 = vand.u32 2147483647, %v4813_v29  ;;  %v1329_v20 = vmul.f32 %v4874_v35, %v1328_v56  ;;  %v1195_v34 = vpop.permute.xlu0 %1194 }
 0x527   : > { %3969 = vrcp.f32 %v4900_v57  ;;  %vm1336_vm3 = vcmp.eq.f32.partialorder %v1335_v39, 8.507059e+37  ;;  %vm1968_vm10 = vcmask 523264  }
 0x528   : > { %3971 = vpow2.f32 %v3655_v45  ;;  %vm1321_vm14 = vcmp.eq.f32.partialorder %v1320_v43, 8.507059e+37  ;;  %v1352_v45 = vand.u32 2147483648, %v4867_v36 }
 0x52a   : > { %v3806_v46 = vpop.permute.xlu1 %3805 }
 0x52b   : > { %v3808_v38 = vunpack.i.h.bf16 %v3806_v46  ;;  %v3807_v33 = vunpack.i.l.bf16 %v3806_v46  ;;  %3645 = vmatmul.msk.f32.gmra.mxu0 %vm793_vm2, %v1189_v32  ;;  %v4904_v18 = vpop.eup %3965  ;;  %v1319_v46 = vsel %vm1318_vm13, %v4843_v61, %v1315_v59  ;;  %v1337_v61 = vand.u32 2147483648, %v4840_v7 }
 0x52c   : > { %v3968_v32 = vpop.eup %3967  ;;  %v1342_v3 = vmul.f32 %v4904_v18, %v4867_v36  ;;  %vm1347_vm6 = vweird.f32 %v4904_v18 }
 0x52d   : > { %1458 = vmatpush.msra.mxu1 %v3807_v33  ;;  %v4920_v29 = vadd.f32 1.0, %v3968_v32  ;;  %v1330_v33 = vadd.f32 %v4874_v35, %v1329_v20  ;;  %v3970_v14 = vpop.eup %3969  ;;  %v1338_v56 = vor.u32 1.1754944e-38, %v1337_v61  ;;  %vm1348_vm8 = vmor %vm1346_vm7, %vm1347_vm6  ;;  %v1353_v20 = vor.u32 1.1754944e-38, %v1352_v45 }
 0x52e   : > { %v1343_v47 = vsub.f32 1.0, %v1342_v3  ;;  %v1357_v59 = vmul.f32 %v3970_v14, %v4900_v57  ;;  %v1941_v3 = vpop.permute.xlu0 %1940  ;;  %vm1362_vm11 = vweird.f32 %v3970_v14 }
 0x52f   : > { %1459 = vmatpush.msra.mxu1 %v3808_v38  ;;  %v1323_v38 = vor.u32 1.1754944e-38, %v1322_v26  ;;  %3973 = vrcp.f32 %v4920_v29  ;;  %vm1363_vm13 = vmor %vm1361_vm12, %vm1362_vm11  ;;  %vm1376_vm0 = vweird.f32 %v4920_v29  ;;  %vm2077_vm11 = vcmask 31744  }
 0x530   : > { %v1358_v26 = vsub.f32 1.0, %v1357_v59  ;;  %vm2118_vm12 = vcmask 457728  }
 0x531   : > { %1460 = vmatpush.msra.mxu1 %v3812_v17  ;;  %v1828_v30 = vpop.f32.mrf.mxu2  ;;  %v3972_v17 = vpop.eup %3971 }
 0x532   : > { %v1829_v42 = vadd.f32 %v1828_v30, %v4821_v62  ;;  %v4937_v7 = vadd.f32 1.0, %v3972_v17  ;;  %v1359_v32 = vmul.f32 %v3970_v14, %v1358_v26  ;;  %v1943_v17 = vpop.permute.xlu1 %1942 }
 0x533   : > { %3646 = vmatmul.msk.f32.gmra.mxu0 %vm793_vm2, %v1191_v1  ;;  %1461 = vmatpush.msra.mxu1 %v3813_v24  ;;  %v1324_v1 = vsel %vm1321_vm14, %v1323_v38, %v1319_v46  ;;  %v1334_v24 = vsel %vm1333_vm1, %v4874_v35, %v1330_v33  ;;  %v1350_v35 = vand.u32 2147483647, %v4867_v36  ;;  %v1961_v33 = vmul.f32 %v1941_v3, %v4474_v8 }
 0x534   : > { %3656 = vmatmul.msk.f32.vlgmr.msra.gmra.mxu1 %vm602_vm4, %v1401_v60  ;;  %3678 = vmatmul.msk.f32.gmra.mxu3 %vm602_vm4, %v1829_v42  ;;  %v1402_v13 = vmul.f32 %v1324_v1, %v4788_v44  ;;  %v1344_v44 = vmul.f32 %v4904_v18, %v1343_v47  ;;  %v1339_v30 = vsel %vm1336_vm3, %v1338_v56, %v1334_v24  ;;  %3975 = vrcp.f32 %v4937_v7 }
 0x535   : > { %v3974_v60 = vpop.eup %3973  ;;  %v1403_v42 = vmul.f32 %v1339_v30, %v4795_v55  ;;  %vm1351_vm9 = vcmp.eq.f32.partialorder %v1350_v35, 8.507059e+37  ;;  %v1360_v38 = vadd.f32 %v3970_v14, %v1359_v32  ;;  %v1367_v47 = vand.u32 2147483648, %v4900_v57 }
 0x536   : > { %v1372_v46 = vmul.f32 %v3974_v60, %v4920_v29  ;;  %vm1377_vm15 = vweird.f32 %v3974_v60  ;;  %v1962_v24 = vmul.f32 %v1943_v17, %v4478_v11  ;;  %vm1391_vm7 = vweird.f32 %v4937_v7 }
 0x537   : > { %v1364_v61 = vsel %vm1363_vm13, %v3970_v14, %v1360_v38  ;;  %v1368_v39 = vor.u32 1.1754944e-38, %v1367_v47  ;;  %v1380_v14 = vand.u32 2147483647, %v4920_v29  ;;  %vm1378_vm1 = vmor %vm1376_vm0, %vm1377_vm15  ;;  %vm3121_vm13 = vcmask 1043456  }
 0x538   : > { %v1373_v36 = vsub.f32 1.0, %v1372_v46 }
 0x539   : > { %v1831_v52 = vpop.f32.mrf.mxu2  ;;  %vm1381_vm3 = vcmp.eq.f32.partialorder %v1380_v14, 8.507059e+37 }
 0x53a   : > { %v1832_v22 = vadd.f32 %v1831_v52, %v4821_v62  ;;  %v3976_v1 = vpop.eup %3975 }
 0x53b   : > { %3647 = vmatmul.msk.f32.gmra.mxu0 %vm793_vm2, %v4851_v63  ;;  %v1345_v63 = vadd.f32 %v4904_v18, %v1344_v44  ;;  %vm1392_vm6 = vweird.f32 %v3976_v1 }
 0x53c   : > { %3657 = vmatmul.msk.f32.gmra.mxu1 %vm602_vm4, %v1402_v13  ;;  %3679 = vmatmul.msk.f32.gmra.mxu3 %vm602_vm4, %v1832_v22  ;;  %v1374_v22 = vmul.f32 %v3974_v60, %v1373_v36  ;;  %v1387_v13 = vmul.f32 %v3976_v1, %v4937_v7 }
 0x53d   : > { %v1349_v43 = vsel %vm1348_vm8, %v4904_v18, %v1345_v63  ;;  %v1365_v18 = vand.u32 2147483647, %v4900_v57  ;;  %v1382_v57 = vand.u32 2147483648, %v4920_v29  ;;  %v1945_v63 = vpop.permute.xlu2 %1944  ;;  %v1395_v29 = vand.u32 2147483647, %v4937_v7  ;;  %vm1393_vm8 = vmor %vm1391_vm7, %vm1392_vm6 }
 0x53e   : > { %v1354_v55 = vsel %vm1351_vm9, %v1353_v20, %v1349_v43  ;;  %v1963_v45 = vmul.f32 %v1945_v63, %v4483_v15  ;;  %v1947_v43 = vpop.permute.xlu0 %1946 }
 0x53f   : > { %v1404_v52 = vmul.f32 %v1354_v55, %v4811_v12  ;;  %vm1366_vm14 = vcmp.eq.f32.partialorder %v1365_v18, 8.507059e+37  ;;  %v1388_v12 = vsub.f32 1.0, %v1387_v13  ;;  %v1383_v30 = vor.u32 1.1754944e-38, %v1382_v57 }
 0x540   : > { %v1369_v8 = vsel %vm1366_vm14, %v1368_v39, %v1364_v61  ;;  %vm1396_vm9 = vcmp.eq.f32.partialorder %v1395_v29, 8.507059e+37  ;;  %v1964_v15 = vmul.f32 %v1947_v43, %v4489_v19 }
 0x541   : > { %v1405_v44 = vmul.f32 %v1369_v8, %v4834_v28  ;;  %v1389_v56 = vmul.f32 %v3976_v1, %v1388_v12  ;;  %v1397_v28 = vand.u32 2147483648, %v4937_v7  ;;  %v1949_v7 = vpop.permute.xlu1 %1948 }
 0x542   : > { %v1965_v3 = vmul.f32 %v1949_v7, %v4495_v23 }
 0x543   : > { %3648 = vmatmul.msk.f32.gmra.mxu0 %vm793_vm2, %v1195_v34  ;;  %v1375_v34 = vadd.f32 %v3974_v60, %v1374_v22  ;;  %v1390_v11 = vadd.f32 %v3976_v1, %v1389_v56  ;;  %v1398_v35 = vor.u32 1.1754944e-38, %v1397_v28 }
 0x544   : > { %3658 = vmatmul.msk.f32.gmra.mxu1 %vm602_vm4, %v1403_v42 }
 0x545   : > { %v1379_v59 = vsel %vm1378_vm1, %v3974_v60, %v1375_v34  ;;  %v1394_v60 = vsel %vm1393_vm8, %v3976_v1, %v1390_v11  ;;  %v1951_v55 = vpop.permute.xlu2 %1950 }
 0x546   : > { %v1384_v26 = vsel %vm1381_vm3, %v1383_v30, %v1379_v59  ;;  %v1399_v32 = vsel %vm1396_vm9, %v1398_v35, %v1394_v60  ;;  %v1966_v38 = vmul.f32 %v1951_v55, %v4501_v27  ;;  %v1953_v19 = vpop.permute.xlu0 %1952 }
 0x547   : > { %v1406_v42 = vmul.f32 %v1384_v26, %v4865_v53  ;;  %v1407_v20 = vmul.f32 %v1399_v32, %v4898_v2  ;;  %v1967_v2 = vmul.f32 %v1953_v19, %v4476_v9 }
 0x54b   : > { %3684 = vmatmul.msk.f32.vlgmr.msra.gmra.mxu0 %vm1968_vm10, %v1961_v33 }
 0x54c   : > { %3659 = vmatmul.msk.f32.gmra.mxu1 %vm602_vm4, %v1404_v52  ;;  %v1924_v52 = vpop.permute.xlu1 %1923 }
 0x553   : > { %3685 = vmatmul.msk.f32.gmra.mxu0 %vm1968_vm10, %v1962_v24 }
 0x554   : > { %3660 = vmatmul.msk.f32.gmra.mxu1 %vm602_vm4, %v1405_v44 }
 0x55b   : > { %3686 = vmatmul.msk.f32.gmra.mxu0 %vm1968_vm10, %v1963_v45 }
 0x55c   : > { %3661 = vmatmul.msk.f32.gmra.mxu1 %vm602_vm4, %v1406_v42 }
 0x562   : > { %v1834_v46 = vpop.f32.mrf.mxu2 }
 0x563   : > { %v1835_v53 = vadd.f32 %v1834_v46, %v4821_v62  ;;  %3687 = vmatmul.msk.f32.gmra.mxu0 %vm1968_vm10, %v1964_v15 }
 0x564   : > { %3662 = vmatmul.msk.f32.gmra.mxu1 %vm602_vm4, %v1407_v20 }
 0x565   : > { %3680 = vmatmul.msk.f32.gmra.mxu3 %vm602_vm4, %v1835_v53 }
 0x56b   : > { %3688 = vmatmul.msk.f32.gmra.mxu0 %vm1968_vm10, %v1965_v3 }
 0x573   : > { %3689 = vmatmul.msk.f32.gmra.mxu0 %vm1968_vm10, %v1966_v38  ;;  %v4067_v38 = vld [vmem:[%s4257_s25] sm:$0xff] }
 0x574   : > { %v1408_v19 = vperm.slane %v4067_v38, 6 }
 0x57b   : > { %3690 = vmatmul.msk.f32.gmra.mxu0 %vm1968_vm10, %v1967_v2 }
 0x580   : > { %v1837_v36 = vpop.f32.mrf.mxu2 }
 0x581   : > { %v1838_v1 = vadd.f32 %v1837_v36, %v4821_v62 }
 0x583   : > { %3681 = vmatmul.msk.f32.gmra.mxu3 %vm602_vm4, %v1838_v1 }
 0x58e   : > { %v1840_v33 = vpop.f32.mrf.mxu2 }
 0x58f   : > { %v1841_v23 = vadd.f32 %v1840_v33, %v4821_v62 }
 0x590   : > { %v5004_v17 = vpop.f32.mrf.mxu0 }
 0x591   : > { %3682 = vmatmul.msk.f32.gmra.mxu3 %vm602_vm4, %v1841_v23 }
 0x596   : > { %v1843_v47 = vpop.f32.mrf.mxu2 }
 0x597   : > { %v1844_v27 = vadd.f32 %v1843_v47, %v4821_v62 }
 0x598   : > { %v5011_v24 = vpop.f32.mrf.mxu0 }
 0x599   : > { %3683 = vmatmul.msk.f32.gmra.mxu3 %vm602_vm4, %v1844_v27 }
 0x5a0   : > { %v5020_v14 = vpop.f32.mrf.mxu0 }
 0x5a3   : > { %v4990_v18 = vpop.f32.mrf.mxu3 }
 0x5a4   : > { %v1926_v9 = vadd.f32 %v1924_v52, %v4990_v18 }
 0x5a6   : > { %2049 = vrot.lane.b32.xlu2 %v1926_v9, %s4143_s16 }
 0x5a8   : > { %v5026_v30 = vpop.f32.mrf.mxu0 }
 0x5b0   : > { %v5030_v63 = vpop.f32.mrf.mxu0 }
 0x5b1   : > { %v1463_v28 = vpop.f32.mrf.mxu1 }
 0x5b7   : > { %v4994_v61 = vpop.f32.mrf.mxu3 }
 0x5b8   : > { %v1927_v22 = vadd.f32 %v1924_v52, %v4994_v61  ;;  %v5034_v26 = vpop.f32.mrf.mxu0 }
 0x5b9   : > { %v1466_v29 = vpop.f32.mrf.mxu1 }
 0x5ba   : > { %2051 = vrot.lane.b32.xlu0 %v1927_v22, %s4143_s16  ;;  %v1467_v9 = vadd.f32 %v1466_v29, %v1408_v19 }
 0x5bf   : > { %v4998_v13 = vpop.f32.mrf.mxu3 }
 0x5c0   : > { %v1928_v39 = vadd.f32 %v1924_v52, %v4998_v13  ;;  %v5036_v11 = vpop.f32.mrf.mxu0 }
 0x5c1   : > { %v1469_v35 = vpop.f32.mrf.mxu1 }
 0x5c2   : > { %2053 = vrot.lane.b32.xlu1 %v1928_v39, %s4143_s16 }
 0x5c8   : > { %v2007_v45 = vpop.f32.mrf.mxu0 }
 0x5c9   : > { %v1472_v32 = vpop.f32.mrf.mxu1  ;;  %v2028_v47 = vmul.f32 0.25, %v2007_v45 }
 0x5d0   : > { %v2010_v42 = vpop.f32.mrf.mxu0 }
 0x5d1   : > { %v1475_v46 = vpop.f32.mrf.mxu1  ;;  %v2029_v36 = vmul.f32 0.25, %v2010_v42 }
 0x5d2   : > { %v1476_v22 = vadd.f32 %v1475_v46, %v1408_v19 }
 0x5d8   : > { %v2013_v60 = vpop.f32.mrf.mxu0 }
 0x5d9   : > { %v1478_v7 = vpop.f32.mrf.mxu1  ;;  %v2030_v39 = vmul.f32 0.25, %v2013_v60 }
 0x5da   : > { %v1479_v1 = vadd.f32 %v1478_v7, %v1408_v19 }
 0x5e0   : > { %v2016_v43 = vpop.f32.mrf.mxu0 }
 0x5e1   : > { %v1481_v0 = vpop.f32.mrf.mxu1 }
 0x5e2   : > { %v1482_v7 = vadd.f32 %v1481_v0, %v1408_v19 }
 0x5e8   : > { %v5002_v62 = vpop.f32.mrf.mxu3  ;;  %v2019_v15 = vpop.f32.mrf.mxu0 }
 0x5e9   : > { %v1929_v12 = vadd.f32 %v1924_v52, %v5002_v62  ;;  %v2032_v33 = vmul.f32 0.25, %v2019_v15 }
 0x5f0   : > { %v2022_v53 = vpop.f32.mrf.mxu0 }
 0x5f1   : > { %v2033_v2 = vmul.f32 0.25, %v2022_v53  ;;  %v1473_v53 = vadd.f32 %v1472_v32, %v1408_v19 }
 0x5f8   : > { %v2025_v23 = vpop.f32.mrf.mxu0 }
 0x600   : > { %v2050_v20 = vpop.permute.xlu2 %2049 }
 0x606   : > { %v5006_v8 = vpop.f32.mrf.mxu3 }
 0x607   : > { %v1930_v34 = vadd.f32 %v1924_v52, %v5006_v8 }
 0x609   : > { %2057 = vrot.lane.b32.xlu2 %v1930_v34, %s4143_s16  ;;  %v2040_v34 = vadd.f32 %v2033_v2, %v1479_v1 }
 0x611   : > { %2055 = vrot.lane.b32.xlu2 %v1929_v12, %s4143_s16  ;;  %v1464_v12 = vadd.f32 %v1463_v28, %v1408_v19 }
 0x613   : > { %v2035_v42 = vadd.f32 %v2028_v47, %v1464_v12 }
 0x614   : > { %v5014_v57 = vpop.f32.mrf.mxu3 }
 0x615   : > { %5664 = vst [vmem:[#allocation35_spill] sm:$0xff] %v5014_v57  ;;  %v1931_v44 = vadd.f32 %v1924_v52, %v5014_v57  ;;  %v2070_v46 = vadd.f32 %v2050_v20, %v2035_v42 }
 0x617   : > { %2059 = vrot.lane.b32.xlu0 %v1931_v44, %s4143_s16  ;;  %v1470_v44 = vadd.f32 %v1469_v35, %v1408_v19  ;;  %v2078_v0 = vsel %vm2077_vm11, %v2070_v46, -inf }
 0x619   : > { %2250 = vrot.lane.b32.xlu2 %v4581_v21, %s4146_s17  ;;  %v2039_v21 = vadd.f32 %v2032_v33, %v1476_v22  ;;  %v2037_v57 = vadd.f32 %v2030_v39, %v1470_v44 }
 0x61c   : > { %v5022_v59 = vpop.f32.mrf.mxu3 }
 0x61d   : > { %v1932_v56 = vadd.f32 %v1924_v52, %v5022_v59 }
 0x61f   : > { %2061 = vrot.lane.b32.xlu1 %v1932_v56, %s4143_s16  ;;  %v2031_v56 = vmul.f32 0.25, %v2016_v43 }
 0x621   : > { %v2038_v29 = vadd.f32 %v2031_v56, %v1473_v53 }
 0x627   : > { %2244 = vrot.lane.b32.xlu1 %v4541_v54, %s4146_s17  ;;  %v2034_v54 = vmul.f32 0.25, %v2025_v23 }
 0x629   : > { %v2041_v35 = vadd.f32 %v2034_v54, %v1482_v7 }
 0x62c   : > { %v2052_v3 = vpop.permute.xlu0 %2051 }
 0x62f   : > { %2246 = vrot.lane.b32.xlu1 %v4529_v49, %s4146_s17  ;;  %v2036_v49 = vadd.f32 %v2029_v36, %v1467_v9 }
 0x631   : > { %v2071_v15 = vadd.f32 %v2052_v3, %v2036_v49 }
 0x633   : > { %v2079_v2 = vsel %vm2077_vm11, %v2071_v15, -inf }
 0x634   : > { %v2054_v27 = vpop.permute.xlu1 %2053 }
 0x635   : > { %v2072_v60 = vadd.f32 %v2054_v27, %v2037_v57 }
 0x637   : > { %v2080_v49 = vsel %vm2077_vm11, %v2072_v60, -inf }
 0x663   : > { %v2058_v55 = vpop.permute.xlu2 %2057 }
 0x664   : > { %v2074_v45 = vadd.f32 %v2058_v55, %v2039_v21 }
 0x666   : > { %v2082_v36 = vsel %vm2077_vm11, %v2074_v45, -inf }
 0x667   : > { %v2083_v3 = vmax.f32 %v2078_v0, %v2082_v36  ;;  %v4068_v0 = vld [vmem:[%s5592_s4] sm:$0xff] }
 0x66b   : > { %v2056_v58 = vpop.permute.xlu2 %2055 }
 0x66c   : > { %v2073_v1 = vadd.f32 %v2056_v58, %v2038_v29 }
 0x66e   : > { %v2081_v57 = vsel %vm2077_vm11, %v2073_v1, -inf }
 0x689   : > { %v2060_v52 = vpop.permute.xlu0 %2059 }
 0x68a   : > { %v2075_v38 = vadd.f32 %v2060_v52, %v2040_v34 }
 0x68c   : > { %v2084_v28 = vsel %vm2077_vm11, %v2075_v38, -inf }
 0x68d   : > { %v2085_v33 = vmax.f32 %v2079_v2, %v2084_v28 }
 0x68f   : > { %v2088_v55 = vmax.f32 %v2083_v3, %v2085_v33  ;;  %v4071_v3 = vld [vmem:[%s5592_s4 + $0x18] sm:$0xff] }
 0x691   : > { %v2062_v43 = vpop.permute.xlu1 %2061 }
 0x692   : > { %v2076_v32 = vadd.f32 %v2062_v43, %v2041_v35 }
 0x694   : > { %v2086_v21 = vsel %vm2077_vm11, %v2076_v32, -inf }
 0x695   : > { %v2087_v20 = vmax.f32 %v2080_v49, %v2086_v21  ;;  %v4069_v49 = vld [vmem:[%s5592_s4 + $0x8] sm:$0xff]  ;;  %v4070_v21 = vld [vmem:[%s5592_s4 + $0x10] sm:$0xff] }
 0x697   : > { %v2089_v54 = vmax.f32 %v2087_v20, %v2081_v57  ;;  %v4072_v20 = vld [vmem:[%s5592_s4 + $0x20] sm:$0xff]  ;;  %v4073_v57 = vld [vmem:[%s5592_s4 + $0x28] sm:$0xff] }
 0x699   : > { %v2090_v19 = vmax.f32 %v2088_v55, %v2089_v54  ;;  %v4074_v55 = vld [vmem:[%s5592_s4 + $0x30] sm:$0xff]  ;;  %v601_v54 = vld [vmem:[%s5595_s7] sm:$0xf] }
 0x69b   : > { %v2091_v23 = vrot.slane %v2090_v19, 4 }
 0x69d   : > { %v2092_v47 = vmax.f32 %v2090_v19, %v2091_v23 }
 0x69f   : > { %v2093_v27 = vrot.slane %v2092_v47, 2 }
 0x6a1   : > { %v2094_v52 = vmax.f32 %v2092_v47, %v2093_v27 }
 0x6a3   : > { %v2095_v58 = vrot.slane %v2094_v52, 1 }
 0x6a5   : > { %v2096_v9 = vmax.f32 %v2094_v52, %v2095_v58 }
 0x6a7   : > { %v2103_v22 = vsub.f32 %v2076_v32, %v2096_v9  ;;  %v2102_v39 = vsub.f32 %v2075_v38, %v2096_v9  ;;  %v2101_v34 = vsub.f32 %v2074_v45, %v2096_v9  ;;  %v2100_v56 = vsub.f32 %v2073_v1, %v2096_v9  ;;  %v592_v1 = vld [vmem:[%s5593_s5] sm:$0xff] }
 0x6a8   : > { %v2099_v42 = vsub.f32 %v2072_v60, %v2096_v9  ;;  %v2098_v29 = vsub.f32 %v2071_v15, %v2096_v9  ;;  %v2097_v35 = vsub.f32 %v2070_v46, %v2096_v9 }
 0x6a9   : > { %v2116_v12 = vmul.f32 1.442695, %v2103_v22  ;;  %v2114_v44 = vmul.f32 1.442695, %v2102_v39  ;;  %v2112_v53 = vmul.f32 1.442695, %v2101_v34 }
 0x6aa   : > { %v2110_v7 = vmul.f32 1.442695, %v2100_v56  ;;  %v2108_v28 = vmul.f32 1.442695, %v2099_v42  ;;  %v2106_v2 = vmul.f32 1.442695, %v2098_v29 }
 0x6ab   : > { %3977 = vpow2.f32 %v2116_v12  ;;  %v2104_v45 = vmul.f32 1.442695, %v2097_v35 }
 0x6ac   : > { %3979 = vpow2.f32 %v2114_v44 }
 0x6ad   : > { %3981 = vpow2.f32 %v2112_v53 }
 0x6ae   : > { %3983 = vpow2.f32 %v2110_v7 }
 0x6af   : > { %3985 = vpow2.f32 %v2108_v28 }
 0x6b0   : > { %3987 = vpow2.f32 %v2106_v2 }
 0x6b1   : > { %v5046_v43 = vpop.eup %3977  ;;  %3989 = vpow2.f32 %v2104_v45 }
 0x6b2   : > { %2131 = vmatpush.msrb.mxu1 %v5046_v43  ;;  %v5049_v38 = vpop.eup %3979 }
 0x6b3   : > { %v5052_v36 = vpop.eup %3981 }
 0x6b4   : > { %2132 = vmatpush.msrb.mxu1 %v5049_v38  ;;  %v3984_v15 = vpop.eup %3983 }
 0x6b5   : > { %v3986_v46 = vpop.eup %3985 }
 0x6b6   : > { %2133 = vmatpush.msrb.mxu1 %v5052_v36  ;;  %v3988_v60 = vpop.eup %3987 }
 0x6b7   : > { %v3990_v32 = vpop.eup %3989 }
 0x6b8   : > { %2134 = vmatpush.msrb.mxu1 %v3984_v15 }
 0x6ba   : > { %2135 = vmatpush.msrb.mxu1 %v3986_v46 }
 0x6bc   : > { %2136 = vmatpush.msrb.mxu1 %v3988_v60 }
 0x6be   : > { %2137 = vmatpush.msrb.mxu1 %v3990_v32 }
 0x6bf   : > { %3691 = vmatmul.msk.f32.vlgmr.msrb.gmra.mxu1 %vm2118_vm12, %v592_v1 }
 0x73c   : > { %v2139_v33 = vpop.f32.mrf.mxu1 }
 0x73d   : > { %2157 = vmatpush.msra.mxu2 %v2139_v33 }
 0x73e   : > { %3692 = vmatmul.msk.f32.vlgmr.msra.gmra.mxu2 %vm793_vm2, %v4068_v0 }
 0x73f   : > { %3734 = vmatpush.msk.msrb.mxu2 %vm3121_vm13, %v601_v54  ;;  %v4077_v54 = vld [vmem:[%s4242_s15 + $0x10] sm:$0xff] }
 0x746   : > { %3693 = vmatmul.msk.f32.gmra.mxu2 %vm793_vm2, %v4069_v49 }
 0x74e   : > { %3694 = vmatmul.msk.f32.gmra.mxu2 %vm793_vm2, %v4070_v21 }
 0x756   : > { %3695 = vmatmul.msk.f32.gmra.mxu2 %vm793_vm2, %v4071_v3  ;;  %v4075_v3 = vld [vmem:[%s4242_s15 + $0x30] sm:$0xff] }
 0x75e   : > { %3696 = vmatmul.msk.f32.gmra.mxu2 %vm793_vm2, %v4072_v20  ;;  %v4076_v20 = vld [vmem:[%s4242_s15 + $0x20] sm:$0xff] }
 0x766   : > { %3697 = vmatmul.msk.f32.gmra.mxu2 %vm793_vm2, %v4073_v57  ;;  %v3814_v57 = vpack.i.bf16 %v4076_v20, %v4075_v3 }
 0x76e   : > { %3698 = vmatmul.msk.f32.gmra.mxu2 %vm793_vm2, %v4074_v55 }
 0x7c1   : > { %v2159_v19 = vpop.f32.mrf.mxu2 }
 0x7c2   : > { %v2160_v23 = vadd.f32 1e-08, %v2159_v19  ;;  %v4078_v19 = vld [vmem:[%s4242_s15] sm:$0xff] }
 0x7c4   : > { %3991 = vrcp.f32 %v2160_v23 }
 0x7c9   : > { %v2162_v47 = vpop.f32.mrf.mxu2 }
 0x7ca   : > { %v3992_v27 = vpop.eup %3991  ;;  %v2163_v52 = vadd.f32 1e-08, %v2162_v47  ;;  %v3829_v47 = vpack.i.bf16 %v4745_v37, %v4076_v20  ;;  %v3839_v37 = vpack.i.bf16 %v4758_v40, %v4078_v19  ;;  %v5150_v40 = vld [vmem:[%s4247_s18 + $0x38] sm:$0xff] }
 0x7cb   : > { %v2187_v58 = vmul.f32 %v3992_v27, %v3990_v32 }
 0x7cc   : > { %3993 = vrcp.f32 %v2163_v52  ;;  %v3834_v52 = vpack.i.bf16 %v4761_v16, %v4077_v54  ;;  %v5139_v16 = vld [vmem:[%s4247_s18] sm:$0xff] }
 0x7cd   : > { %3735 = vmatmul.msk.f32.vlgmr.msrb.gmra.mxu2 %vm2077_vm11, %v2187_v58  ;;  %v2194_v9 = vsel %vm2077_vm11, %v2187_v58, 0.0  ;;  %v4079_v58 = vld [vmem:[%s4242_s15 + $0x38] sm:$0xff] }
 0x7ce   : > { %2195 = vadd.xlane.f32.xlu0 %v2194_v9  ;;  %v3824_v9 = vpack.i.bf16 %v4079_v58, %v4075_v3  ;;  %v5667_v58 = vld [vmem:[#allocation26_spill] sm:$0xff] }
 0x7d1   : > { %v2165_v22 = vpop.f32.mrf.mxu2 }
 0x7d2   : > { %v3994_v39 = vpop.eup %3993  ;;  %v2166_v34 = vadd.f32 1e-08, %v2165_v22  ;;  %v5123_v22 = vld [vmem:[%s4247_s18 + $0x20] sm:$0xff] }
 0x7d3   : > { %v2188_v12 = vmul.f32 %v3994_v39, %v3988_v60  ;;  %v5126_v39 = vld [vmem:[%s4247_s18 + $0x28] sm:$0xff] }
 0x7d4   : > { %3995 = vrcp.f32 %v2166_v34  ;;  %v3849_v34 = vpack.i.bf16 %v5123_v22, %v5126_v39 }
 0x7d5   : > { %3736 = vmatmul.msk.f32.gmra.mxu2 %vm2077_vm11, %v2188_v12  ;;  %v2197_v44 = vsel %vm2077_vm11, %v2188_v12, 0.0  ;;  %v5132_v12 = vld [vmem:[%s4247_s18 + $0x10] sm:$0xff] }
 0x7d6   : > { %2198 = vadd.xlane.f32.xlu2 %v2197_v44  ;;  %v5135_v44 = vld [vmem:[%s4247_s18 + $0x18] sm:$0xff] }
 0x7d9   : > { %v2168_v56 = vpop.f32.mrf.mxu2 }
 0x7da   : > { %v3996_v53 = vpop.eup %3995  ;;  %v2169_v42 = vadd.f32 1e-08, %v2168_v56  ;;  %v5142_v56 = vld [vmem:[%s4247_s18 + $0x8] sm:$0xff] }
 0x7db   : > { %v2189_v7 = vmul.f32 %v3996_v53, %v3986_v46  ;;  %v3854_v53 = vpack.i.bf16 %v5132_v12, %v5135_v44 }
 0x7dc   : > { %3997 = vrcp.f32 %v2169_v42  ;;  %v5147_v42 = vld [vmem:[%s4247_s18 + $0x30] sm:$0xff] }
 0x7dd   : > { %3737 = vmatmul.msk.f32.gmra.mxu2 %vm2077_vm11, %v2189_v7  ;;  %v2200_v29 = vsel %vm2077_vm11, %v2189_v7, 0.0  ;;  %v3859_v7 = vpack.i.bf16 %v5139_v16, %v5142_v56 }
 0x7de   : > { %2201 = vadd.xlane.f32.xlu1 %v2200_v29  ;;  %v3844_v29 = vpack.i.bf16 %v5147_v42, %v5150_v40 }
 0x7e1   : > { %v2171_v28 = vpop.f32.mrf.mxu2 }
 0x7e2   : > { %v3998_v35 = vpop.eup %3997  ;;  %v2172_v2 = vadd.f32 1e-08, %v2171_v28  ;;  %2248 = vrot.lane.b32.xlu0 %v4532_v50, %s4146_s17  ;;  %v2850_v28 = vperm.slane %v4798_v48, 6 }
 0x7e3   : > { %v2190_v45 = vmul.f32 %v3998_v35, %v3984_v15  ;;  %v2245_v35 = vpop.permute.xlu1 %2244 }
 0x7e4   : > { %3999 = vrcp.f32 %v2172_v2  ;;  %v5164_v2 = vperm.slane %v4798_v48, 2 }
 0x7e5   : > { %3738 = vmatmul.msk.f32.gmra.mxu2 %vm2077_vm11, %v2190_v45  ;;  %v2203_v46 = vsel %vm2077_vm11, %v2190_v45, 0.0  ;;  %v2251_v45 = vpop.permute.xlu2 %2250 }
 0x7e6   : > { %2204 = vadd.xlane.f32.xlu2 %v2203_v46 }
 0x7e9   : > { %v2174_v60 = vpop.f32.mrf.mxu2 }
 0x7ea   : > { %v4000_v1 = vpop.eup %3999  ;;  %v2175_v32 = vadd.f32 1e-08, %v2174_v60 }
 0x7eb   : > { %v2191_v33 = vmul.f32 %v4000_v1, %v5052_v36  ;;  %v2247_v48 = vpop.permute.xlu1 %2246 }
 0x7ec   : > { %4001 = vrcp.f32 %v2175_v32 }
 0x7ed   : > { %3739 = vmatmul.msk.f32.gmra.mxu2 %vm2077_vm11, %v2191_v33  ;;  %v2206_v23 = vsel %vm2077_vm11, %v2191_v33, 0.0 }
 0x7f1   : > { %v2177_v0 = vpop.f32.mrf.mxu2 }
 0x7f2   : > { %v4002_v49 = vpop.eup %4001  ;;  %v2178_v15 = vadd.f32 1e-08, %v2177_v0 }
 0x7f3   : > { %v2192_v21 = vmul.f32 %v4002_v49, %v5049_v38  ;;  %v3819_v38 = vpack.i.bf16 %v4078_v19, %v4077_v54 }
 0x7f4   : > { %4003 = vrcp.f32 %v2178_v15 }
 0x7f5   : > { %3740 = vmatmul.msk.f32.gmra.mxu2 %vm2077_vm11, %v2192_v21  ;;  %v2209_v27 = vsel %vm2077_vm11, %v2192_v21, 0.0 }
 0x7f7   : > { %3815 = vrot.lane.b32.xlu1 %v3814_v57, %s4147_s20 }
 0x7fa   : > { %v4004_v55 = vpop.eup %4003 }
 0x7fb   : > { %v2193_v36 = vmul.f32 %v4004_v55, %v5046_v43 }
 0x7fd   : > { %3741 = vmatmul.msk.f32.gmra.mxu2 %vm2077_vm11, %v2193_v36  ;;  %v2212_v43 = vsel %vm2077_vm11, %v2193_v36, 0.0  ;;  %v5665_v36 = vld [vmem:[#allocation25_spill] sm:$0xff] }
 0x7fe   : > { %2252 = vrot.lane.b32.xlu2 %v4567_v5, %s4146_s17 }
 0x806   : > { %3820 = vrot.lane.b32.xlu2 %v3819_v38, %s4147_s20 }
 0x80c   : > { %2207 = vadd.xlane.f32.xlu0 %v2206_v23 }
 0x80e   : > { %2254 = vrot.lane.b32.xlu2 %v4588_v31, %s4146_s17 }
 0x814   : > { %2213 = vadd.xlane.f32.xlu0 %v2212_v43 }
 0x816   : > { %2256 = vrot.lane.b32.xlu2 %v4574_v10, %s4146_s17  ;;  %s4149_s17 = smov 75  }
 0x81e   : > { %3830 = vrot.lane.b32.xlu2 %v3829_v47, %s4148_s23  ;;  %v5666_v47 = vld [vmem:[#allocation24_spill] sm:$0xff] }
 0x821   : > { %2210 = vadd.xlane.f32.xlu1 %v2209_v27 }
 0x826   : > { %3835 = vrot.lane.b32.xlu2 %v3834_v52, %s4148_s23 }
 0x828   : > { %3825 = vrot.lane.b32.xlu0 %v3824_v9, %s4148_s23 }
 0x82e   : > { %3840 = vrot.lane.b32.xlu2 %v3839_v37, %s4148_s23 }
 0x830   : > { %3850 = vrot.lane.b32.xlu0 %v3849_v34, %s4142_s29 }
 0x836   : > { %3855 = vrot.lane.b32.xlu2 %v3854_v53, %s4142_s29 }
 0x838   : > { %3860 = vrot.lane.b32.xlu0 %v3859_v7, %s4142_s29 }
 0x83a   : > { %3845 = vrot.lane.b32.xlu1 %v3844_v29, %s4142_s29 }
 0x83e   : > { %2852 = vrot.lane.b32.xlu2 %v2850_v28, %s4142_s29 }
 0x840   : > { %2981 = vrot.lane.b32.xlu0 %v5004_v17, %s4149_s17 }
 0x841   : > { %v2196_v46 = vpop.xlane.xlu0 %2195 }
 0x842   : > { %v2215_v60 = vmul.f32 0.25, %v2196_v46  ;;  %2993 = vrot.lane.b32.xlu1 %v5036_v11, %s4149_s17 }
 0x844   : > { %v2223_v1 = vmul.f32 %v5164_v2, %v2215_v60 }
 0x846   : > { %v2230_v32 = vadd.f32 %v2223_v1, %v4990_v18  ;;  %2991 = vrot.lane.b32.xlu2 %v5034_v26, %s4149_s17 }
 0x848   : > { %v2265_v33 = vadd.f32 %v2245_v35, %v2230_v32  ;;  %2965 = vrot.lane.b32.xlu0 %v5036_v11, %s4150_s24 }
 0x849   : > { %v2199_v0 = vpop.xlane.xlu2 %2198 }
 0x84a   : > { %v2272_v49 = vadd.f32 %v2265_v33, %v4593_v41  ;;  %v2216_v15 = vmul.f32 0.25, %v2199_v0  ;;  %2963 = vrot.lane.b32.xlu1 %v5034_v26, %s4150_s24  ;;  %v5668_v33 = vld [vmem:[#allocation27_spill] sm:$0xff] }
 0x84c   : > { %v5178_v21 = vadd.f32 %v2272_v49, %v4596_v25  ;;  %v2224_v18 = vmul.f32 %v5164_v2, %v2216_v15 }
 0x84e   : > { %v3699_v3 = vmul.f32 -1.442695, %v5178_v21  ;;  %v2231_v20 = vadd.f32 %v2224_v18, %v4994_v61  ;;  %2989 = vrot.lane.b32.xlu2 %v5030_v63, %s4149_s17 }
 0x850   : > { %4005 = vpow2.f32 %v3699_v3  ;;  %v2266_v11 = vadd.f32 %v2247_v48, %v2231_v20 }
 0x851   : > { %v2202_v57 = vpop.xlane.xlu1 %2201 }
 0x852   : > { %v2273_v41 = vadd.f32 %v2266_v11, %v4598_v51  ;;  %v2217_v55 = vmul.f32 0.25, %v2202_v57 }
 0x854   : > { %v2225_v26 = vmul.f32 %v5164_v2, %v2217_v55  ;;  %v5188_v25 = vadd.f32 %v2273_v41, %v5665_v36  ;;  %v2249_v23 = vpop.permute.xlu0 %2248 }
 0x856   : > { %v4006_v54 = vpop.eup %4005  ;;  %v2232_v19 = vadd.f32 %v2225_v26, %v4998_v13  ;;  %2987 = vrot.lane.b32.xlu2 %v5026_v30, %s4149_s17  ;;  %v3700_v61 = vmul.f32 -1.442695, %v5188_v25 }
 0x857   : > { %v2307_v38 = vadd.f32 1.0, %v4006_v54 }
 0x858   : > { %v2267_v43 = vadd.f32 %v2249_v23, %v2232_v19  ;;  %4007 = vpow2.f32 %v3700_v61 }
 0x859   : > { %4009 = vrcp.f32 %v2307_v38  ;;  %v2205_v51 = vpop.xlane.xlu2 %2204  ;;  %v2325_v18 = vand.u32 2147483648, %v2307_v38  ;;  %vm2319_vm14 = vweird.f32 %v2307_v38  ;;  %v2323_v11 = vand.u32 2147483647, %v2307_v38 }
 0x85a   : > { %v2274_v27 = vadd.f32 %v2267_v43, %v5666_v47  ;;  %v2218_v52 = vmul.f32 0.25, %v2205_v51 }
 0x85b   : > { %v2326_v36 = vor.u32 1.1754944e-38, %v2325_v18  ;;  %vm2324_vm0 = vcmp.eq.f32.partialorder %v2323_v11, 8.507059e+37 }
 0x85c   : > { %v5196_v9 = vadd.f32 %v2274_v27, %v5667_v58  ;;  %v2226_v37 = vmul.f32 %v5164_v2, %v2218_v52 }
 0x85e   : > { %v4008_v13 = vpop.eup %4007  ;;  %v3701_v34 = vmul.f32 -1.442695, %v5196_v9  ;;  %v2233_v53 = vadd.f32 %v2226_v37, %v5002_v62  ;;  %2985 = vrot.lane.b32.xlu2 %v5020_v14, %s4149_s17 }
 0x85f   : > { %v4010_v7 = vpop.eup %4009  ;;  %v2308_v29 = vadd.f32 1.0, %v4008_v13 }
 0x860   : > { %4011 = vpow2.f32 %v3701_v34  ;;  %v2268_v28 = vadd.f32 %v2251_v45, %v2233_v53  ;;  %v2315_v35 = vmul.f32 %v4010_v7, %v2307_v38  ;;  %vm2320_vm2 = vweird.f32 %v4010_v7 }
 0x861   : > { %v5203_v46 = vpop.permute.xlu2 %2252  ;;  %4013 = vrcp.f32 %v2308_v29  ;;  %vm2321_vm15 = vmor %vm2319_vm14, %vm2320_vm2  ;;  %v2340_v52 = vand.u32 2147483648, %v2308_v29  ;;  %vm2334_vm3 = vweird.f32 %v2308_v29  ;;  %v2338_v13 = vand.u32 2147483647, %v2308_v29 }
 0x862   : > { %v2275_v60 = vadd.f32 %v2268_v28, %v4624_v4  ;;  %v2316_v1 = vsub.f32 1.0, %v2315_v35 }
 0x863   : > { %vm2339_vm7 = vcmp.eq.f32.partialorder %v2338_v13, 8.507059e+37 }
 0x864   : > { %v2317_v32 = vmul.f32 %v4010_v7, %v2316_v1  ;;  %v5207_v48 = vadd.f32 %v2275_v60, %v5668_v33 }
 0x866   : > { %v4012_v0 = vpop.eup %4011  ;;  %2983 = vrot.lane.b32.xlu2 %v5011_v24, %s4149_s17  ;;  %v3702_v62 = vmul.f32 -1.442695, %v5207_v48  ;;  %v2318_v45 = vadd.f32 %v4010_v7, %v2317_v32 }
 0x867   : > { %v4014_v49 = vpop.eup %4013  ;;  %v2309_v15 = vadd.f32 1.0, %v4012_v0 }
 0x868   : > { %v2330_v3 = vmul.f32 %v4014_v49, %v2308_v29  ;;  %4015 = vpow2.f32 %v3702_v62  ;;  %v2322_v41 = vsel %vm2321_vm15, %v4010_v7, %v2318_v45  ;;  %vm2335_vm1 = vweird.f32 %v4014_v49 }
 0x869   : > { %4017 = vrcp.f32 %v2309_v15  ;;  %v3816_v4 = vpop.permute.xlu1 %3815  ;;  %v3821_v20 = vpop.permute.xlu2 %3820  ;;  %v2327_v23 = vsel %vm2324_vm0, %v2326_v36, %v2322_v41  ;;  %vm2336_vm6 = vmor %vm2334_vm3, %vm2335_vm1  ;;  %v2341_v7 = vor.u32 1.1754944e-38, %v2340_v52  ;;  %v2355_v1 = vand.u32 2147483648, %v2309_v15 }
 0x86a   : > { %v3817_v57 = vunpack.i.l.bf16 %v3816_v4  ;;  %v3818_v55 = vunpack.i.h.bf16 %v3816_v4  ;;  %v3822_v26 = vunpack.i.l.bf16 %v3821_v20  ;;  %v2331_v54 = vsub.f32 1.0, %v2330_v3 }
 0x86b   : > { %v3823_v61 = vunpack.i.h.bf16 %v3821_v20  ;;  %v2419_v37 = vmul.f32 %v2327_v23, %v5178_v21  ;;  %vm2349_vm9 = vweird.f32 %v2309_v15  ;;  %v2353_v21 = vand.u32 2147483647, %v2309_v15  ;;  %v5669_v23 = vld [vmem:[#allocation31_spill] sm:$0xff] }
 0x86c   : > { %2472 = vmatpush.msrb.mxu3 %v3817_v57  ;;  %v2332_v43 = vmul.f32 %v4014_v49, %v2331_v54 }
 0x86d   : > { %vm2354_vm2 = vcmp.eq.f32.partialorder %v2353_v21, 8.507059e+37 }
 0x86e   : > { %v4016_v19 = vpop.eup %4015  ;;  %2473 = vmatpush.msrb.mxu3 %v3818_v55  ;;  %2957 = vrot.lane.b32.xlu2 %v5020_v14, %s4150_s24  ;;  %v2333_v27 = vadd.f32 %v4014_v49, %v2332_v43 }
 0x86f   : > { %v4018_v51 = vpop.eup %4017  ;;  %v2310_v38 = vadd.f32 1.0, %v4016_v19 }
 0x870   : > { %v2345_v47 = vmul.f32 %v4018_v51, %v2309_v15  ;;  %2474 = vmatpush.msrb.mxu3 %v3822_v26  ;;  %v2337_v14 = vsel %vm2336_vm6, %v4014_v49, %v2333_v27  ;;  %vm2350_vm8 = vweird.f32 %v4018_v51  ;;  %v2356_v49 = vor.u32 1.1754944e-38, %v2355_v1  ;;  %v5670_v27 = vld [vmem:[#allocation30_spill] sm:$0xff] }
 0x871   : > { %v5214_v58 = vpop.permute.xlu2 %2254  ;;  %4019 = vrcp.f32 %v2310_v38  ;;  %v2342_v28 = vsel %vm2339_vm7, %v2341_v7, %v2337_v14  ;;  %vm2351_vm13 = vmor %vm2349_vm9, %vm2350_vm8  ;;  %v2370_v11 = vand.u32 2147483648, %v2310_v38  ;;  %vm2364_vm15 = vweird.f32 %v2310_v38  ;;  %v5671_v14 = vld [vmem:[#allocation34_spill] sm:$0xff] }
 0x872   : > { %v2346_v34 = vsub.f32 1.0, %v2345_v47  ;;  %2475 = vmatpush.msrb.mxu3 %v3823_v61  ;;  %v2420_v29 = vmul.f32 %v2342_v28, %v5188_v25  ;;  %v2368_v25 = vand.u32 2147483647, %v2310_v38 }
 0x873   : > { %3706 = vmatmul.msk.f32.vlgmr.msrb.gmra.mxu3 %vm602_vm4, %v2419_v37  ;;  %v2371_v36 = vor.u32 1.1754944e-38, %v2370_v11 }
 0x874   : > { %v2347_v53 = vmul.f32 %v4018_v51, %v2346_v34  ;;  %vm2369_vm1 = vcmp.eq.f32.partialorder %v2368_v25, 8.507059e+37 }
 0x876   : > { %v2348_v60 = vadd.f32 %v4018_v51, %v2347_v53 }
 0x877   : > { %v4020_v35 = vpop.eup %4019 }
 0x878   : > { %v2360_v32 = vmul.f32 %v4020_v35, %v2310_v38  ;;  %v2352_v62 = vsel %vm2351_vm13, %v4018_v51, %v2348_v60  ;;  %vm2365_vm14 = vweird.f32 %v4020_v35 }
 0x879   : > { %v2257_v33 = vpop.permute.xlu2 %2256  ;;  %v2357_v18 = vsel %vm2354_vm2, %v2356_v49, %v2352_v62  ;;  %vm2366_vm0 = vmor %vm2364_vm15, %vm2365_vm14 }
 0x87a   : > { %v2361_v0 = vsub.f32 1.0, %v2360_v32  ;;  %v2421_v57 = vmul.f32 %v2357_v18, %v5196_v9 }
 0x87b   : > { %3707 = vmatmul.msk.f32.gmra.mxu3 %vm602_vm4, %v2420_v29  ;;  %v5673_v29 = vld [vmem:[#allocation32_spill] sm:$0xff] }
 0x87c   : > { %v2362_v45 = vmul.f32 %v4020_v35, %v2361_v0 }
 0x87e   : > { %v2363_v4 = vadd.f32 %v4020_v35, %v2362_v45  ;;  %v5674_v45 = vld [vmem:[#allocation33_spill] sm:$0xff] }
 0x87f   : > { %v2208_v3 = vpop.xlane.xlu0 %2207 }
 0x880   : > { %v2219_v20 = vmul.f32 0.25, %v2208_v3  ;;  %v2367_v55 = vsel %vm2366_vm0, %v4020_v35, %v2363_v4 }
 0x881   : > { %v5221_v15 = vpop.permute.xlu2 %3830  ;;  %v2372_v19 = vsel %vm2369_vm1, %v2371_v36, %v2367_v55  ;;  %vm2515_vm1 = vcmask 228352  }
 0x882   : > { %v2227_v41 = vmul.f32 %v5164_v2, %v2219_v20  ;;  %v2422_v38 = vmul.f32 %v2372_v19, %v5207_v48 }
 0x883   : > { %3708 = vmatmul.msk.f32.gmra.mxu3 %vm602_vm4, %v2421_v57 }
 0x884   : > { %v2234_v26 = vadd.f32 %v2227_v41, %v5006_v8 }
 0x886   : > { %v2269_v54 = vadd.f32 %v5203_v46, %v2234_v26 }
 0x887   : > { %v2214_v61 = vpop.xlane.xlu0 %2213 }
 0x888   : > { %v2276_v9 = vadd.f32 %v2269_v54, %v5669_v23  ;;  %v2221_v43 = vmul.f32 0.25, %v2214_v61 }
 0x889   : > { %v5228_v51 = vpop.permute.xlu2 %3835 }
 0x88a   : > { %v2229_v47 = vmul.f32 %v5164_v2, %v2221_v43  ;;  %v2283_v52 = vadd.f32 %v2276_v9, %v5670_v27 }
 0x88b   : > { %3709 = vmatmul.msk.f32.gmra.mxu3 %vm602_vm4, %v2422_v38 }
 0x88c   : > { %v2236_v8 = vadd.f32 %v2229_v47, %v5022_v59  ;;  %v3703_v37 = vmul.f32 -1.442695, %v2283_v52  ;;  %v5672_v59 = vld [vmem:[#allocation35_spill] sm:$0xff] }
 0x88e   : > { %v2271_v13 = vadd.f32 %v2257_v33, %v2236_v8  ;;  %4021 = vpow2.f32 %v3703_v37 }
 0x890   : > { %v2278_v46 = vadd.f32 %v2271_v13, %v4712_v6 }
 0x891   : > { %v5236_v34 = vpop.permute.xlu2 %3840 }
 0x892   : > { %v5239_v53 = vadd.f32 %v2278_v46, %v5671_v14 }
 0x894   : > { %v4022_v7 = vpop.eup %4021  ;;  %v2211_v48 = vpop.xlane.xlu1 %2210  ;;  %v3705_v28 = vmul.f32 -1.442695, %v5239_v53 }
 0x895   : > { %v2220_v35 = vmul.f32 0.25, %v2211_v48  ;;  %v2311_v60 = vadd.f32 1.0, %v4022_v7 }
 0x897   : > { %v2228_v1 = vmul.f32 %v5164_v2, %v2220_v35  ;;  %4023 = vrcp.f32 %v2311_v60  ;;  %v2385_v2 = vand.u32 2147483648, %v2311_v60  ;;  %vm2379_vm6 = vweird.f32 %v2311_v60 }
 0x898   : > { %4025 = vpow2.f32 %v3705_v28 }
 0x899   : > { %v2235_v32 = vadd.f32 %v2228_v1, %v5672_v59  ;;  %v5244_v21 = vpop.permute.xlu2 %3855  ;;  %v2386_v55 = vor.u32 1.1754944e-38, %v2385_v2 }
 0x89a   : > { %v5256_v57 = vpop.permute.xlu0 %3825  ;;  %v3857_v48 = vunpack.i.l.bf16 %v5244_v21 }
 0x89b   : > { %v2270_v6 = vadd.f32 %v5214_v58, %v2235_v32  ;;  %v2383_v58 = vand.u32 2147483647, %v2311_v60 }
 0x89d   : > { %v4024_v33 = vpop.eup %4023  ;;  %v2277_v0 = vadd.f32 %v2270_v6, %v5673_v29  ;;  %vm2384_vm8 = vcmp.eq.f32.partialorder %v2383_v58, 8.507059e+37 }
 0x89e   : > { %v4026_v62 = vpop.eup %4025  ;;  %v2375_v49 = vmul.f32 %v4024_v33, %v2311_v60  ;;  %vm2380_vm3 = vweird.f32 %v4024_v33  ;;  %v3858_v60 = vunpack.i.h.bf16 %v5244_v21  ;;  %v3828_v21 = vunpack.i.h.bf16 %v5256_v57 }
 0x89f   : > { %v5249_v18 = vadd.f32 %v2277_v0, %v5674_v45  ;;  %v5254_v11 = vadd.f32 1.0, %v4026_v62  ;;  %vm2381_vm7 = vmor %vm2379_vm6, %vm2380_vm3  ;;  %v3827_v45 = vunpack.i.l.bf16 %v5256_v57 }
 0x8a0   : > { %v2376_v3 = vsub.f32 1.0, %v2375_v49  ;;  %v3833_v49 = vunpack.i.h.bf16 %v5221_v15 }
 0x8a1   : > { %v5251_v4 = vpop.permute.xlu2 %2852  ;;  %v3704_v20 = vmul.f32 -1.442695, %v5249_v18  ;;  %vm2409_vm0 = vweird.f32 %v5254_v11  ;;  %v2415_v57 = vand.u32 2147483648, %v5254_v11 }
 0x8a2   : > { %v2377_v25 = vmul.f32 %v4024_v33, %v2376_v3  ;;  %v3851_v38 = vpop.permute.xlu0 %3850 }
 0x8a3   : > { %4027 = vpow2.f32 %v3704_v20  ;;  %v3852_v37 = vunpack.i.l.bf16 %v3851_v38  ;;  %v3853_v13 = vunpack.i.h.bf16 %v3851_v38 }
 0x8a4   : > { %v2378_v41 = vadd.f32 %v4024_v33, %v2377_v25  ;;  %4029 = vrcp.f32 %v5254_v11 }
 0x8a6   : > { %v2382_v26 = vsel %vm2381_vm7, %v4024_v33, %v2378_v41 }
 0x8a7   : > { %v2387_v36 = vsel %vm2384_vm8, %v2386_v55, %v2382_v26 }
 0x8a8   : > { %v2423_v54 = vmul.f32 %v2387_v36, %v2283_v52  ;;  %v2413_v36 = vand.u32 2147483647, %v5254_v11 }
 0x8a9   : > { %v4028_v19 = vpop.eup %4027  ;;  %v2992_v61 = vpop.permute.xlu2 %2991 }
 0x8aa   : > { %v3007_v23 = vmul.f32 %v2992_v61, %v4588_v31  ;;  %3710 = vmatmul.msk.f32.gmra.mxu3 %vm602_vm4, %v2423_v54  ;;  %v2312_v9 = vadd.f32 1.0, %v4028_v19  ;;  %v5261_v43 = vpop.eup %4029  ;;  %v3861_v32 = vpop.permute.xlu0 %3860  ;;  %v2519_v54 = vsel %vm2515_vm1, %v3827_v45, %v3828_v21  ;;  %vm2414_vm6 = vcmp.eq.f32.partialorder %v2413_v36, 8.507059e+37 }
 0x8ab   : > { %v2405_v52 = vmul.f32 %v5261_v43, %v5254_v11  ;;  %v3862_v29 = vunpack.i.l.bf16 %v3861_v32  ;;  %v3863_v3 = vunpack.i.h.bf16 %v3861_v32  ;;  %vm2410_vm15 = vweird.f32 %v5261_v43  ;;  %2557 = vmatpush.msra.mxu1 %v2519_v54 }
 0x8ac   : > { %v3846_v47 = vpop.permute.xlu1 %3845  ;;  %3026 = vrot.lane.b32.xlu1 %v3007_v23, %s4151_s30  ;;  %4031 = vrcp.f32 %v2312_v9  ;;  %v2400_v6 = vand.u32 2147483648, %v2312_v9  ;;  %v2398_v62 = vand.u32 2147483647, %v2312_v9  ;;  %vm2394_vm13 = vweird.f32 %v2312_v9  ;;  %vm2411_vm3 = vmor %vm2409_vm0, %vm2410_vm15 }
 0x8ad   : > { %v3848_v27 = vunpack.i.h.bf16 %v3846_v47  ;;  %v3847_v8 = vunpack.i.l.bf16 %v3846_v47  ;;  %v2406_v7 = vsub.f32 1.0, %v2405_v52  ;;  %v2416_v23 = vor.u32 1.1754944e-38, %v2415_v57 }
 0x8ae   : > { %v2401_v25 = vor.u32 1.1754944e-38, %v2400_v6  ;;  %vm2399_vm14 = vcmp.eq.f32.partialorder %v2398_v62, 8.507059e+37  ;;  %v3838_v52 = vunpack.i.h.bf16 %v5228_v51 }
 0x8af   : > { %2785 = vmatpush.msrb.mxu0 %v3847_v8  ;;  %v2407_v33 = vmul.f32 %v5261_v43, %v2406_v7 }
 0x8b1   : > { %v2990_v46 = vpop.permute.xlu2 %2989  ;;  %2786 = vmatpush.msrb.mxu0 %v3848_v27  ;;  %v2408_v55 = vadd.f32 %v5261_v43, %v2407_v33  ;;  %v5676_v27 = vld [vmem:[#allocation14_spill] sm:$0xff] }
 0x8b2   : > { %v4032_v14 = vpop.eup %4031  ;;  %v3006_v20 = vmul.f32 %v2990_v46, %v4567_v5 }
 0x8b3   : > { %v2390_v28 = vmul.f32 %v4032_v14, %v2312_v9  ;;  %2787 = vmatpush.msrb.mxu0 %v3852_v37  ;;  %vm2395_vm9 = vweird.f32 %v4032_v14  ;;  %v2412_v61 = vsel %vm2411_vm3, %v5261_v43, %v2408_v55  ;;  %v3837_v37 = vunpack.i.l.bf16 %v5228_v51  ;;  %v5320_v51 = vld [vmem:[%s4257_s25 + $0x8] sm:$0xff] }
 0x8b4   : > { %v2994_v35 = vpop.permute.xlu1 %2993  ;;  %2959 = vrot.lane.b32.xlu1 %v5026_v30, %s4150_s24  ;;  %v3832_v30 = vunpack.i.l.bf16 %v5221_v15  ;;  %vm2396_vm2 = vmor %vm2394_vm13, %vm2395_vm9  ;;  %v2417_v11 = vsel %vm2414_vm6, %v2416_v23, %v2412_v61 }
 0x8b5   : > { %v3008_v1 = vmul.f32 %v2994_v35, %v4574_v10  ;;  %v2391_v59 = vsub.f32 1.0, %v2390_v28  ;;  %2788 = vmatpush.msrb.mxu0 %v3853_v13  ;;  %v2425_v47 = vmul.f32 %v2417_v11, %v5239_v53  ;;  %v3843_v53 = vunpack.i.h.bf16 %v5236_v34  ;;  %v2982_v13 = vpop.permute.xlu0 %2981 }
 0x8b6   : > { %v2518_v19 = vsel %vm2515_vm1, %v3832_v30, %v3833_v49  ;;  %v2517_v46 = vsel %vm2515_vm1, %v3837_v37, %v3838_v52 }
 0x8b7   : > { %3028 = vrot.lane.b32.xlu0 %v3008_v1, %s4151_s30  ;;  %v2392_v0 = vmul.f32 %v4032_v14, %v2391_v59  ;;  %2789 = vmatpush.msrb.mxu0 %v3857_v48 }
 0x8b8   : > { %2558 = vmatpush.msra.mxu1 %v2518_v19 }
 0x8b9   : > { %v2393_v2 = vadd.f32 %v4032_v14, %v2392_v0  ;;  %2790 = vmatpush.msrb.mxu0 %v3858_v60  ;;  %v2988_v58 = vpop.permute.xlu2 %2987 }
 0x8ba   : > { %2559 = vmatpush.msra.mxu1 %v2517_v46 }
 0x8bb   : > { %v2397_v41 = vsel %vm2396_vm2, %v4032_v14, %v2393_v2  ;;  %2791 = vmatpush.msrb.mxu0 %v3862_v29 }
 0x8bc   : > { %3024 = vrot.lane.b32.xlu1 %v3006_v20, %s4151_s30  ;;  %v2402_v15 = vsel %vm2399_vm14, %v2401_v25, %v2397_v41 }
 0x8bd   : > { %v2424_v26 = vmul.f32 %v2402_v15, %v5249_v18  ;;  %2792 = vmatpush.msrb.mxu0 %v3863_v3  ;;  %v5675_v18 = vld [vmem:[#allocation23_spill] sm:$0xff]  ;;  %v5331_v35 = vpop.permute.xlu0 %2965  ;;  %v5362_v15 = vperm.slane %v5320_v51, 4 }
 0x8be   : > { %v3005_v9 = vmul.f32 %v2988_v58, %v5675_v18 }
 0x8bf   : > { %2961 = vrot.lane.b32.xlu0 %v5030_v63, %s4150_s24  ;;  %3711 = vmatmul.msk.f32.gmra.mxu3 %vm602_vm4, %v2424_v26 }
 0x8c1   : > { %v2986_v38 = vpop.permute.xlu2 %2985 }
 0x8c2   : > { %v3004_v63 = vmul.f32 %v2986_v38, %v4532_v50 }
 0x8c4   : > { %3022 = vrot.lane.b32.xlu1 %v3005_v9, %s4151_s30 }
 0x8c7   : > { %2955 = vrot.lane.b32.xlu0 %v5011_v24, %s4150_s24  ;;  %3712 = vmatmul.msk.f32.gmra.mxu3 %vm602_vm4, %v2425_v47  ;;  %v3842_v24 = vunpack.i.l.bf16 %v5236_v34 }
 0x8c9   : > { %v2984_v43 = vpop.permute.xlu2 %2983  ;;  %v2516_v14 = vsel %vm2515_vm1, %v3842_v24, %v3843_v53 }
 0x8ca   : > { %v3003_v8 = vmul.f32 %v2984_v43, %v5676_v27  ;;  %2560 = vmatpush.msra.mxu1 %v2516_v14 }
 0x8cc   : > { %3020 = vrot.lane.b32.xlu1 %v3004_v63, %s4151_s30  ;;  %3272 = vmatpush.msrb.mxu1 %v5150_v40  ;;  %v2426_v40 = vperm.slane %v5320_v51, 3 }
 0x8ce   : > { %3273 = vmatpush.msrb.mxu1 %v5147_v42 }
 0x8cf   : > { %2953 = vrot.lane.b32.xlu0 %v5004_v17, %s4150_s24  ;;  %v5677_v17 = vld [vmem:[#allocation16_spill] sm:$0xff] }
 0x8d0   : > { %v3002_v7 = vmul.f32 %v2982_v13, %v5677_v17  ;;  %3274 = vmatpush.msrb.mxu1 %v5126_v39 }
 0x8d2   : > { %3275 = vmatpush.msrb.mxu1 %v5123_v22 }
 0x8d4   : > { %3018 = vrot.lane.b32.xlu1 %v3003_v8, %s4151_s30  ;;  %3276 = vmatpush.msrb.mxu1 %v5135_v44 }
 0x8d6   : > { %3277 = vmatpush.msrb.mxu1 %v5132_v12 }
 0x8d8   : > { %3278 = vmatpush.msrb.mxu1 %v5142_v56 }
 0x8da   : > { %3279 = vmatpush.msrb.mxu1 %v5139_v16  ;;  %v5327_v16 = vpop.permute.xlu1 %2963 }
 0x8dc   : > { %3016 = vrot.lane.b32.xlu1 %v3002_v7, %s4151_s30 }
 0x8f6   : > { %v2477_v34 = vpop.f32.mrf.mxu3 }
 0x8f7   : > { %v2478_v48 = vadd.f32 %v2477_v34, %v2426_v40 }
 0x8f9   : > { %3713 = vmatmul.msk.f32.vlgmr.msra.gmra.mxu1 %vm602_vm4, %v2478_v48 }
 0x8fe   : > { %v2480_v42 = vpop.f32.mrf.mxu3 }
 0x8ff   : > { %v2481_v39 = vadd.f32 %v2480_v42, %v2426_v40 }
 0x901   : > { %3714 = vmatmul.msk.f32.gmra.mxu1 %vm602_vm4, %v2481_v39 }
 0x906   : > { %v2483_v22 = vpop.f32.mrf.mxu3 }
 0x907   : > { %v2484_v44 = vadd.f32 %v2483_v22, %v2426_v40 }
 0x909   : > { %3715 = vmatmul.msk.f32.gmra.mxu1 %vm602_vm4, %v2484_v44 }
 0x90e   : > { %v2486_v12 = vpop.f32.mrf.mxu3 }
 0x90f   : > { %v2487_v56 = vadd.f32 %v2486_v12, %v2426_v40 }
 0x911   : > { %3716 = vmatmul.msk.f32.gmra.mxu1 %vm602_vm4, %v2487_v56 }
 0x91e   : > { %v5329_v28 = vpop.permute.xlu1 %3026 }
 0x926   : > { %v2960_v60 = vpop.permute.xlu1 %2959 }
 0x927   : > { %v5344_v62 = vmul.f32 %v2960_v60, %v5675_v18 }
 0x929   : > { %v5333_v1 = vpop.permute.xlu0 %3028 }
 0x92d   : > { %v2489_v59 = vpop.f32.mrf.mxu3 }
 0x92e   : > { %v2490_v32 = vadd.f32 %v2489_v59, %v2426_v40  ;;  %v5335_v6 = vpop.permute.xlu1 %3024 }
 0x930   : > { %3717 = vmatmul.msk.f32.gmra.mxu1 %vm602_vm4, %v2490_v32 }
 0x931   : > { %v2962_v33 = vpop.permute.xlu0 %2961 }
 0x932   : > { %v5339_v29 = vmul.f32 %v2962_v33, %v4567_v5 }
 0x934   : > { %v3041_v0 = vsub.f32 %v5339_v29, %v5335_v6 }
 0x936   : > { %v5346_v49 = vpop.permute.xlu1 %3022 }
 0x937   : > { %v3040_v30 = vsub.f32 %v5344_v62, %v5346_v49 }
 0x939   : > { %v2956_v45 = vpop.permute.xlu0 %2955 }
 0x93a   : > { %v5353_v20 = vmul.f32 %v2956_v45, %v5676_v27 }
 0x93e   : > { %v5350_v21 = vpop.permute.xlu1 %3020 }
 0x942   : > { %v2492_v3 = vpop.f32.mrf.mxu3 }
 0x943   : > { %v2493_v2 = vadd.f32 %v2492_v3, %v2426_v40 }
 0x945   : > { %3718 = vmatmul.msk.f32.gmra.mxu1 %vm602_vm4, %v2493_v2 }
 0x946   : > { %v5356_v25 = vpop.permute.xlu1 %3018 }
 0x947   : > { %v3038_v58 = vsub.f32 %v5353_v20, %v5356_v25 }
 0x94a   : > { %v2495_v41 = vpop.f32.mrf.mxu3 }
 0x94b   : > { %v2496_v55 = vadd.f32 %v2495_v41, %v2426_v40 }
 0x94d   : > { %3719 = vmatmul.msk.f32.gmra.mxu1 %vm602_vm4, %v2496_v55 }
 0x976   : > { %v2562_v57 = vpop.f32.mrf.mxu1 }
 0x977   : > { %v2563_v26 = vadd.f32 %v2562_v57, %v5362_v15 }
 0x979   : > { %v3720_v36 = vmul.f32 -1.442695, %v2563_v26 }
 0x97b   : > { %4033 = vpow2.f32 %v3720_v36 }
 0x97e   : > { %v2565_v54 = vpop.f32.mrf.mxu1 }
 0x97f   : > { %v2566_v19 = vadd.f32 %v2565_v54, %v5362_v15 }
 0x981   : > { %v4034_v61 = vpop.eup %4033  ;;  %v3721_v23 = vmul.f32 -1.442695, %v2566_v19 }
 0x982   : > { %v2604_v9 = vadd.f32 1.0, %v4034_v61 }
 0x983   : > { %4035 = vpow2.f32 %v3721_v23 }
 0x984   : > { %4037 = vrcp.f32 %v2604_v9  ;;  %v2622_v53 = vand.u32 2147483648, %v2604_v9  ;;  %v2620_v46 = vand.u32 2147483647, %v2604_v9  ;;  %vm2616_vm8 = vweird.f32 %v2604_v9 }
 0x986   : > { %v2568_v11 = vpop.f32.mrf.mxu1  ;;  %v2623_v42 = vor.u32 1.1754944e-38, %v2622_v53  ;;  %vm2621_vm13 = vcmp.eq.f32.partialorder %v2620_v46, 8.507059e+37 }
 0x987   : > { %v5367_v38 = vadd.f32 %v2568_v11, %v5362_v15 }
 0x989   : > { %v4036_v47 = vpop.eup %4035  ;;  %v3722_v63 = vmul.f32 -1.442695, %v5367_v38 }
 0x98a   : > { %v4038_v43 = vpop.eup %4037  ;;  %v2605_v8 = vadd.f32 1.0, %v4036_v47 }
 0x98b   : > { %v2612_v52 = vmul.f32 %v4038_v43, %v2604_v9  ;;  %4039 = vpow2.f32 %v3722_v63  ;;  %vm2617_vm7 = vweird.f32 %v4038_v43 }
 0x98c   : > { %4041 = vrcp.f32 %v2605_v8  ;;  %vm2618_vm9 = vmor %vm2616_vm8, %vm2617_vm7  ;;  %v2637_v59 = vand.u32 2147483648, %v2605_v8  ;;  %v2635_v33 = vand.u32 2147483647, %v2605_v8  ;;  %vm2631_vm14 = vweird.f32 %v2605_v8 }
 0x98d   : > { %v2613_v37 = vsub.f32 1.0, %v2612_v52 }
 0x98e   : > { %v2571_v24 = vpop.f32.mrf.mxu1  ;;  %v2638_v41 = vor.u32 1.1754944e-38, %v2637_v59  ;;  %vm2636_vm0 = vcmp.eq.f32.partialorder %v2635_v33, 8.507059e+37 }
 0x98f   : > { %v2614_v13 = vmul.f32 %v4038_v43, %v2613_v37  ;;  %v5371_v14 = vadd.f32 %v2571_v24, %v5362_v15 }
 0x991   : > { %v4040_v7 = vpop.eup %4039  ;;  %v2615_v40 = vadd.f32 %v4038_v43, %v2614_v13  ;;  %v3723_v34 = vmul.f32 -1.442695, %v5371_v14 }
 0x992   : > { %v4042_v48 = vpop.eup %4041  ;;  %v2606_v39 = vadd.f32 1.0, %v4040_v7 }
 0x993   : > { %v2619_v22 = vsel %vm2618_vm9, %v4038_v43, %v2615_v40  ;;  %v2627_v44 = vmul.f32 %v4042_v48, %v2605_v8  ;;  %4043 = vpow2.f32 %v3723_v34  ;;  %vm2632_vm2 = vweird.f32 %v4042_v48 }
 0x994   : > { %v5374_v12 = vsel %vm2621_vm13, %v2623_v42, %v2619_v22  ;;  %4045 = vrcp.f32 %v2606_v39  ;;  %vm2633_vm15 = vmor %vm2631_vm14, %vm2632_vm2  ;;  %v2652_v23 = vand.u32 2147483648, %v2606_v39  ;;  %v2650_v11 = vand.u32 2147483647, %v2606_v39 }
 0x995   : > { %v2716_v56 = vmul.f32 %v5374_v12, %v2563_v26  ;;  %v2628_v60 = vsub.f32 1.0, %v2627_v44  ;;  %vm2646_vm3 = vweird.f32 %v2606_v39 }
 0x996   : > { %v2653_v43 = vor.u32 1.1754944e-38, %v2652_v23  ;;  %vm2651_vm7 = vcmp.eq.f32.partialorder %v2650_v11, 8.507059e+37 }
 0x997   : > { %v2629_v32 = vmul.f32 %v4042_v48, %v2628_v60  ;;  %3727 = vmatmul.msk.f32.vlgmr.msrb.gmra.mxu0 %vm1968_vm10, %v2716_v56 }
 0x999   : > { %v4044_v45 = vpop.eup %4043  ;;  %v2630_v3 = vadd.f32 %v4042_v48, %v2629_v32 }
 0x99a   : > { %v4046_v2 = vpop.eup %4045  ;;  %v2607_v55 = vadd.f32 1.0, %v4044_v45 }
 0x99b   : > { %v2634_v57 = vsel %vm2633_vm15, %v4042_v48, %v2630_v3  ;;  %v2642_v36 = vmul.f32 %v4046_v2, %v2606_v39  ;;  %vm2647_vm1 = vweird.f32 %v4046_v2 }
 0x99c   : > { %v5378_v54 = vsel %vm2636_vm0, %v2638_v41, %v2634_v57  ;;  %4047 = vrcp.f32 %v2607_v55  ;;  %vm2648_vm6 = vmor %vm2646_vm3, %vm2647_vm1  ;;  %v2667_v24 = vand.u32 2147483648, %v2607_v55  ;;  %v2665_v46 = vand.u32 2147483647, %v2607_v55 }
 0x99d   : > { %v2717_v26 = vmul.f32 %v5378_v54, %v2566_v19  ;;  %v2643_v61 = vsub.f32 1.0, %v2642_v36  ;;  %vm2661_vm9 = vweird.f32 %v2607_v55 }
 0x99e   : > { %v2668_v40 = vor.u32 1.1754944e-38, %v2667_v24  ;;  %vm2666_vm2 = vcmp.eq.f32.partialorder %v2665_v46, 8.507059e+37 }
 0x99f   : > { %v2644_v9 = vmul.f32 %v4046_v2, %v2643_v61  ;;  %3728 = vmatmul.msk.f32.gmra.mxu0 %vm1968_vm10, %v2717_v26 }
 0x9a1   : > { %v2645_v47 = vadd.f32 %v4046_v2, %v2644_v9 }
 0x9a2   : > { %v4048_v63 = vpop.eup %4047 }
 0x9a3   : > { %v2649_v8 = vsel %vm2648_vm6, %v4046_v2, %v2645_v47  ;;  %v2657_v52 = vmul.f32 %v4048_v63, %v2607_v55  ;;  %vm2662_vm8 = vweird.f32 %v4048_v63 }
 0x9a4   : > { %v5382_v37 = vsel %vm2651_vm7, %v2653_v43, %v2649_v8  ;;  %vm2663_vm13 = vmor %vm2661_vm9, %vm2662_vm8 }
 0x9a5   : > { %v2718_v19 = vmul.f32 %v5382_v37, %v5367_v38  ;;  %v2658_v53 = vsub.f32 1.0, %v2657_v52 }
 0x9a7   : > { %v2659_v13 = vmul.f32 %v4048_v63, %v2658_v53  ;;  %3729 = vmatmul.msk.f32.gmra.mxu0 %vm1968_vm10, %v2718_v19 }
 0x9a9   : > { %v2660_v7 = vadd.f32 %v4048_v63, %v2659_v13 }
 0x9ab   : > { %v2664_v34 = vsel %vm2663_vm13, %v4048_v63, %v2660_v7 }
 0x9ac   : > { %v5387_v48 = vsel %vm2666_vm2, %v2668_v40, %v2664_v34 }
 0x9ad   : > { %v2719_v42 = vmul.f32 %v5387_v48, %v5371_v14  ;;  %v2574_v39 = vpop.f32.mrf.mxu1 }
 0x9ae   : > { %v2575_v38 = vadd.f32 %v2574_v39, %v5362_v15 }
 0x9af   : > { %3730 = vmatmul.msk.f32.gmra.mxu0 %vm1968_vm10, %v2719_v42 }
 0x9b0   : > { %v3724_v22 = vmul.f32 -1.442695, %v2575_v38 }
 0x9b2   : > { %4049 = vpow2.f32 %v3724_v22 }
 0x9b8   : > { %v4050_v44 = vpop.eup %4049 }
 0x9b9   : > { %v2608_v56 = vadd.f32 1.0, %v4050_v44 }
 0x9bb   : > { %4051 = vrcp.f32 %v2608_v56  ;;  %v2682_v3 = vand.u32 2147483648, %v2608_v56  ;;  %v2680_v14 = vand.u32 2147483647, %v2608_v56  ;;  %vm2676_vm15 = vweird.f32 %v2608_v56 }
 0x9bd   : > { %v2683_v57 = vor.u32 1.1754944e-38, %v2682_v3  ;;  %vm2681_vm1 = vcmp.eq.f32.partialorder %v2680_v14, 8.507059e+37 }
 0x9c1   : > { %v4052_v60 = vpop.eup %4051 }
 0x9c2   : > { %v2672_v59 = vmul.f32 %v4052_v60, %v2608_v56  ;;  %v2577_v32 = vpop.f32.mrf.mxu1  ;;  %vm2677_vm14 = vweird.f32 %v4052_v60 }
 0x9c3   : > { %v2578_v33 = vadd.f32 %v2577_v32, %v5362_v15  ;;  %vm2678_vm0 = vmor %vm2676_vm15, %vm2677_vm14 }
 0x9c4   : > { %v2673_v45 = vsub.f32 1.0, %v2672_v59 }
 0x9c5   : > { %v3725_v2 = vmul.f32 -1.442695, %v2578_v33 }
 0x9c6   : > { %v2674_v41 = vmul.f32 %v4052_v60, %v2673_v45 }
 0x9c7   : > { %4053 = vpow2.f32 %v3725_v2 }
 0x9c8   : > { %v2675_v55 = vadd.f32 %v4052_v60, %v2674_v41 }
 0x9ca   : > { %v2679_v36 = vsel %vm2678_vm0, %v4052_v60, %v2675_v55  ;;  %v2580_v26 = vpop.f32.mrf.mxu1 }
 0x9cb   : > { %v5394_v61 = vsel %vm2681_vm1, %v2683_v57, %v2679_v36  ;;  %v2581_v23 = vadd.f32 %v2580_v26, %v5362_v15 }
 0x9cc   : > { %v2720_v9 = vmul.f32 %v5394_v61, %v2575_v38 }
 0x9cd   : > { %v4054_v11 = vpop.eup %4053  ;;  %v3726_v47 = vmul.f32 -1.442695, %v2581_v23 }
 0x9ce   : > { %v2609_v63 = vadd.f32 1.0, %v4054_v11  ;;  %3731 = vmatmul.msk.f32.gmra.mxu0 %vm1968_vm10, %v2720_v9 }
 0x9cf   : > { %4055 = vpow2.f32 %v3726_v47 }
 0x9d0   : > { %4057 = vrcp.f32 %v2609_v63  ;;  %v2697_v24 = vand.u32 2147483648, %v2609_v63  ;;  %v2695_v46 = vand.u32 2147483647, %v2609_v63  ;;  %vm2691_vm6 = vweird.f32 %v2609_v63 }
 0x9d2   : > { %v2698_v40 = vor.u32 1.1754944e-38, %v2697_v24  ;;  %vm2696_vm8 = vcmp.eq.f32.partialorder %v2695_v46, 8.507059e+37 }
 0x9d5   : > { %v4056_v43 = vpop.eup %4055 }
 0x9d6   : > { %v4058_v8 = vpop.eup %4057  ;;  %v2610_v52 = vadd.f32 1.0, %v4056_v43 }
 0x9d7   : > { %v2687_v19 = vmul.f32 %v4058_v8, %v2609_v63  ;;  %vm2692_vm3 = vweird.f32 %v4058_v8 }
 0x9d8   : > { %4059 = vrcp.f32 %v2610_v52  ;;  %vm2693_vm7 = vmor %vm2691_vm6, %vm2692_vm3  ;;  %v2712_v44 = vand.u32 2147483648, %v2610_v52  ;;  %v2710_v60 = vand.u32 2147483647, %v2610_v52  ;;  %vm2706_vm13 = vweird.f32 %v2610_v52 }
 0x9d9   : > { %v2688_v53 = vsub.f32 1.0, %v2687_v19  ;;  %v5415_v19 = vpop.permute.xlu2 %2957 }
 0x9da   : > { %v2713_v32 = vor.u32 1.1754944e-38, %v2712_v44  ;;  %vm2711_vm14 = vcmp.eq.f32.partialorder %v2710_v60, 8.507059e+37 }
 0x9db   : > { %v2689_v13 = vmul.f32 %v4058_v8, %v2688_v53  ;;  %v5417_v53 = vpop.permute.xlu1 %3016 }
 0x9dd   : > { %v2690_v15 = vadd.f32 %v4058_v8, %v2689_v13 }
 0x9de   : > { %v4060_v7 = vpop.eup %4059 }
 0x9df   : > { %v2694_v34 = vsel %vm2693_vm7, %v4058_v8, %v2690_v15  ;;  %v2702_v42 = vmul.f32 %v4060_v7, %v2610_v52  ;;  %vm2707_vm9 = vweird.f32 %v4060_v7 }
 0x9e0   : > { %v5399_v39 = vsel %vm2696_vm8, %v2698_v40, %v2694_v34  ;;  %vm2708_vm2 = vmor %vm2706_vm13, %vm2707_vm9 }
 0x9e1   : > { %v2721_v38 = vmul.f32 %v5399_v39, %v2578_v33  ;;  %v2703_v22 = vsub.f32 1.0, %v2702_v42  ;;  %v2723_v33 = vperm.slane %v5320_v51, 5 }
 0x9e3   : > { %v2704_v56 = vmul.f32 %v4060_v7, %v2703_v22  ;;  %3732 = vmatmul.msk.f32.gmra.mxu0 %vm1968_vm10, %v2721_v38 }
 0x9e5   : > { %v2705_v59 = vadd.f32 %v4060_v7, %v2704_v56 }
 0x9e7   : > { %v2709_v45 = vsel %vm2708_vm2, %v4060_v7, %v2705_v59  ;;  %v5421_v7 = vpop.permute.xlu0 %2953 }
 0x9e8   : > { %v5403_v3 = vsel %vm2711_vm14, %v2713_v32, %v2709_v45 }
 0x9e9   : > { %v2722_v2 = vmul.f32 %v5403_v3, %v2581_v23 }
 0x9eb   : > { %3733 = vmatmul.msk.f32.gmra.mxu0 %vm1968_vm10, %v2722_v2 }
 0xa14   : > { %v2794_v41 = vpop.f32.mrf.mxu0 }
 0xa15   : > { %v2795_v14 = vadd.f32 %v2794_v41, %v2723_v33 }
 0xa17   : > { %3044 = vrot.lane.b32.xlu1 %v2795_v14, %s4152_s14  ;;  %2822 = vrot.lane.b32.xlu0 %v2795_v14, %s4142_s29 }
 0xa1c   : > { %v2797_v55 = vpop.f32.mrf.mxu0 }
 0xa1d   : > { %v2798_v57 = vadd.f32 %v2797_v55, %v2723_v33 }
 0xa1f   : > { %3046 = vrot.lane.b32.xlu2 %v2798_v57, %s4152_s14  ;;  %2824 = vrot.lane.b32.xlu0 %v2798_v57, %s4142_s29 }
 0xa24   : > { %v2800_v36 = vpop.f32.mrf.mxu0 }
 0xa25   : > { %v2801_v26 = vadd.f32 %v2800_v36, %v2723_v33 }
 0xa27   : > { %3048 = vrot.lane.b32.xlu1 %v2801_v26, %s4152_s14  ;;  %2826 = vrot.lane.b32.xlu0 %v2801_v26, %s4142_s29 }
 0xa2c   : > { %v2803_v23 = vpop.f32.mrf.mxu0 }
 0xa2d   : > { %v2804_v9 = vadd.f32 %v2803_v23, %v2723_v33 }
 0xa2f   : > { %3050 = vrot.lane.b32.xlu1 %v2804_v9, %s4152_s14  ;;  %2828 = vrot.lane.b32.xlu0 %v2804_v9, %s4142_s29 }
 0xa4b   : > { %v2806_v11 = vpop.f32.mrf.mxu0 }
 0xa4c   : > { %v2807_v47 = vadd.f32 %v2806_v11, %v2723_v33 }
 0xa4e   : > { %3052 = vrot.lane.b32.xlu1 %v2807_v47, %s4152_s14  ;;  %2830 = vrot.lane.b32.xlu0 %v2807_v47, %s4142_s29 }
 0xa60   : > { %v2809_v63 = vpop.f32.mrf.mxu0 }
 0xa61   : > { %v2810_v43 = vadd.f32 %v2809_v63, %v2723_v33 }
 0xa63   : > { %3054 = vrot.lane.b32.xlu1 %v2810_v43, %s4152_s14  ;;  %2832 = vrot.lane.b32.xlu0 %v2810_v43, %s4142_s29 }
 0xa68   : > { %v2812_v8 = vpop.f32.mrf.mxu0 }
 0xa69   : > { %v2813_v52 = vadd.f32 %v2812_v8, %v2723_v33 }
 0xa6b   : > { %2834 = vrot.lane.b32.xlu2 %v2813_v52, %s4142_s29  ;;  %3056 = vrot.lane.b32.xlu1 %v2813_v52, %s4152_s14 }
 0xa79   : > { %v3047_v24 = vpop.permute.xlu2 %3046 }
 0xa7a   : > { %v3068_v13 = vsel %vm2077_vm11, %v3047_v24, 0.0 }
 0xa89   : > { %v3045_v46 = vpop.permute.xlu1 %3044  ;;  %v2823_v42 = vpop.permute.xlu0 %2822 }
 0xa8a   : > { %v3065_v15 = vsel %vm2077_vm11, %v3045_v46, 0.0  ;;  %v2843_v44 = vmul.f32 %v2823_v42, %v5374_v12 }
 0xa8c   : > { %v2855_v60 = vmul.f32 %v5251_v4, %v2843_v44  ;;  %v2974_v44 = vmul.f32 %v5421_v7, %v5677_v17 }
 0xa8d   : > { %3069 = vadd.xlane.f32.xlu0 %v3068_v13 }
 0xa91   : > { %v2825_v56 = vpop.permute.xlu0 %2824 }
 0xa92   : > { %v2844_v59 = vmul.f32 %v2825_v56, %v5378_v54 }
 0xa94   : > { %v2856_v45 = vmul.f32 %v5251_v4, %v2844_v59 }
 0xa95   : > { %3066 = vadd.xlane.f32.xlu1 %v3065_v15 }
 0xa99   : > { %v3049_v40 = vpop.permute.xlu1 %3048  ;;  %v2827_v32 = vpop.permute.xlu0 %2826 }
 0xa9a   : > { %v3071_v34 = vsel %vm2077_vm11, %v3049_v40, 0.0  ;;  %v2845_v2 = vmul.f32 %v2827_v32, %v5382_v37 }
 0xa9b   : > { %3072 = vadd.xlane.f32.xlu2 %v3071_v34 }
 0xa9c   : > { %v2857_v33 = vmul.f32 %v5251_v4, %v2845_v2 }
 0xaa1   : > { %v3051_v38 = vpop.permute.xlu1 %3050  ;;  %v2829_v41 = vpop.permute.xlu0 %2828 }
 0xaa2   : > { %v3074_v22 = vsel %vm2077_vm11, %v3051_v38, 0.0  ;;  %v2846_v12 = vmul.f32 %v2829_v41, %v5387_v48 }
 0xaa3   : > { %3075 = vadd.xlane.f32.xlu0 %v3074_v22 }
 0xaa4   : > { %v2858_v54 = vmul.f32 %v5251_v4, %v2846_v12 }
 0xaae   : > { %2869 = vrot.lane.b32.xlu1 %v2855_v60, %s4142_s29  ;;  %v3037_v60 = vsub.f32 %v2974_v44, %v5417_v53 }
 0xab6   : > { %2871 = vrot.lane.b32.xlu1 %v2856_v45, %s4142_s29 }
 0xabe   : > { %2873 = vrot.lane.b32.xlu1 %v2857_v33, %s4142_s29  ;;  %v2976_v33 = vmul.f32 %v5415_v19, %v4532_v50 }
 0xac0   : > { %v3053_v14 = vpop.permute.xlu1 %3052  ;;  %v2831_v57 = vpop.permute.xlu0 %2830  ;;  %v3039_v53 = vsub.f32 %v2976_v33, %v5350_v21 }
 0xac1   : > { %v3077_v55 = vsel %vm2077_vm11, %v3053_v14, 0.0  ;;  %v2847_v36 = vmul.f32 %v2831_v57, %v5394_v61  ;;  %v2979_v14 = vmul.f32 %v5327_v16, %v4588_v31 }
 0xac2   : > { %3078 = vadd.xlane.f32.xlu2 %v3077_v55 }
 0xac3   : > { %v2859_v37 = vmul.f32 %v5251_v4, %v2847_v36 }
 0xac5   : > { %v2835_v61 = vpop.permute.xlu2 %2834 }
 0xac6   : > { %2875 = vrot.lane.b32.xlu1 %v2858_v54, %s4142_s29  ;;  %v2849_v43 = vmul.f32 %v2835_v61, %v5403_v3 }
 0xac8   : > { %v2861_v8 = vmul.f32 %v5251_v4, %v2849_v43 }
 0xace   : > { %2877 = vrot.lane.b32.xlu1 %v2859_v37, %s4142_s29  ;;  %v2912_v37 = vmul.f32 0.9, %v5676_v27  ;;  %v2914_v27 = vmul.f32 0.9, %v5675_v18 }
 0xad5   : > { %v3055_v26 = vpop.permute.xlu1 %3054  ;;  %v2833_v23 = vpop.permute.xlu0 %2832 }
 0xad6   : > { %v3080_v9 = vsel %vm2077_vm11, %v3055_v26, 0.0  ;;  %v2848_v48 = vmul.f32 %v2833_v23, %v5399_v39  ;;  %v5678_v26 = vld [vmem:[#allocation12_spill] sm:$0xff] }
 0xad7   : > { %3081 = vadd.xlane.f32.xlu0 %v3080_v9  ;;  %v2919_v23 = vmul.f32 0.1, %v5678_v26 }
 0xad8   : > { %v2860_v11 = vmul.f32 %v5251_v4, %v2848_v48 }
 0xad9   : > { %v2926_v16 = vadd.f32 %v2919_v23, %v2912_v37 }
 0xada   : > { %2879 = vrot.lane.b32.xlu1 %v2860_v11, %s4142_s29  ;;  %v5679_v11 = vld [vmem:[#allocation13_spill] sm:$0xff] }
 0xadd   : > { %v3057_v47 = vpop.permute.xlu1 %3056 }
 0xade   : > { %v3083_v63 = vsel %vm2077_vm11, %v3057_v47, 0.0  ;;  %v2913_v47 = vmul.f32 0.9, %v4532_v50 }
 0xadf   : > { %3084 = vadd.xlane.f32.xlu2 %v3083_v63 }
 0xaf7   : > { %2881 = vrot.lane.b32.xlu2 %v2861_v8, %s4142_s29 }
 0xb00   : > { %v3070_v52 = vpop.xlane.xlu0 %3069 }
 0xb01   : > { %v5452_v39 = vmul.f32 %v3070_v52, %v3038_v58  ;;  %v5680_v52 = vld [vmem:[#allocation19_spill] sm:$0xff] }
 0xb03   : > { %v3094_v61 = vmul.f32 0.14285715, %v5452_v39 }
 0xb08   : > { %v3067_v46 = vpop.xlane.xlu1 %3066 }
 0xb09   : > { %v3086_v59 = vmul.f32 %v3067_v46, %v3037_v60  ;;  %v5681_v46 = vld [vmem:[#allocation20_spill] sm:$0xff] }
 0xb0b   : > { %v3093_v32 = vmul.f32 0.14285715, %v3086_v59 }
 0xb0e   : > { %v3073_v20 = vpop.xlane.xlu2 %3072 }
 0xb0f   : > { %v3088_v12 = vmul.f32 %v3073_v20, %v3039_v53 }
 0xb11   : > { %v3095_v55 = vmul.f32 0.14285715, %v3088_v12 }
 0xb16   : > { %v3076_v24 = vpop.xlane.xlu0 %3075 }
 0xb17   : > { %v3089_v13 = vmul.f32 %v3076_v24, %v3040_v30  ;;  %v2921_v24 = vmul.f32 0.1, %v5680_v52 }
 0xb19   : > { %v3096_v15 = vmul.f32 0.14285715, %v3089_v13 }
 0xb1b   : > { %3183 = vrot.lane.b32.xlu0 %v3096_v15, %s4144_s27  ;;  %v2922_v15 = vmul.f32 0.1, %v5681_v46 }
 0xb20   : > { %v2870_v3 = vpop.permute.xlu1 %2869 }
 0xb21   : > { %v2890_v4 = vsel %vm2077_vm11, %v2870_v3, 0.0  ;;  %v2928_v3 = vadd.f32 %v2921_v24, %v2914_v27 }
 0xb22   : > { %2891 = vadd.xlane.f32.xlu1 %v2890_v4  ;;  %v2915_v4 = vmul.f32 0.9, %v4567_v5 }
 0xb24   : > { %v2929_v50 = vadd.f32 %v2922_v15, %v2915_v4  ;;  %v5687_v4 = vld [vmem:[#allocation18_spill] sm:$0xff] }
 0xb28   : > { %v2872_v40 = vpop.permute.xlu1 %2871 }
 0xb29   : > { %v2893_v34 = vsel %vm2077_vm11, %v2872_v40, 0.0 }
 0xb2a   : > { %2894 = vadd.xlane.f32.xlu1 %v2893_v34 }
 0xb30   : > { %v2874_v25 = vpop.permute.xlu1 %2873 }
 0xb31   : > { %v2896_v58 = vsel %vm2077_vm11, %v2874_v25, 0.0 }
 0xb32   : > { %2897 = vadd.xlane.f32.xlu1 %v2896_v58  ;;  %v2911_v58 = vmul.f32 0.9, %v5677_v17 }
 0xb35   : > { %v3079_v42 = vpop.xlane.xlu2 %3078 }
 0xb36   : > { %v3090_v62 = vmul.f32 %v3079_v42, %v3041_v0  ;;  %v2980_v0 = vmul.f32 %v5331_v35, %v4574_v10  ;;  %v3042_v35 = vsub.f32 %v2979_v14, %v5329_v28  ;;  %v2920_v28 = vmul.f32 0.1, %v5679_v11 }
 0xb38   : > { %v3097_v49 = vmul.f32 0.14285715, %v3090_v62  ;;  %v2876_v30 = vpop.permute.xlu1 %2875  ;;  %v3043_v45 = vsub.f32 %v2980_v0, %v5333_v1  ;;  %v2927_v63 = vadd.f32 %v2920_v28, %v2913_v47  ;;  %v2916_v0 = vmul.f32 0.9, %v4588_v31 }
 0xb39   : > { %v2899_v38 = vsel %vm2077_vm11, %v2876_v30, 0.0 }
 0xb3a   : > { %2900 = vadd.xlane.f32.xlu2 %v2899_v38  ;;  %3185 = vrot.lane.b32.xlu0 %v3097_v49, %s4144_s27  ;;  %v5682_v49 = vld [vmem:[#allocation11_spill] sm:$0xff] }
 0xb3b   : > { %v2918_v30 = vmul.f32 0.1, %v5682_v49 }
 0xb40   : > { %v2878_v22 = vpop.permute.xlu1 %2877 }
 0xb41   : > { %v2902_v56 = vsel %vm2077_vm11, %v2878_v22, 0.0  ;;  %v2925_v22 = vadd.f32 %v2918_v30, %v2911_v58 }
 0xb42   : > { %2903 = vadd.xlane.f32.xlu2 %v2902_v56 }
 0xb4a   : > { %v3082_v54 = vpop.xlane.xlu0 %3081 }
 0xb4b   : > { %3177 = vrot.lane.b32.xlu1 %v3093_v32, %s4144_s27  ;;  %v3091_v1 = vmul.f32 %v3082_v54, %v3042_v35 }
 0xb4c   : > { %v2880_v6 = vpop.permute.xlu1 %2879 }
 0xb4d   : > { %v2905_v29 = vsel %vm2077_vm11, %v2880_v6, 0.0  ;;  %v3098_v57 = vmul.f32 0.14285715, %v3091_v1 }
 0xb4e   : > { %2906 = vadd.xlane.f32.xlu2 %v2905_v29  ;;  %v5683_v29 = vld [vmem:[#allocation21_spill] sm:$0xff] }
 0xb4f   : > { %v2923_v17 = vmul.f32 0.1, %v5683_v29 }
 0xb52   : > { %v3085_v2 = vpop.xlane.xlu2 %3084 }
 0xb53   : > { %v3092_v7 = vmul.f32 %v3085_v2, %v3043_v45  ;;  %v5684_v45 = vld [vmem:[#allocation22_spill] sm:$0xff] }
 0xb54   : > { %v2924_v2 = vmul.f32 0.1, %v5684_v45 }
 0xb55   : > { %v3099_v41 = vmul.f32 0.14285715, %v3092_v7  ;;  %v2917_v7 = vmul.f32 0.9, %v4574_v10 }
 0xb57   : > { %3189 = vrot.lane.b32.xlu0 %v3099_v41, %s4144_s27  ;;  %v2930_v41 = vadd.f32 %v2923_v17, %v2916_v0  ;;  %v2931_v12 = vadd.f32 %v2924_v2, %v2917_v7  ;;  %v3260_v17 = vperm.slane %v5320_v51, 7  ;;  %v5692_v7 = vld [vmem:[#allocation8_spill] sm:$0xff]  ;;  %v4082_v51 = vld [vmem:[%s4257_s25] sm:$0xff] }
 0xb5a   : > { %v2882_v19 = vpop.permute.xlu2 %2881 }
 0xb5b   : > { %v2908_v36 = vsel %vm2077_vm11, %v2882_v19, 0.0 }
 0xb5f   : > { %3181 = vrot.lane.b32.xlu0 %v3095_v55, %s4144_s27 }
 0xb66   : > { %3187 = vrot.lane.b32.xlu2 %v3098_v57, %s4144_s27 }
 0xb8d   : > { %v3184_v40 = vpop.permute.xlu0 %3183 }
 0xb8f   : > { %2909 = vadd.xlane.f32.xlu2 %v2908_v36 }
 0xb95   : > { %v2892_v21 = vpop.xlane.xlu1 %2891 }
 0xb96   : > { %v2932_v56 = vmul.f32 %v2925_v22, %v2892_v21 }
 0xb98   : > { %v2939_v60 = vmul.f32 0.14285715, %v2932_v56 }
 0xb9d   : > { %v2895_v9 = vpop.xlane.xlu1 %2894 }
 0xb9e   : > { %v2933_v48 = vmul.f32 %v2926_v16, %v2895_v9  ;;  %v3142_v16 = vpop.f32.mrf.mxu2 }
 0xba0   : > { %v2940_v36 = vmul.f32 0.14285715, %v2933_v48  ;;  %v5685_v48 = vld [vmem:[#allocation29_spill] sm:$0xff] }
 0xba5   : > { %v2898_v43 = vpop.xlane.xlu1 %2897 }
 0xba6   : > { %v2934_v8 = vmul.f32 %v2927_v63, %v2898_v43  ;;  %v3145_v9 = vpop.f32.mrf.mxu2 }
 0xba7   : > { %3179 = vrot.lane.b32.xlu2 %v3094_v61, %s4144_s27 }
 0xba8   : > { %v2941_v21 = vmul.f32 0.14285715, %v2934_v8 }
 0xbac   : > { %v3186_v62 = vpop.permute.xlu0 %3185 }
 0xbad   : > { %v2901_v13 = vpop.xlane.xlu2 %2900 }
 0xbae   : > { %v2935_v34 = vmul.f32 %v2928_v3, %v2901_v13  ;;  %v3148_v11 = vpop.f32.mrf.mxu2  ;;  %v5686_v13 = vld [vmem:[#allocation28_spill] sm:$0xff] }
 0xbb0   : > { %v2942_v25 = vmul.f32 0.14285715, %v2935_v34 }
 0xbb2   : > { %v3201_v38 = vadd.f32 %v3184_v40, %v2942_v25 }
 0xbb5   : > { %v2904_v20 = vpop.xlane.xlu2 %2903 }
 0xbb6   : > { %v2936_v39 = vmul.f32 %v2929_v50, %v2904_v20  ;;  %v3151_v28 = vpop.f32.mrf.mxu2  ;;  %v5688_v20 = vld [vmem:[#allocation17_spill] sm:$0xff] }
 0xbb7   : > { %v3166_v25 = vmul.f32 %v3151_v28, %v5688_v20 }
 0xbb8   : > { %v2943_v42 = vmul.f32 0.14285715, %v2936_v39 }
 0xbba   : > { %v3202_v18 = vadd.f32 %v3186_v62, %v2943_v42  ;;  %v5689_v42 = vld [vmem:[#allocation15_spill] sm:$0xff] }
 0xbbb   : > { %v3165_v62 = vmul.f32 %v3148_v11, %v5689_v42  ;;  %v4087_v42 = vld [vmem:[%s4247_s18 + $0x20] sm:$0xff] }
 0xbbc   : > { %v3864_v44 = vpack.i.bf16 %v3201_v38, %v3202_v18  ;;  %v5690_v18 = vld [vmem:[#allocation10_spill] sm:$0xff] }
 0xbbd   : > { %v3178_v5 = vpop.permute.xlu1 %3177  ;;  %v3164_v22 = vmul.f32 %v3145_v9, %v5690_v18 }
 0xbbe   : > { %3865 = vrot.lane.b32.xlu2 %v3864_v44, %s4142_s29  ;;  %v3198_v59 = vadd.f32 %v3178_v5, %v2939_v60  ;;  %v3154_v47 = vpop.f32.mrf.mxu2  ;;  %v5691_v5 = vld [vmem:[#allocation9_spill] sm:$0xff] }
 0xbbf   : > { %v3167_v40 = vmul.f32 %v3154_v47, %v5687_v4  ;;  %v3163_v60 = vmul.f32 %v3142_v16, %v5691_v5  ;;  %v4084_v16 = vld [vmem:[%s4242_s15 + $0x38] sm:$0xff]  ;;  %v4091_v5 = vld [vmem:[%s4247_s18 + $0x30] sm:$0xff] }
 0xbc1   : > { %v2907_v32 = vpop.xlane.xlu2 %2906 }
 0xbc2   : > { %v2937_v53 = vmul.f32 %v2930_v41, %v2907_v32 }
 0xbc4   : > { %v2944_v54 = vmul.f32 0.14285715, %v2937_v53 }
 0xbc6   : > { %3212 = vrot.lane.b32.xlu2 %v3198_v59, %s4142_s29  ;;  %v3157_v63 = vpop.f32.mrf.mxu2 }
 0xbc7   : > { %v3168_v46 = vmul.f32 %v3157_v63, %v5686_v13  ;;  %v4085_v13 = vld [vmem:[%s4242_s15 + $0x8] sm:$0xff] }
 0xbc9   : > { %v3188_v6 = vpop.permute.xlu2 %3187  ;;  %v3190_v33 = vpop.permute.xlu0 %3189 }
 0xbca   : > { %v3203_v1 = vadd.f32 %v3188_v6, %v2944_v54  ;;  %v4081_v6 = vld [vmem:[%s5593_s5] sm:$0xff] }
 0xbce   : > { %v3160_v61 = vpop.f32.mrf.mxu2 }
 0xbcf   : > { %v3169_v8 = vmul.f32 %v3160_v61, %v5685_v48 }
 0xbd1   : > { %v3182_v19 = vpop.permute.xlu0 %3181 }
 0xbd2   : > { %v3200_v31 = vadd.f32 %v3182_v19, %v2941_v21 }
 0xc02   : > { %v2910_v14 = vpop.xlane.xlu2 %2909 }
 0xc03   : > { %v2938_v55 = vmul.f32 %v2931_v12, %v2910_v14  ;;  %v4154_v12 = vmov 0   ;;  %v3309_v14 = vperm.slane %v4082_v51, 2 }
 0xc04   : > { %3879 = vset.pattern.permute.xlu0 %v4154_v12  ;;  %3880 = vset.pattern.permute.xlu2 %v4154_v12 }
 0xc05   : > { %v2945_v35 = vmul.f32 0.14285715, %v2938_v55  ;;  %v3300_v55 = vperm.slane %v4082_v51, 3 }
 0xc07   : > { %v3204_v57 = vadd.f32 %v3190_v33, %v2945_v35 }
 0xc09   : > { %v3869_v37 = vpack.i.bf16 %v3203_v1, %v3204_v57 }
 0xc0a   : > { %v3180_v26 = vpop.permute.xlu2 %3179 }
 0xc0b   : > { %v3199_v23 = vadd.f32 %v3180_v26, %v2940_v36  ;;  %3870 = vrot.lane.b32.xlu0 %v3869_v37, %s4142_s29 }
 0xc0d   : > { %v3874_v10 = vpack.i.bf16 %v3199_v23, %v3200_v31  ;;  %v5541_v31 = vld [vmem:[%s4257_s25 + $0x10] sm:$0xff] }
 0xc0e   : > { %v3340_v23 = vperm.slane %v5541_v31, 0 }
 0xc13   : > { %3875 = vrot.lane.b32.xlu0 %v3874_v10, %s4142_s29  ;;  %v4083_v10 = vld [vmem:[%s4242_s15 + $0x28] sm:$0xff] }
 0xc14   : > { %v3881_v9 = vpack.i.bf16 %v4083_v10, %v4084_v16 }
 0xc18   : > { %v3866_v43 = vpop.permute.xlu2 %3865 }
 0xc19   : > { %v3867_v15 = vunpack.i.l.bf16 %v3866_v43  ;;  %v3868_v34 = vunpack.i.h.bf16 %v3866_v43 }
 0xc1b   : > { %v3237_v39 = vsel %vm1968_vm10, %v3167_v40, %v3867_v15  ;;  %v3236_v38 = vsel %vm1968_vm10, %v3166_v25, %v3868_v34 }
 0xc20   : > { %v3213_v56 = vpop.permute.xlu2 %3212 }
 0xc21   : > { %v3233_v32 = vsel %vm1968_vm10, %v3163_v60, %v3213_v56  ;;  %v4092_v60 = vld [vmem:[%s4247_s18 + $0x38] sm:$0xff] }
 0xc7d   : > { %v3871_v52 = vpop.permute.xlu0 %3870 }
 0xc7e   : > { %v3873_v24 = vunpack.i.h.bf16 %v3871_v52  ;;  %v3872_v27 = vunpack.i.l.bf16 %v3871_v52 }
 0xc80   : > { %v3239_v3 = vsel %vm1968_vm10, %v3169_v8, %v3872_v27  ;;  %v3238_v50 = vsel %vm1968_vm10, %v3168_v46, %v3873_v24  ;;  %v3346_v27 = vperm.slane %v5541_v31, 1  ;;  %v4086_v46 = vld [vmem:[%s4242_s15 + $0x18] sm:$0xff] }
 0xc81   : > { %3249 = vmatpush.msra.mxu3 %v3239_v3  ;;  %v3886_v15 = vpack.i.bf16 %v4085_v13, %v4086_v46 }
 0xc83   : > { %3250 = vmatpush.msra.mxu3 %v3238_v50 }
 0xc85   : > { %v3876_v58 = vpop.permute.xlu0 %3875  ;;  %3251 = vmatpush.msra.mxu3 %v3237_v39 }
 0xc86   : > { %v3878_v49 = vunpack.i.h.bf16 %v3876_v58  ;;  %v3877_v30 = vunpack.i.l.bf16 %v3876_v58 }
 0xc87   : > { %3252 = vmatpush.msra.mxu3 %v3236_v38  ;;  %v4090_v38 = vld [vmem:[%s4247_s18 + $0x8] sm:$0xff] }
 0xc88   : > { %v3235_v44 = vsel %vm1968_vm10, %v3165_v62, %v3877_v30  ;;  %v3234_v59 = vsel %vm1968_vm10, %v3164_v22, %v3878_v49  ;;  %v4088_v62 = vld [vmem:[%s4247_s18 + $0x28] sm:$0xff]  ;;  %v4089_v30 = vld [vmem:[%s4247_s18] sm:$0xff] }
 0xc89   : > { %3253 = vmatpush.msra.mxu3 %v3235_v44  ;;  %v3896_v49 = vpack.i.bf16 %v4087_v42, %v4088_v62  ;;  %v3906_v18 = vpack.i.bf16 %v4089_v30, %v4090_v38 }
 0xc8b   : > { %3254 = vmatpush.msra.mxu3 %v3234_v59  ;;  %v3891_v59 = vpack.i.bf16 %v4091_v5, %v4092_v60 }
 0xc8d   : > { %3255 = vmatpush.msra.mxu3 %v3233_v32  ;;  %v4093_v32 = vld [vmem:[%s4247_s18 + $0x10] sm:$0xff] }
 0xc8e   : > { %3742 = vmatmul.msk.f32.vlgmr.msra.gmra.mxu3 %vm2118_vm12, %v4081_v6  ;;  %v4094_v6 = vld [vmem:[%s4247_s18 + $0x18] sm:$0xff] }
 0xd11   : > { %v5523_v29 = vpop.f32.mrf.mxu3 }
 0xd12   : > { %3743 = vmatmul.msk.f32.vlgmr.msrb.gmra.mxu1 %vm1968_vm10, %v5523_v29 }
 0xd8f   : > { %v3281_v0 = vpop.f32.mrf.mxu1 }
 0xd90   : > { %v3282_v45 = vadd.f32 %v3281_v0, %v3260_v17  ;;  %v3901_v17 = vpack.i.bf16 %v4093_v32, %v4094_v6 }
 0xd92   : > { %3285 = vrot.lane.b32.xlu0 %v3282_v45, %s4153_s22 }
 0xe04   : > { %v3286_v2 = vpop.permute.xlu0 %3285 }
 0xe05   : > { %v5530_v33 = vadd.f32 %v3286_v2, %v5692_v7  ;;  %v4095_v7 = vld [vmem:[#allocation3] sm:$0xff] }
 0xe07   : > { %3294 = vrot.lane.b32.xlu2 %v5530_v33, %s4141_s28 }
 0xe0f   : > { %3311 = vrot.lane.b32.xlu2 %v3309_v14, %s4153_s22 }
 0xe61   : > { %v3295_v41 = vpop.permute.xlu2 %3294 }
 0xe62   : > { %v3297_v53 = vsel %vm602_vm4, %v3295_v41, 0.0 }
 0xe63   : > { %3298 = vadd.xlane.f32.xlu1 %v3297_v53 }
 0xe69   : > { %v3312_v19 = vpop.permute.xlu2 %3311 }
 0xe7c   : > { %3882 = vrot.lane.b32.xlu1 %v3881_v9, %s4155_s19 }
 0xe84   : > { %3902 = vrot.lane.b32.xlu1 %v3901_v17, %s4143_s16 }
 0xed6   : > { %v3299_v54 = vpop.xlane.xlu1 %3298 }
 0xed7   : > { %v3301_v35 = vmul.f32 %v3300_v55, %v3299_v54 }
 0xed9   : > { %3304 = vperm.xlu0 %3879, %v3301_v35  }
 0xeee   : > { %v3883_v34 = vpop.permute.xlu1 %3882 }
 0xeef   : > { %v3885_v50 = vunpack.i.h.bf16 %v3883_v34  ;;  %v3884_v20 = vunpack.i.l.bf16 %v3883_v34 }
 0xef1   : > { %3382 = vmatpush.msrb.mxu3 %v3884_v20 }
 0xef3   : > { %3383 = vmatpush.msrb.mxu3 %v3885_v50 }
 0xef6   : > { %v3903_v54 = vpop.permute.xlu1 %3902 }
 0xef7   : > { %v3904_v35 = vunpack.i.l.bf16 %v3903_v54 }
 0xf4b   : > { %v3305_v1 = vpop.permute.xlu0 %3304 }
 0xf4c   : > { %v3307_v57 = vsub.f32 %v5530_v33, %v3305_v1  ;;  %v3352_v1 = vperm.slane %v5541_v31, 2 }
 0xf4e   : > { %v3308_v36 = vmul.f32 %v3307_v57, %v3307_v57 }
 0xf50   : > { %v3314_v21 = vmul.f32 %v3312_v19, %v3308_v36  ;;  %v3905_v19 = vunpack.i.h.bf16 %v3903_v54 }
 0xf52   : > { %3316 = vrot.lane.b32.xlu2 %v3314_v21, %s4141_s28 }
 0xf5a   : > { %3342 = vrot.lane.b32.xlu2 %v3340_v23, %s4153_s22 }
 0xfac   : > { %v3317_v37 = vpop.permute.xlu2 %3316 }
 0xfad   : > { %v3319_v26 = vsel %vm602_vm4, %v3317_v37, 0.0 }
 0xfae   : > { %3320 = vadd.xlane.f32.xlu0 %v3319_v26 }
 0xfb4   : > { %v3343_v3 = vpop.permute.xlu2 %3342 }
 0xfc2   : > { %3892 = vrot.lane.b32.xlu0 %v3891_v59, %s4143_s16 }
0x1021   : > { %v3321_v11 = vpop.xlane.xlu0 %3320 }
0x1022   : > { %v3322_v28 = vmul.f32 %v3321_v11, %v3300_v55 }
0x1024   : > { %v3323_v47 = vadd.f32 1e-05, %v3322_v28 }
0x1026   : > { %4061 = vrsqrt.f32 %v3323_v47  ;;  %vm3330_vm12 = vweird.f32 %v3323_v47 }
0x102c   : > { %v4062_v63 = vpop.eup %4061 }
0x102d   : > { %v3325_v61 = vmul.f32 %v4062_v63, %v3323_v47  ;;  %vm3331_vm11 = vweird.f32 %v4062_v63 }
0x102e   : > { %vm3332_vm15 = vmor %vm3330_vm12, %vm3331_vm11 }
0x102f   : > { %v3326_v43 = vmul.f32 %v4062_v63, %v3325_v61 }
0x1031   : > { %v3327_v52 = vmul.f32 0.5, %v3326_v43 }
0x1033   : > { %v3328_v48 = vsub.f32 1.5, %v3327_v52 }
0x1034   : > { %v3893_v53 = vpop.permute.xlu0 %3892 }
0x1035   : > { %v3329_v8 = vmul.f32 %v4062_v63, %v3328_v48  ;;  %v3894_v12 = vunpack.i.l.bf16 %v3893_v53  ;;  %v3895_v14 = vunpack.i.h.bf16 %v3893_v53 }
0x1037   : > { %v3333_v24 = vsel %vm3332_vm15, %v4062_v63, %v3329_v8  ;;  %3446 = vmatpush.msra.mxu1 %v3894_v12 }
0x1038   : > { %3336 = vperm.xlu2 %3880, %v3333_v24   ;;  %v3410_v24 = vperm.slane %v5541_v31, 3 }
0x1039   : > { %3447 = vmatpush.msra.mxu1 %v3895_v14 }
0x1040   : > { %3348 = vrot.lane.b32.xlu2 %v3346_v27, %s4153_s22 }
0x1048   : > { %3887 = vrot.lane.b32.xlu2 %v3886_v15, %s4155_s19 }
0x1092   : > { %v3337_v4 = vpop.permute.xlu2 %3336 }
0x1093   : > { %v3339_v40 = vmul.f32 %v3337_v4, %v3307_v57 }
0x1095   : > { %v3345_v25 = vmul.f32 %v3343_v3, %v3339_v40 }
0x109a   : > { %v3349_v39 = vpop.permute.xlu2 %3348 }
0x109b   : > { %v3351_v58 = vadd.f32 %v3349_v39, %v3345_v25 }
0x109d   : > { %3354 = vrot.lane.b32.xlu2 %v3351_v58, %s4141_s28 }
0x10a2   : > { %v3888_v22 = vpop.permute.xlu2 %3887 }
0x10a3   : > { %v3890_v44 = vunpack.i.h.bf16 %v3888_v22  ;;  %v3889_v56 = vunpack.i.l.bf16 %v3888_v22 }
0x10a5   : > { %3897 = vrot.lane.b32.xlu2 %v3896_v49, %s4143_s16  ;;  %3384 = vmatpush.msrb.mxu3 %v3889_v56 }
0x10a7   : > { %3385 = vmatpush.msrb.mxu3 %v3890_v44 }
0x10ad   : > { %3907 = vrot.lane.b32.xlu2 %v3906_v18, %s4143_s16 }
0x10b5   : > { %3289 = vrot.lane.b32.xlu2 %v5523_v29, %s4142_s29 }
0x10f7   : > { %v3355_v0 = vpop.permute.xlu2 %3354 }
0x10f8   : > { %3744 = vmatmul.msk.f32.vlgmr.msrb.gmra.mxu3 %vm602_vm4, %v3355_v0 }
0x10ff   : > { %v3898_v45 = vpop.permute.xlu2 %3897 }
0x1100   : > { %v3899_v51 = vunpack.i.l.bf16 %v3898_v45  ;;  %v3900_v55 = vunpack.i.h.bf16 %v3898_v45 }
0x1102   : > { %3448 = vmatpush.msra.mxu1 %v3899_v51 }
0x1104   : > { %3449 = vmatpush.msra.mxu1 %v3900_v55 }
0x1106   : > { %3450 = vmatpush.msra.mxu1 %v3904_v35 }
0x1107   : > { %v3908_v29 = vpop.permute.xlu2 %3907 }
0x1108   : > { %v3909_v57 = vunpack.i.l.bf16 %v3908_v29  ;;  %v3910_v36 = vunpack.i.h.bf16 %v3908_v29  ;;  %3451 = vmatpush.msra.mxu1 %v3905_v19 }
0x110a   : > { %3452 = vmatpush.msra.mxu1 %v3909_v57 }
0x110c   : > { %3453 = vmatpush.msra.mxu1 %v3910_v36 }
0x110f   : > { %v3290_v2 = vpop.permute.xlu2 %3289 }
0x1110   : > { %v3292_v41 = vadd.f32 %v4095_v7, %v3290_v2 }
0x1112   : > { %3468 = vst.msk [vmem:[#allocation3] sm:$0xff] %vm636_vm5, %v3292_v41 }
0x117b   : > { %v3387_v21 = vpop.f32.mrf.mxu3 }
0x117c   : > { %v3388_v37 = vadd.f32 %v3387_v21, %v3352_v1 }
0x117e   : > { %v3745_v26 = vmul.f32 -1.442695, %v3388_v37 }
0x1180   : > { %4063 = vpow2.f32 %v3745_v26 }
0x1186   : > { %v4064_v23 = vpop.eup %4063 }
0x1187   : > { %v3393_v10 = vadd.f32 1.0, %v4064_v23 }
0x1189   : > { %4065 = vrcp.f32 %v3393_v10  ;;  %v3405_v28 = vand.u32 2147483648, %v3393_v10  ;;  %v3403_v63 = vand.u32 2147483647, %v3393_v10  ;;  %vm3399_vm1 = vweird.f32 %v3393_v10 }
0x118b   : > { %v3406_v43 = vor.u32 1.1754944e-38, %v3405_v28  ;;  %vm3404_vm6 = vcmp.eq.f32.partialorder %v3403_v63, 8.507059e+37 }
0x118f   : > { %v4066_v16 = vpop.eup %4065 }
0x1190   : > { %v3395_v9 = vmul.f32 %v4066_v16, %v3393_v10  ;;  %vm3400_vm0 = vweird.f32 %v4066_v16 }
0x1191   : > { %vm3401_vm3 = vmor %vm3399_vm1, %vm3400_vm0 }
0x1192   : > { %v3396_v11 = vsub.f32 1.0, %v3395_v9 }
0x1194   : > { %v3397_v47 = vmul.f32 %v4066_v16, %v3396_v11 }
0x1196   : > { %v3398_v61 = vadd.f32 %v4066_v16, %v3397_v47 }
0x1198   : > { %v3402_v52 = vsel %vm3401_vm3, %v4066_v16, %v3398_v61 }
0x1199   : > { %v3407_v48 = vsel %vm3404_vm6, %v3406_v43, %v3402_v52 }
0x119a   : > { %v3409_v8 = vmul.f32 %v3407_v48, %v3388_v37 }
0x119c   : > { %3746 = vmatmul.msk.f32.vlgmr.msra.gmra.mxu1 %vm1968_vm10, %v3409_v8 }
0x1219   : > { %v3455_v27 = vpop.f32.mrf.mxu1 }
0x121a   : > { %v3456_v13 = vadd.f32 %v3455_v27, %v3410_v24 }
0x121c   : > { %3459 = vrot.lane.b32.xlu1 %v3456_v13, %s4153_s22 }
0x128e   : > { %v3460_v46 = vpop.permute.xlu1 %3459 }
0x128f   : > { %v3462_v15 = vadd.f32 %v3460_v46, %v5530_v33 }
0x1291   : > { %3464 = vrot.lane.b32.xlu0 %v3462_v15, %s4141_s28 }
0x1300   : > { %3472 = sbr.rel (%p3747_p5) target bundleno = 4871 (0x1307), region = 76 }
0x1303   : > { %v3465_v3 = vpop.permute.xlu0 %3464 }
0x1304   : > { %3467 = vst.msk [vmem:[#allocation2] sm:$0xff] %vm602_vm4, %v3465_v3 }
0x1305   : > { %3473 = vst.msk [vmem:[#allocation4] sm:$0xff] %vm602_vm4, %v3465_v3 }
0x1306   : > { %3474 = vst.msk [vmem:[%s5601_s13] sm:$0xff] %vm636_vm5, %v3292_v41 }
0x1307 PF: > { %p3762_p6 = scmp.eq.s32.totalorder %s4233_s26, 1  ;;  %s4156_s18 = smov [#allocation4]  }
0x1308   : > { %s3481_s29 = sshll.u32 %s4156_s18, 4  ;;  %s3483_s20 = sshll.u32 %s5600_s12, 4  ;;  %s3482_s29 = int_to_ptr.vmem [resolvable:$true] %s3481_s29  ;;  %s3484_s20 = int_to_ptr.hbm [resolvable:$true] %s3483_s20 }
0x1309   : > { %3759 = dma.vmem_to_hbm [thread:$0]  (%p3762_p6), %s3482_s29, 128, %s3484_s20, [#allocation5]  }
0x130a   : > { %4129 = dma.done.wait (%p3762_p6), [#allocation5], 128  }
0x130b   : > { %4131 = vsyncadd (%p3762_p6), [#allocation5], 4294967168 }
0x130c PF: > { %s5693_s23 = sld [smem:[#allocation7_spill]] }
0x1312   : > { %s25_s25 = sadd.s32 1, %s5693_s23  }
0x1313   : > { %p22_p7 = scmp.ge.s32.totalorder %s25_s25, 4  }
0x1315   :  { %24 = sbr.rel (!%p22_p7) target bundleno = 1 (0x1), region = 120 }
0x131a   :  { %3503 = vsyncpa [#allocation5], 1 }
0x131b   :  { %3505 = vsyncpa [#allocation5 + $0x1], 1 }

</bundles_post_ra>
